<compile_context>
chip_gen: v6e
topology: v6e:2x2x1
jax: 0.10.0
libtpu: 0.0.40
codegen_flags: <defaults>
</compile_context>

<pallas_src>
import math
from functools import partial
from typing import NamedTuple

import jax
import jax.numpy as jnp
from jax.experimental import pallas as pl
from jax.experimental.pallas import tpu as pltpu


class _Cfg(NamedTuple):
    B: int           # logical batch (20, fixed by reshape(20, 1, -1))
    B_pad: int       # batch padded to a multiple of 8 sublanes (24)
    s: int           # encoder/decoder stride = L // 2  (half-frame size)
    L: int           # encoder/decoder kernel size
    T_sig: int       # samples per batch row after framing + reshape
    T_enc: int       # encoder output timesteps
    TM: int          # half-frames (output chunks) handled per grid step
    num_blocks: int  # grid size along the time axis
    L_out: int       # valid decoder output length (== T_sig here)
    b_dec: float     # decoder bias (scalar), closed over in the kernel


@partial(jax.jit, static_argnames=("cfg",))
def _convtasnet_forward(x, sig_idx, m_aug, *, cfg):
    """x: (T_x,) raw waveform -> (20, 1, L_out)."""
    B, B_pad, s, L = cfg.B, cfg.B_pad, cfg.s, cfg.L
    T_enc, TM, nb = cfg.T_enc, cfg.TM, cfg.num_blocks
    t_half_pad = nb * TM
    lanes = TM * s                      # output-block lane width (multiple of 128)
    l_out_pad = t_half_pad * s
    rows_blk = TM * B_pad

    # ---- XLA glue (cheap, fused by XLA): framing gather + the two halo streams ---------
    # TODO(synk): the librosa overlapping-frame gather + reshape(20,1,-1) permutation has
    # no clean in-kernel equivalent (arbitrary gathers don't lower well in Mosaic); it
    # stays here as ONE cached-index gather feeding the kernel.
    sig2d = x.astype(jnp.float32)[sig_idx]                                 # (B, T_sig)
    chunks = sig2d.reshape(B, cfg.T_sig // s, s)                           # half-frames
    patches = jnp.concatenate([chunks[:, :-1, :], chunks[:, 1:, :]], -1)   # (B, T_enc, L)
    pat = jnp.concatenate([patches, jnp.ones((B, T_enc, 1), jnp.float32)], -1)  # +bias col
    pat = jnp.transpose(pat, (1, 0, 2))                                    # (T_enc, B, L+1)
    pat = jnp.pad(pat, ((0, 0), (0, B_pad - B), (0, 0)))                   # batch 20 -> 24
    # 50%-overlap overlap-add as two shifted zero-padded streams: output chunk m gets the
    # FIRST half of timestep j=m's contribution and the SECOND half of j=m-1's.  Zero rows
    # (and their zeroed bias column) make the edge timesteps vanish automatically.
    pa = jnp.pad(pat, ((0, t_half_pad - T_enc), (0, 0), (0, 0)))           # stream: j = m
    pb = jnp.pad(pat, ((1, t_half_pad - T_enc - 1), (0, 0), (0, 0)))       # stream: j = m-1
    pa = pa.reshape(t_half_pad * B_pad, L + 1)
    pb = pb.reshape(t_half_pad * B_pad, L + 1)

    b_dec = cfg.b_dec                   # scalar constant, closed over (no DMA)

    # ---- fused Pallas kernel ------------------------------------------------------------
    def kernel(pa_ref, pb_ref, m_ref, o_ref):
        m = m_ref[...]                                                     # (L+1, L)
        # One batched MXU dot per stream: rows = TM*B_pad timestep-x-batch pairs.
        ca = jnp.dot(pa_ref[...], m, preferred_element_type=jnp.float32)   # (rows_blk, L)
        cb = jnp.dot(pb_ref[...], m, preferred_element_type=jnp.float32)
        # Scatter the two half-contributions into the lane-dense output block.  All
        # offsets are static; these are cheap VMEM stores — the HBM writeback is one
        # dense (B_pad, TM*s) DMA per grid step.
        for t in range(TM):
            r = t * B_pad
            o_ref[:, t * s:(t + 1) * s] = (ca[r:r + B_pad, :s]
                                           + cb[r:r + B_pad, s:]
                                           + b_dec)

    cost = pl.CostEstimate(
        flops=2 * 2 * nb * rows_blk * (L + 1) * L,
        transcendentals=0,
        bytes_accessed=4 * (2 * nb * rows_blk * (L + 1) + B_pad * l_out_pad + (L + 1) * L),
    )

    out_pad = pl.pallas_call(
        kernel,
        out_shape=jax.ShapeDtypeStruct((B_pad, l_out_pad), jnp.float32),
        grid_spec=pltpu.PrefetchScalarGridSpec(
            num_scalar_prefetch=0,
            grid=(nb,),
            in_specs=[
                pl.BlockSpec((rows_blk, L + 1), lambda g: (g, 0)),  # stream A (j = m)
                pl.BlockSpec((rows_blk, L + 1), lambda g: (g, 0)),  # stream B (j = m-1)
                pl.BlockSpec((L + 1, L), lambda g: (0, 0)),         # fused weights
            ],
            out_specs=pl.BlockSpec((B_pad, lanes), lambda g: (0, g)),
        ),
        compiler_params=pltpu.CompilerParams(
            dimension_semantics=("parallel",),   # disjoint output blocks -> megacore-shardable
            vmem_limit_bytes=32 * 1024 * 1024,   # explicit: v7x has half the VMEM of v5e/v6e
        ),
        cost_estimate=cost,
    )(pa, pb, m_aug)

    return out_pad[:B, :cfg.L_out].reshape(B, 1, cfg.L_out)


# ------------------------------------------------------------------------------------------
# Reference-only helpers (pure JAX, used for correctness checking).
# ------------------------------------------------------------------------------------------
def librosa_frame_1d(x, frame_length, hop_length):
    """Matches librosa.util.frame for a 1-D signal: out[i, j] = x[j*hop + i]."""
    n_frames = 1 + (x.shape[0] - frame_length) // hop_length
    idx = jnp.arange(frame_length)[:, None] + hop_length * jnp.arange(n_frames)[None, :]
    return x[idx]


def extract_conv_patches(sig, kernel_size, stride):
    """sig: (B, T) -> (B, T_out, K) with patches[b, t, k] = sig[b, t*stride + k]."""
    T = sig.shape[1]
    T_out = (T - kernel_size) // stride + 1
    idx = stride * jnp.arange(T_out)[:, None] + jnp.arange(kernel_size)[None, :]
    return sig[:, idx]


# ------------------------------------------------------------------------------------------
# Model
# ------------------------------------------------------------------------------------------
class ConvTasNetPallas:
    BATCH = 20   # fixed by reshape(20, 1, -1) in the original forward

    def __init__(self, key, N=16, L=4, num_sep_blocks=4, frame_length=40, frame_step=10):
        # Small, shape-consistent analogue of ConvTasNet(N=256, L=20, B=256, ...,
        # frame_length=400, frame_step=100).
        assert L % 2 == 0
        # Original separator has B=256 blocks -> 2**256 overflows fp32.
        assert num_sep_blocks <= 60, "2**num_sep_blocks must stay finite in fp32"
        self.N, self.L, self.stride = N, L, L // 2
        self.num_sep_blocks = num_sep_blocks
        self.frame_length, self.frame_step = frame_length, frame_step

        k1, k2, k3, k4 = jax.random.split(key, 4)
        # encoder: Conv1d(1, N, kernel_size=L, stride=L//2), weight (N, 1, L), bias (N,)
        self.w_enc = 0.1 * jax.random.normal(k1, (N, 1, L), dtype=jnp.float32)
        self.b_enc = 0.1 * jax.random.normal(k2, (N,), dtype=jnp.float32)
        # decoder: ConvTranspose1d(N, 1, kernel_size=L, stride=L//2), weight (N,1,L), bias (1,)
        self.w_dec = 0.1 * jax.random.normal(k3, (N, 1, L), dtype=jnp.float32)
        self.b_dec = 0.1 * jax.random.normal(k4, (1,), dtype=jnp.float32)

        # Everything between framing and the output is linear, so fold encoder weight,
        # the separator 2**num_blocks scale, encoder bias and decoder weight into ONE
        # (L+1, L) matrix (bias row appended; applied via a constant-1 patch column).
        # Folding the scale here (output side) keeps no inflated intermediate alive.
        w_e = self.w_enc[:, 0, :]                          # (N, L)
        w_d = self.w_dec[:, 0, :]                          # (N, L)
        scale = jnp.float32(2.0) ** num_sep_blocks
        m0 = (w_e.T @ w_d) * scale                         # (L, L)
        brow = (self.b_enc @ w_d) * scale                  # (L,)
        self.m_aug = jnp.concatenate([m0, brow[None, :]], axis=0).astype(jnp.float32)

        self._static_cache = {}   # per input-length tables (gather indices, grid config)

    # -- static (per input length) tables, built once and cached ---------------------------
    def _get_static(self, T_x):
        if T_x in self._static_cache:
            return self._static_cache[T_x]
        fl, hop, B = self.frame_length, self.frame_step, self.BATCH
        n_frames = 1 + (T_x - fl) // hop
        total = fl * n_frames
        assert total % B == 0, "frames.reshape(20,1,-1) requires frame_length*n_frames % 20 == 0"
        T_sig = total // B
        s = self.stride
        assert T_sig % s == 0, "half-frame decomposition requires stride | per-row samples"
        T_enc = (T_sig - self.L) // s + 1
        L_out = (T_enc - 1) * s + self.L                  # == T_sig

        # sig2d[b, c] = x[(q % n_frames)*hop + q // n_frames], q = b*T_sig + c
        # (librosa.util.frame followed by row-major reshape(20, 1, -1))
        q = jnp.arange(B)[:, None] * T_sig + jnp.arange(T_sig)[None, :]
        sig_idx = ((q % n_frames) * hop + q // n_frames).astype(jnp.int32)

        T_half = T_sig // s                               # = T_enc + 1 output half-frames
        TM = max(1, 128 // math.gcd(128, s))              # TM*s = lcm(128, s): lane-dense blocks
        nb = -(-T_half // TM)                             # cdiv
        B_pad = -(-B // 8) * 8                            # 20 -> 24 sublanes

        cfg = _Cfg(B=B, B_pad=B_pad, s=s, L=self.L, T_sig=T_sig, T_enc=T_enc,
                   TM=TM, num_blocks=nb, L_out=L_out, b_dec=float(self.b_dec[0]))
        st = dict(sig_idx=sig_idx, cfg=cfg)
        self._static_cache[T_x] = st
        return st

    # -- fused Pallas forward ---------------------------------------------------------------
    def forward(self, x):
        st = self._get_static(int(x.shape[0]))
        return _convtasnet_forward(x, st["sig_idx"], self.m_aug, cfg=st["cfg"])

    # -- pure-JAX reference (unfused, unscaled weights) for correctness ----------------------
    def reference(self, x):
        frames = librosa_frame_1d(x.astype(jnp.float32), self.frame_length, self.frame_step)
        sig2d = jnp.reshape(frames, (self.BATCH, 1, -1))[:, 0, :]
        patches = extract_conv_patches(sig2d, self.L, self.stride)         # (B, T_enc, L)
        enc = jnp.einsum('btk,nk->btn', patches, self.w_enc[:, 0, :]) + self.b_enc
        enc = enc * (2.0 ** self.num_sep_blocks)                           # separator
        B, T_enc, _ = enc.shape
        L_out = (T_enc - 1) * self.stride + self.L
        out = jnp.zeros((B, L_out), jnp.float32)
        for j in range(T_enc):
            out = out.at[:, j * self.stride:j * self.stride + self.L].add(
                enc[:, j, :] @ self.w_dec[:, 0, :])
        out = out + self.b_dec[0]
        return out.reshape(B, 1, L_out)


if __name__ == "__main__":
    key = jax.random.PRNGKey(0)
    k_param, k_x = jax.random.split(key)

    # Raw 1-D waveform; frame_length=40, hop=10, T=80 -> 5 frames -> 200 samples
    # -> reshape(20, 1, 10); encoder T_enc=4; decoder L_out=10.
    x = jax.random.normal(k_x, (80,), dtype=jnp.float32)

    model = ConvTasNetPallas(k_param, N=16, L=4, num_sep_blocks=4,
                             frame_length=40, frame_step=10)

    out = jax.block_until_ready(model.forward(x))
    ref = model.reference(x)
    assert out.shape == ref.shape == (20, 1, 10), (out.shape, ref.shape)
    assert jnp.allclose(out, ref, rtol=1e-4, atol=1e-4), float(jnp.max(jnp.abs(out - ref)))

    print("KERNEL_OK")
</pallas_src>

<mosaic_0001>
module attributes {stable_mosaic.version = 11 : i64} {
  func.func @kernel(%arg0: i32, %arg1: memref<1536x5xf32, #tpu.memory_space<vmem>>, %arg2: memref<1536x5xf32, #tpu.memory_space<vmem>>, %arg3: memref<5x4xf32, #tpu.memory_space<vmem>>, %arg4: memref<24x128xf32, #tpu.memory_space<vmem>>) attributes {dimension_semantics = [#tpu.dimension_semantics<parallel>], iteration_bounds = array<i64: 1>, scalar_prefetch = 0 : i64, scratch_operands = 0 : i64, tpu.core_type = #tpu.core_type<tc>, window_params = [{transform_indices = @transform_0, window_bounds = array<i64: 1536, 5>}, {transform_indices = @transform_1, window_bounds = array<i64: 1536, 5>}, {pipeline_mode = #tpu.pipeline_mode<synchronous>, transform_indices = @transform_2, window_bounds = array<i64: 5, 4>}, {transform_indices = @transform_3, window_bounds = array<i64: 24, 128>}]} {
    %c0 = arith.constant 0 : index
    %c0_0 = arith.constant 0 : index
    %0 = vector.load %arg3[%c0, %c0_0] : memref<5x4xf32, #tpu.memory_space<vmem>>, vector<5x4xf32>
    %c0_1 = arith.constant 0 : index
    %c0_2 = arith.constant 0 : index
    %1 = vector.load %arg1[%c0_1, %c0_2] : memref<1536x5xf32, #tpu.memory_space<vmem>>, vector<1536x5xf32>
    %cst = arith.constant dense<0.000000e+00> : vector<1536x4xf32>
    %2 = tpu.matmul %1, %0, %cst {dimension_numbers = #tpu.dot_dimension_numbers<[1], [0], [0], [1], [0, 0, 1, 1], [], []>} : vector<1536x5xf32>, vector<5x4xf32>, vector<1536x4xf32> -> vector<1536x4xf32>
    %c0_3 = arith.constant 0 : index
    %c0_4 = arith.constant 0 : index
    %3 = vector.load %arg2[%c0_3, %c0_4] : memref<1536x5xf32, #tpu.memory_space<vmem>>, vector<1536x5xf32>
    %cst_5 = arith.constant dense<0.000000e+00> : vector<1536x4xf32>
    %4 = tpu.matmul %3, %0, %cst_5 {dimension_numbers = #tpu.dot_dimension_numbers<[1], [0], [0], [1], [0, 0, 1, 1], [], []>} : vector<1536x5xf32>, vector<5x4xf32>, vector<1536x4xf32> -> vector<1536x4xf32>
    %5 = vector.extract_strided_slice %2 {offsets = [0, 0], sizes = [24, 2], strides = [1, 1]} : vector<1536x4xf32> to vector<24x2xf32>
    %6 = vector.extract_strided_slice %4 {offsets = [0, 2], sizes = [24, 2], strides = [1, 1]} : vector<1536x4xf32> to vector<24x2xf32>
    %7 = arith.addf %5, %6 : vector<24x2xf32>
    %cst_6 = arith.constant 0.0339911245 : f32
    %8 = vector.broadcast %cst_6 : f32 to vector<24x2xf32>
    %9 = arith.addf %7, %8 : vector<24x2xf32>
    %c0_7 = arith.constant 0 : index
    %c0_8 = arith.constant 0 : index
    %10 = vector.load %arg4[%c0_7, %c0_8] : memref<24x128xf32, #tpu.memory_space<vmem>>, vector<24x2xf32>
    tpu.vector_store %arg4[%c0_7, %c0_8], %9 {strides = array<i32>} : memref<24x128xf32, #tpu.memory_space<vmem>>, vector<24x2xf32>,
    %11 = vector.extract_strided_slice %2 {offsets = [24, 0], sizes = [24, 2], strides = [1, 1]} : vector<1536x4xf32> to vector<24x2xf32>
    %12 = vector.extract_strided_slice %4 {offsets = [24, 2], sizes = [24, 2], strides = [1, 1]} : vector<1536x4xf32> to vector<24x2xf32>
    %13 = arith.addf %11, %12 : vector<24x2xf32>
    %cst_9 = arith.constant 0.0339911245 : f32
    %14 = vector.broadcast %cst_9 : f32 to vector<24x2xf32>
    %15 = arith.addf %13, %14 : vector<24x2xf32>
    %c0_10 = arith.constant 0 : index
    %c2 = arith.constant 2 : index
    %16 = vector.load %arg4[%c0_10, %c2] : memref<24x128xf32, #tpu.memory_space<vmem>>, vector<24x2xf32>
    tpu.vector_store %arg4[%c0_10, %c2], %15 {strides = array<i32>} : memref<24x128xf32, #tpu.memory_space<vmem>>, vector<24x2xf32>,
    %17 = vector.extract_strided_slice %2 {offsets = [48, 0], sizes = [24, 2], strides = [1, 1]} : vector<1536x4xf32> to vector<24x2xf32>
    %18 = vector.extract_strided_slice %4 {offsets = [48, 2], sizes = [24, 2], strides = [1, 1]} : vector<1536x4xf32> to vector<24x2xf32>
    %19 = arith.addf %17, %18 : vector<24x2xf32>
    %cst_11 = arith.constant 0.0339911245 : f32
    %20 = vector.broadcast %cst_11 : f32 to vector<24x2xf32>
    %21 = arith.addf %19, %20 : vector<24x2xf32>
    %c0_12 = arith.constant 0 : index
    %c4 = arith.constant 4 : index
    %22 = vector.load %arg4[%c0_12, %c4] : memref<24x128xf32, #tpu.memory_space<vmem>>, vector<24x2xf32>
    tpu.vector_store %arg4[%c0_12, %c4], %21 {strides = array<i32>} : memref<24x128xf32, #tpu.memory_space<vmem>>, vector<24x2xf32>,
    %23 = vector.extract_strided_slice %2 {offsets = [72, 0], sizes = [24, 2], strides = [1, 1]} : vector<1536x4xf32> to vector<24x2xf32>
    %24 = vector.extract_strided_slice %4 {offsets = [72, 2], sizes = [24, 2], strides = [1, 1]} : vector<1536x4xf32> to vector<24x2xf32>
    %25 = arith.addf %23, %24 : vector<24x2xf32>
    %cst_13 = arith.constant 0.0339911245 : f32
    %26 = vector.broadcast %cst_13 : f32 to vector<24x2xf32>
    %27 = arith.addf %25, %26 : vector<24x2xf32>
    %c0_14 = arith.constant 0 : index
    %c6 = arith.constant 6 : index
    %28 = vector.load %arg4[%c0_14, %c6] : memref<24x128xf32, #tpu.memory_space<vmem>>, vector<24x2xf32>
    tpu.vector_store %arg4[%c0_14, %c6], %27 {strides = array<i32>} : memref<24x128xf32, #tpu.memory_space<vmem>>, vector<24x2xf32>,
    %29 = vector.extract_strided_slice %2 {offsets = [96, 0], sizes = [24, 2], strides = [1, 1]} : vector<1536x4xf32> to vector<24x2xf32>
    %30 = vector.extract_strided_slice %4 {offsets = [96, 2], sizes = [24, 2], strides = [1, 1]} : vector<1536x4xf32> to vector<24x2xf32>
    %31 = arith.addf %29, %30 : vector<24x2xf32>
    %cst_15 = arith.constant 0.0339911245 : f32
    %32 = vector.broadcast %cst_15 : f32 to vector<24x2xf32>
    %33 = arith.addf %31, %32 : vector<24x2xf32>
    %c0_16 = arith.constant 0 : index
    %c8 = arith.constant 8 : index
    %34 = vector.load %arg4[%c0_16, %c8] : memref<24x128xf32, #tpu.memory_space<vmem>>, vector<24x2xf32>
    tpu.vector_store %arg4[%c0_16, %c8], %33 {strides = array<i32>} : memref<24x128xf32, #tpu.memory_space<vmem>>, vector<24x2xf32>,
    %35 = vector.extract_strided_slice %2 {offsets = [120, 0], sizes = [24, 2], strides = [1, 1]} : vector<1536x4xf32> to vector<24x2xf32>
    %36 = vector.extract_strided_slice %4 {offsets = [120, 2], sizes = [24, 2], strides = [1, 1]} : vector<1536x4xf32> to vector<24x2xf32>
    %37 = arith.addf %35, %36 : vector<24x2xf32>
    %cst_17 = arith.constant 0.0339911245 : f32
    %38 = vector.broadcast %cst_17 : f32 to vector<24x2xf32>
    %39 = arith.addf %37, %38 : vector<24x2xf32>
    %c0_18 = arith.constant 0 : index
    %c10 = arith.constant 10 : index
    %40 = vector.load %arg4[%c0_18, %c10] : memref<24x128xf32, #tpu.memory_space<vmem>>, vector<24x2xf32>
    tpu.vector_store %arg4[%c0_18, %c10], %39 {strides = array<i32>} : memref<24x128xf32, #tpu.memory_space<vmem>>, vector<24x2xf32>,
    %41 = vector.extract_strided_slice %2 {offsets = [144, 0], sizes = [24, 2], strides = [1, 1]} : vector<1536x4xf32> to vector<24x2xf32>
    %42 = vector.extract_strided_slice %4 {offsets = [144, 2], sizes = [24, 2], strides = [1, 1]} : vector<1536x4xf32> to vector<24x2xf32>
    %43 = arith.addf %41, %42 : vector<24x2xf32>
    %cst_19 = arith.constant 0.0339911245 : f32
    %44 = vector.broadcast %cst_19 : f32 to vector<24x2xf32>
    %45 = arith.addf %43, %44 : vector<24x2xf32>
    %c0_20 = arith.constant 0 : index
    %c12 = arith.constant 12 : index
    %46 = vector.load %arg4[%c0_20, %c12] : memref<24x128xf32, #tpu.memory_space<vmem>>, vector<24x2xf32>
    tpu.vector_store %arg4[%c0_20, %c12], %45 {strides = array<i32>} : memref<24x128xf32, #tpu.memory_space<vmem>>, vector<24x2xf32>,
    %47 = vector.extract_strided_slice %2 {offsets = [168, 0], sizes = [24, 2], strides = [1, 1]} : vector<1536x4xf32> to vector<24x2xf32>
    %48 = vector.extract_strided_slice %4 {offsets = [168, 2], sizes = [24, 2], strides = [1, 1]} : vector<1536x4xf32> to vector<24x2xf32>
    %49 = arith.addf %47, %48 : vector<24x2xf32>
    %cst_21 = arith.constant 0.0339911245 : f32
    %50 = vector.broadcast %cst_21 : f32 to vector<24x2xf32>
    %51 = arith.addf %49, %50 : vector<24x2xf32>
    %c0_22 = arith.constant 0 : index
    %c14 = arith.constant 14 : index
    %52 = vector.load %arg4[%c0_22, %c14] : memref<24x128xf32, #tpu.memory_space<vmem>>, vector<24x2xf32>
    tpu.vector_store %arg4[%c0_22, %c14], %51 {strides = array<i32>} : memref<24x128xf32, #tpu.memory_space<vmem>>, vector<24x2xf32>,
    %53 = vector.extract_strided_slice %2 {offsets = [192, 0], sizes = [24, 2], strides = [1, 1]} : vector<1536x4xf32> to vector<24x2xf32>
    %54 = vector.extract_strided_slice %4 {offsets = [192, 2], sizes = [24, 2], strides = [1, 1]} : vector<1536x4xf32> to vector<24x2xf32>
    %55 = arith.addf %53, %54 : vector<24x2xf32>
    %cst_23 = arith.constant 0.0339911245 : f32
    %56 = vector.broadcast %cst_23 : f32 to vector<24x2xf32>
    %57 = arith.addf %55, %56 : vector<24x2xf32>
    %c0_24 = arith.constant 0 : index
    %c16 = arith.constant 16 : index
    %58 = vector.load %arg4[%c0_24, %c16] : memref<24x128xf32, #tpu.memory_space<vmem>>, vector<24x2xf32>
    tpu.vector_store %arg4[%c0_24, %c16], %57 {strides = array<i32>} : memref<24x128xf32, #tpu.memory_space<vmem>>, vector<24x2xf32>,
    %59 = vector.extract_strided_slice %2 {offsets = [216, 0], sizes = [24, 2], strides = [1, 1]} : vector<1536x4xf32> to vector<24x2xf32>
    %60 = vector.extract_strided_slice %4 {offsets = [216, 2], sizes = [24, 2], strides = [1, 1]} : vector<1536x4xf32> to vector<24x2xf32>
    %61 = arith.addf %59, %60 : vector<24x2xf32>
    %cst_25 = arith.constant 0.0339911245 : f32
    %62 = vector.broadcast %cst_25 : f32 to vector<24x2xf32>
    %63 = arith.addf %61, %62 : vector<24x2xf32>
    %c0_26 = arith.constant 0 : index
    %c18 = arith.constant 18 : index
    %64 = vector.load %arg4[%c0_26, %c18] : memref<24x128xf32, #tpu.memory_space<vmem>>, vector<24x2xf32>
    tpu.vector_store %arg4[%c0_26, %c18], %63 {strides = array<i32>} : memref<24x128xf32, #tpu.memory_space<vmem>>, vector<24x2xf32>,
    %65 = vector.extract_strided_slice %2 {offsets = [240, 0], sizes = [24, 2], strides = [1, 1]} : vector<1536x4xf32> to vector<24x2xf32>
    %66 = vector.extract_strided_slice %4 {offsets = [240, 2], sizes = [24, 2], strides = [1, 1]} : vector<1536x4xf32> to vector<24x2xf32>
    %67 = arith.addf %65, %66 : vector<24x2xf32>
    %cst_27 = arith.constant 0.0339911245 : f32
    %68 = vector.broadcast %cst_27 : f32 to vector<24x2xf32>
    %69 = arith.addf %67, %68 : vector<24x2xf32>
    %c0_28 = arith.constant 0 : index
    %c20 = arith.constant 20 : index
    %70 = vector.load %arg4[%c0_28, %c20] : memref<24x128xf32, #tpu.memory_space<vmem>>, vector<24x2xf32>
    tpu.vector_store %arg4[%c0_28, %c20], %69 {strides = array<i32>} : memref<24x128xf32, #tpu.memory_space<vmem>>, vector<24x2xf32>,
    %71 = vector.extract_strided_slice %2 {offsets = [264, 0], sizes = [24, 2], strides = [1, 1]} : vector<1536x4xf32> to vector<24x2xf32>
    %72 = vector.extract_strided_slice %4 {offsets = [264, 2], sizes = [24, 2], strides = [1, 1]} : vector<1536x4xf32> to vector<24x2xf32>
    %73 = arith.addf %71, %72 : vector<24x2xf32>
    %cst_29 = arith.constant 0.0339911245 : f32
    %74 = vector.broadcast %cst_29 : f32 to vector<24x2xf32>
    %75 = arith.addf %73, %74 : vector<24x2xf32>
    %c0_30 = arith.constant 0 : index
    %c22 = arith.constant 22 : index
    %76 = vector.load %arg4[%c0_30, %c22] : memref<24x128xf32, #tpu.memory_space<vmem>>, vector<24x2xf32>
    tpu.vector_store %arg4[%c0_30, %c22], %75 {strides = array<i32>} : memref<24x128xf32, #tpu.memory_space<vmem>>, vector<24x2xf32>,
    %77 = vector.extract_strided_slice %2 {offsets = [288, 0], sizes = [24, 2], strides = [1, 1]} : vector<1536x4xf32> to vector<24x2xf32>
    %78 = vector.extract_strided_slice %4 {offsets = [288, 2], sizes = [24, 2], strides = [1, 1]} : vector<1536x4xf32> to vector<24x2xf32>
    %79 = arith.addf %77, %78 : vector<24x2xf32>
    %cst_31 = arith.constant 0.0339911245 : f32
    %80 = vector.broadcast %cst_31 : f32 to vector<24x2xf32>
    %81 = arith.addf %79, %80 : vector<24x2xf32>
    %c0_32 = arith.constant 0 : index
    %c24 = arith.constant 24 : index
    %82 = vector.load %arg4[%c0_32, %c24] : memref<24x128xf32, #tpu.memory_space<vmem>>, vector<24x2xf32>
    tpu.vector_store %arg4[%c0_32, %c24], %81 {strides = array<i32>} : memref<24x128xf32, #tpu.memory_space<vmem>>, vector<24x2xf32>,
    %83 = vector.extract_strided_slice %2 {offsets = [312, 0], sizes = [24, 2], strides = [1, 1]} : vector<1536x4xf32> to vector<24x2xf32>
    %84 = vector.extract_strided_slice %4 {offsets = [312, 2], sizes = [24, 2], strides = [1, 1]} : vector<1536x4xf32> to vector<24x2xf32>
    %85 = arith.addf %83, %84 : vector<24x2xf32>
    %cst_33 = arith.constant 0.0339911245 : f32
    %86 = vector.broadcast %cst_33 : f32 to vector<24x2xf32>
    %87 = arith.addf %85, %86 : vector<24x2xf32>
    %c0_34 = arith.constant 0 : index
    %c26 = arith.constant 26 : index
    %88 = vector.load %arg4[%c0_34, %c26] : memref<24x128xf32, #tpu.memory_space<vmem>>, vector<24x2xf32>
    tpu.vector_store %arg4[%c0_34, %c26], %87 {strides = array<i32>} : memref<24x128xf32, #tpu.memory_space<vmem>>, vector<24x2xf32>,
    %89 = vector.extract_strided_slice %2 {offsets = [336, 0], sizes = [24, 2], strides = [1, 1]} : vector<1536x4xf32> to vector<24x2xf32>
    %90 = vector.extract_strided_slice %4 {offsets = [336, 2], sizes = [24, 2], strides = [1, 1]} : vector<1536x4xf32> to vector<24x2xf32>
    %91 = arith.addf %89, %90 : vector<24x2xf32>
    %cst_35 = arith.constant 0.0339911245 : f32
    %92 = vector.broadcast %cst_35 : f32 to vector<24x2xf32>
    %93 = arith.addf %91, %92 : vector<24x2xf32>
    %c0_36 = arith.constant 0 : index
    %c28 = arith.constant 28 : index
    %94 = vector.load %arg4[%c0_36, %c28] : memref<24x128xf32, #tpu.memory_space<vmem>>, vector<24x2xf32>
    tpu.vector_store %arg4[%c0_36, %c28], %93 {strides = array<i32>} : memref<24x128xf32, #tpu.memory_space<vmem>>, vector<24x2xf32>,
    %95 = vector.extract_strided_slice %2 {offsets = [360, 0], sizes = [24, 2], strides = [1, 1]} : vector<1536x4xf32> to vector<24x2xf32>
    %96 = vector.extract_strided_slice %4 {offsets = [360, 2], sizes = [24, 2], strides = [1, 1]} : vector<1536x4xf32> to vector<24x2xf32>
    %97 = arith.addf %95, %96 : vector<24x2xf32>
    %cst_37 = arith.constant 0.0339911245 : f32
    %98 = vector.broadcast %cst_37 : f32 to vector<24x2xf32>
    %99 = arith.addf %97, %98 : vector<24x2xf32>
    %c0_38 = arith.constant 0 : index
    %c30 = arith.constant 30 : index
    %100 = vector.load %arg4[%c0_38, %c30] : memref<24x128xf32, #tpu.memory_space<vmem>>, vector<24x2xf32>
    tpu.vector_store %arg4[%c0_38, %c30], %99 {strides = array<i32>} : memref<24x128xf32, #tpu.memory_space<vmem>>, vector<24x2xf32>,
    %101 = vector.extract_strided_slice %2 {offsets = [384, 0], sizes = [24, 2], strides = [1, 1]} : vector<1536x4xf32> to vector<24x2xf32>
    %102 = vector.extract_strided_slice %4 {offsets = [384, 2], sizes = [24, 2], strides = [1, 1]} : vector<1536x4xf32> to vector<24x2xf32>
    %103 = arith.addf %101, %102 : vector<24x2xf32>
    %cst_39 = arith.constant 0.0339911245 : f32
    %104 = vector.broadcast %cst_39 : f32 to vector<24x2xf32>
    %105 = arith.addf %103, %104 : vector<24x2xf32>
    %c0_40 = arith.constant 0 : index
    %c32 = arith.constant 32 : index
    %106 = vector.load %arg4[%c0_40, %c32] : memref<24x128xf32, #tpu.memory_space<vmem>>, vector<24x2xf32>
    tpu.vector_store %arg4[%c0_40, %c32], %105 {strides = array<i32>} : memref<24x128xf32, #tpu.memory_space<vmem>>, vector<24x2xf32>,
    %107 = vector.extract_strided_slice %2 {offsets = [408, 0], sizes = [24, 2], strides = [1, 1]} : vector<1536x4xf32> to vector<24x2xf32>
    %108 = vector.extract_strided_slice %4 {offsets = [408, 2], sizes = [24, 2], strides = [1, 1]} : vector<1536x4xf32> to vector<24x2xf32>
    %109 = arith.addf %107, %108 : vector<24x2xf32>
    %cst_41 = arith.constant 0.0339911245 : f32
    %110 = vector.broadcast %cst_41 : f32 to vector<24x2xf32>
    %111 = arith.addf %109, %110 : vector<24x2xf32>
    %c0_42 = arith.constant 0 : index
    %c34 = arith.constant 34 : index
    %112 = vector.load %arg4[%c0_42, %c34] : memref<24x128xf32, #tpu.memory_space<vmem>>, vector<24x2xf32>
    tpu.vector_store %arg4[%c0_42, %c34], %111 {strides = array<i32>} : memref<24x128xf32, #tpu.memory_space<vmem>>, vector<24x2xf32>,
    %113 = vector.extract_strided_slice %2 {offsets = [432, 0], sizes = [24, 2], strides = [1, 1]} : vector<1536x4xf32> to vector<24x2xf32>
    %114 = vector.extract_strided_slice %4 {offsets = [432, 2], sizes = [24, 2], strides = [1, 1]} : vector<1536x4xf32> to vector<24x2xf32>
    %115 = arith.addf %113, %114 : vector<24x2xf32>
    %cst_43 = arith.constant 0.0339911245 : f32
    %116 = vector.broadcast %cst_43 : f32 to vector<24x2xf32>
    %117 = arith.addf %115, %116 : vector<24x2xf32>
    %c0_44 = arith.constant 0 : index
    %c36 = arith.constant 36 : index
    %118 = vector.load %arg4[%c0_44, %c36] : memref<24x128xf32, #tpu.memory_space<vmem>>, vector<24x2xf32>
    tpu.vector_store %arg4[%c0_44, %c36], %117 {strides = array<i32>} : memref<24x128xf32, #tpu.memory_space<vmem>>, vector<24x2xf32>,
    %119 = vector.extract_strided_slice %2 {offsets = [456, 0], sizes = [24, 2], strides = [1, 1]} : vector<1536x4xf32> to vector<24x2xf32>
    %120 = vector.extract_strided_slice %4 {offsets = [456, 2], sizes = [24, 2], strides = [1, 1]} : vector<1536x4xf32> to vector<24x2xf32>
    %121 = arith.addf %119, %120 : vector<24x2xf32>
    %cst_45 = arith.constant 0.0339911245 : f32
    %122 = vector.broadcast %cst_45 : f32 to vector<24x2xf32>
    %123 = arith.addf %121, %122 : vector<24x2xf32>
    %c0_46 = arith.constant 0 : index
    %c38 = arith.constant 38 : index
    %124 = vector.load %arg4[%c0_46, %c38] : memref<24x128xf32, #tpu.memory_space<vmem>>, vector<24x2xf32>
    tpu.vector_store %arg4[%c0_46, %c38], %123 {strides = array<i32>} : memref<24x128xf32, #tpu.memory_space<vmem>>, vector<24x2xf32>,
    %125 = vector.extract_strided_slice %2 {offsets = [480, 0], sizes = [24, 2], strides = [1, 1]} : vector<1536x4xf32> to vector<24x2xf32>
    %126 = vector.extract_strided_slice %4 {offsets = [480, 2], sizes = [24, 2], strides = [1, 1]} : vector<1536x4xf32> to vector<24x2xf32>
    %127 = arith.addf %125, %126 : vector<24x2xf32>
    %cst_47 = arith.constant 0.0339911245 : f32
    %128 = vector.broadcast %cst_47 : f32 to vector<24x2xf32>
    %129 = arith.addf %127, %128 : vector<24x2xf32>
    %c0_48 = arith.constant 0 : index
    %c40 = arith.constant 40 : index
    %130 = vector.load %arg4[%c0_48, %c40] : memref<24x128xf32, #tpu.memory_space<vmem>>, vector<24x2xf32>
    tpu.vector_store %arg4[%c0_48, %c40], %129 {strides = array<i32>} : memref<24x128xf32, #tpu.memory_space<vmem>>, vector<24x2xf32>,
    %131 = vector.extract_strided_slice %2 {offsets = [504, 0], sizes = [24, 2], strides = [1, 1]} : vector<1536x4xf32> to vector<24x2xf32>
    %132 = vector.extract_strided_slice %4 {offsets = [504, 2], sizes = [24, 2], strides = [1, 1]} : vector<1536x4xf32> to vector<24x2xf32>
    %133 = arith.addf %131, %132 : vector<24x2xf32>
    %cst_49 = arith.constant 0.0339911245 : f32
    %134 = vector.broadcast %cst_49 : f32 to vector<24x2xf32>
    %135 = arith.addf %133, %134 : vector<24x2xf32>
    %c0_50 = arith.constant 0 : index
    %c42 = arith.constant 42 : index
    %136 = vector.load %arg4[%c0_50, %c42] : memref<24x128xf32, #tpu.memory_space<vmem>>, vector<24x2xf32>
    tpu.vector_store %arg4[%c0_50, %c42], %135 {strides = array<i32>} : memref<24x128xf32, #tpu.memory_space<vmem>>, vector<24x2xf32>,
    %137 = vector.extract_strided_slice %2 {offsets = [528, 0], sizes = [24, 2], strides = [1, 1]} : vector<1536x4xf32> to vector<24x2xf32>
    %138 = vector.extract_strided_slice %4 {offsets = [528, 2], sizes = [24, 2], strides = [1, 1]} : vector<1536x4xf32> to vector<24x2xf32>
    %139 = arith.addf %137, %138 : vector<24x2xf32>
    %cst_51 = arith.constant 0.0339911245 : f32
    %140 = vector.broadcast %cst_51 : f32 to vector<24x2xf32>
    %141 = arith.addf %139, %140 : vector<24x2xf32>
    %c0_52 = arith.constant 0 : index
    %c44 = arith.constant 44 : index
    %142 = vector.load %arg4[%c0_52, %c44] : memref<24x128xf32, #tpu.memory_space<vmem>>, vector<24x2xf32>
    tpu.vector_store %arg4[%c0_52, %c44], %141 {strides = array<i32>} : memref<24x128xf32, #tpu.memory_space<vmem>>, vector<24x2xf32>,
    %143 = vector.extract_strided_slice %2 {offsets = [552, 0], sizes = [24, 2], strides = [1, 1]} : vector<1536x4xf32> to vector<24x2xf32>
    %144 = vector.extract_strided_slice %4 {offsets = [552, 2], sizes = [24, 2], strides = [1, 1]} : vector<1536x4xf32> to vector<24x2xf32>
    %145 = arith.addf %143, %144 : vector<24x2xf32>
    %cst_53 = arith.constant 0.0339911245 : f32
    %146 = vector.broadcast %cst_53 : f32 to vector<24x2xf32>
    %147 = arith.addf %145, %146 : vector<24x2xf32>
    %c0_54 = arith.constant 0 : index
    %c46 = arith.constant 46 : index
    %148 = vector.load %arg4[%c0_54, %c46] : memref<24x128xf32, #tpu.memory_space<vmem>>, vector<24x2xf32>
    tpu.vector_store %arg4[%c0_54, %c46], %147 {strides = array<i32>} : memref<24x128xf32, #tpu.memory_space<vmem>>, vector<24x2xf32>,
    %149 = vector.extract_strided_slice %2 {offsets = [576, 0], sizes = [24, 2], strides = [1, 1]} : vector<1536x4xf32> to vector<24x2xf32>
    %150 = vector.extract_strided_slice %4 {offsets = [576, 2], sizes = [24, 2], strides = [1, 1]} : vector<1536x4xf32> to vector<24x2xf32>
    %151 = arith.addf %149, %150 : vector<24x2xf32>
    %cst_55 = arith.constant 0.0339911245 : f32
    %152 = vector.broadcast %cst_55 : f32 to vector<24x2xf32>
    %153 = arith.addf %151, %152 : vector<24x2xf32>
    %c0_56 = arith.constant 0 : index
    %c48 = arith.constant 48 : index
    %154 = vector.load %arg4[%c0_56, %c48] : memref<24x128xf32, #tpu.memory_space<vmem>>, vector<24x2xf32>
    tpu.vector_store %arg4[%c0_56, %c48], %153 {strides = array<i32>} : memref<24x128xf32, #tpu.memory_space<vmem>>, vector<24x2xf32>,
    %155 = vector.extract_strided_slice %2 {offsets = [600, 0], sizes = [24, 2], strides = [1, 1]} : vector<1536x4xf32> to vector<24x2xf32>
    %156 = vector.extract_strided_slice %4 {offsets = [600, 2], sizes = [24, 2], strides = [1, 1]} : vector<1536x4xf32> to vector<24x2xf32>
    %157 = arith.addf %155, %156 : vector<24x2xf32>
    %cst_57 = arith.constant 0.0339911245 : f32
    %158 = vector.broadcast %cst_57 : f32 to vector<24x2xf32>
    %159 = arith.addf %157, %158 : vector<24x2xf32>
    %c0_58 = arith.constant 0 : index
    %c50 = arith.constant 50 : index
    %160 = vector.load %arg4[%c0_58, %c50] : memref<24x128xf32, #tpu.memory_space<vmem>>, vector<24x2xf32>
    tpu.vector_store %arg4[%c0_58, %c50], %159 {strides = array<i32>} : memref<24x128xf32, #tpu.memory_space<vmem>>, vector<24x2xf32>,
    %161 = vector.extract_strided_slice %2 {offsets = [624, 0], sizes = [24, 2], strides = [1, 1]} : vector<1536x4xf32> to vector<24x2xf32>
    %162 = vector.extract_strided_slice %4 {offsets = [624, 2], sizes = [24, 2], strides = [1, 1]} : vector<1536x4xf32> to vector<24x2xf32>
    %163 = arith.addf %161, %162 : vector<24x2xf32>
    %cst_59 = arith.constant 0.0339911245 : f32
    %164 = vector.broadcast %cst_59 : f32 to vector<24x2xf32>
    %165 = arith.addf %163, %164 : vector<24x2xf32>
    %c0_60 = arith.constant 0 : index
    %c52 = arith.constant 52 : index
    %166 = vector.load %arg4[%c0_60, %c52] : memref<24x128xf32, #tpu.memory_space<vmem>>, vector<24x2xf32>
    tpu.vector_store %arg4[%c0_60, %c52], %165 {strides = array<i32>} : memref<24x128xf32, #tpu.memory_space<vmem>>, vector<24x2xf32>,
    %167 = vector.extract_strided_slice %2 {offsets = [648, 0], sizes = [24, 2], strides = [1, 1]} : vector<1536x4xf32> to vector<24x2xf32>
    %168 = vector.extract_strided_slice %4 {offsets = [648, 2], sizes = [24, 2], strides = [1, 1]} : vector<1536x4xf32> to vector<24x2xf32>
    %169 = arith.addf %167, %168 : vector<24x2xf32>
    %cst_61 = arith.constant 0.0339911245 : f32
    %170 = vector.broadcast %cst_61 : f32 to vector<24x2xf32>
    %171 = arith.addf %169, %170 : vector<24x2xf32>
    %c0_62 = arith.constant 0 : index
    %c54 = arith.constant 54 : index
    %172 = vector.load %arg4[%c0_62, %c54] : memref<24x128xf32, #tpu.memory_space<vmem>>, vector<24x2xf32>
    tpu.vector_store %arg4[%c0_62, %c54], %171 {strides = array<i32>} : memref<24x128xf32, #tpu.memory_space<vmem>>, vector<24x2xf32>,
    %173 = vector.extract_strided_slice %2 {offsets = [672, 0], sizes = [24, 2], strides = [1, 1]} : vector<1536x4xf32> to vector<24x2xf32>
    %174 = vector.extract_strided_slice %4 {offsets = [672, 2], sizes = [24, 2], strides = [1, 1]} : vector<1536x4xf32> to vector<24x2xf32>
    %175 = arith.addf %173, %174 : vector<24x2xf32>
    %cst_63 = arith.constant 0.0339911245 : f32
    %176 = vector.broadcast %cst_63 : f32 to vector<24x2xf32>
    %177 = arith.addf %175, %176 : vector<24x2xf32>
    %c0_64 = arith.constant 0 : index
    %c56 = arith.constant 56 : index
    %178 = vector.load %arg4[%c0_64, %c56] : memref<24x128xf32, #tpu.memory_space<vmem>>, vector<24x2xf32>
    tpu.vector_store %arg4[%c0_64, %c56], %177 {strides = array<i32>} : memref<24x128xf32, #tpu.memory_space<vmem>>, vector<24x2xf32>,
    %179 = vector.extract_strided_slice %2 {offsets = [696, 0], sizes = [24, 2], strides = [1, 1]} : vector<1536x4xf32> to vector<24x2xf32>
    %180 = vector.extract_strided_slice %4 {offsets = [696, 2], sizes = [24, 2], strides = [1, 1]} : vector<1536x4xf32> to vector<24x2xf32>
    %181 = arith.addf %179, %180 : vector<24x2xf32>
    %cst_65 = arith.constant 0.0339911245 : f32
    %182 = vector.broadcast %cst_65 : f32 to vector<24x2xf32>
    %183 = arith.addf %181, %182 : vector<24x2xf32>
    %c0_66 = arith.constant 0 : index
    %c58 = arith.constant 58 : index
    %184 = vector.load %arg4[%c0_66, %c58] : memref<24x128xf32, #tpu.memory_space<vmem>>, vector<24x2xf32>
    tpu.vector_store %arg4[%c0_66, %c58], %183 {strides = array<i32>} : memref<24x128xf32, #tpu.memory_space<vmem>>, vector<24x2xf32>,
    %185 = vector.extract_strided_slice %2 {offsets = [720, 0], sizes = [24, 2], strides = [1, 1]} : vector<1536x4xf32> to vector<24x2xf32>
    %186 = vector.extract_strided_slice %4 {offsets = [720, 2], sizes = [24, 2], strides = [1, 1]} : vector<1536x4xf32> to vector<24x2xf32>
    %187 = arith.addf %185, %186 : vector<24x2xf32>
    %cst_67 = arith.constant 0.0339911245 : f32
    %188 = vector.broadcast %cst_67 : f32 to vector<24x2xf32>
    %189 = arith.addf %187, %188 : vector<24x2xf32>
    %c0_68 = arith.constant 0 : index
    %c60 = arith.constant 60 : index
    %190 = vector.load %arg4[%c0_68, %c60] : memref<24x128xf32, #tpu.memory_space<vmem>>, vector<24x2xf32>
    tpu.vector_store %arg4[%c0_68, %c60], %189 {strides = array<i32>} : memref<24x128xf32, #tpu.memory_space<vmem>>, vector<24x2xf32>,
    %191 = vector.extract_strided_slice %2 {offsets = [744, 0], sizes = [24, 2], strides = [1, 1]} : vector<1536x4xf32> to vector<24x2xf32>
    %192 = vector.extract_strided_slice %4 {offsets = [744, 2], sizes = [24, 2], strides = [1, 1]} : vector<1536x4xf32> to vector<24x2xf32>
    %193 = arith.addf %191, %192 : vector<24x2xf32>
    %cst_69 = arith.constant 0.0339911245 : f32
    %194 = vector.broadcast %cst_69 : f32 to vector<24x2xf32>
    %195 = arith.addf %193, %194 : vector<24x2xf32>
    %c0_70 = arith.constant 0 : index
    %c62 = arith.constant 62 : index
    %196 = vector.load %arg4[%c0_70, %c62] : memref<24x128xf32, #tpu.memory_space<vmem>>, vector<24x2xf32>
    tpu.vector_store %arg4[%c0_70, %c62], %195 {strides = array<i32>} : memref<24x128xf32, #tpu.memory_space<vmem>>, vector<24x2xf32>,
    %197 = vector.extract_strided_slice %2 {offsets = [768, 0], sizes = [24, 2], strides = [1, 1]} : vector<1536x4xf32> to vector<24x2xf32>
    %198 = vector.extract_strided_slice %4 {offsets = [768, 2], sizes = [24, 2], strides = [1, 1]} : vector<1536x4xf32> to vector<24x2xf32>
    %199 = arith.addf %197, %198 : vector<24x2xf32>
    %cst_71 = arith.constant 0.0339911245 : f32
    %200 = vector.broadcast %cst_71 : f32 to vector<24x2xf32>
    %201 = arith.addf %199, %200 : vector<24x2xf32>
    %c0_72 = arith.constant 0 : index
    %c64 = arith.constant 64 : index
    %202 = vector.load %arg4[%c0_72, %c64] : memref<24x128xf32, #tpu.memory_space<vmem>>, vector<24x2xf32>
    tpu.vector_store %arg4[%c0_72, %c64], %201 {strides = array<i32>} : memref<24x128xf32, #tpu.memory_space<vmem>>, vector<24x2xf32>,
    %203 = vector.extract_strided_slice %2 {offsets = [792, 0], sizes = [24, 2], strides = [1, 1]} : vector<1536x4xf32> to vector<24x2xf32>
    %204 = vector.extract_strided_slice %4 {offsets = [792, 2], sizes = [24, 2], strides = [1, 1]} : vector<1536x4xf32> to vector<24x2xf32>
    %205 = arith.addf %203, %204 : vector<24x2xf32>
    %cst_73 = arith.constant 0.0339911245 : f32
    %206 = vector.broadcast %cst_73 : f32 to vector<24x2xf32>
    %207 = arith.addf %205, %206 : vector<24x2xf32>
    %c0_74 = arith.constant 0 : index
    %c66 = arith.constant 66 : index
    %208 = vector.load %arg4[%c0_74, %c66] : memref<24x128xf32, #tpu.memory_space<vmem>>, vector<24x2xf32>
    tpu.vector_store %arg4[%c0_74, %c66], %207 {strides = array<i32>} : memref<24x128xf32, #tpu.memory_space<vmem>>, vector<24x2xf32>,
    %209 = vector.extract_strided_slice %2 {offsets = [816, 0], sizes = [24, 2], strides = [1, 1]} : vector<1536x4xf32> to vector<24x2xf32>
    %210 = vector.extract_strided_slice %4 {offsets = [816, 2], sizes = [24, 2], strides = [1, 1]} : vector<1536x4xf32> to vector<24x2xf32>
    %211 = arith.addf %209, %210 : vector<24x2xf32>
    %cst_75 = arith.constant 0.0339911245 : f32
    %212 = vector.broadcast %cst_75 : f32 to vector<24x2xf32>
    %213 = arith.addf %211, %212 : vector<24x2xf32>
    %c0_76 = arith.constant 0 : index
    %c68 = arith.constant 68 : index
    %214 = vector.load %arg4[%c0_76, %c68] : memref<24x128xf32, #tpu.memory_space<vmem>>, vector<24x2xf32>
    tpu.vector_store %arg4[%c0_76, %c68], %213 {strides = array<i32>} : memref<24x128xf32, #tpu.memory_space<vmem>>, vector<24x2xf32>,
    %215 = vector.extract_strided_slice %2 {offsets = [840, 0], sizes = [24, 2], strides = [1, 1]} : vector<1536x4xf32> to vector<24x2xf32>
    %216 = vector.extract_strided_slice %4 {offsets = [840, 2], sizes = [24, 2], strides = [1, 1]} : vector<1536x4xf32> to vector<24x2xf32>
    %217 = arith.addf %215, %216 : vector<24x2xf32>
    %cst_77 = arith.constant 0.0339911245 : f32
    %218 = vector.broadcast %cst_77 : f32 to vector<24x2xf32>
    %219 = arith.addf %217, %218 : vector<24x2xf32>
    %c0_78 = arith.constant 0 : index
    %c70 = arith.constant 70 : index
    %220 = vector.load %arg4[%c0_78, %c70] : memref<24x128xf32, #tpu.memory_space<vmem>>, vector<24x2xf32>
    tpu.vector_store %arg4[%c0_78, %c70], %219 {strides = array<i32>} : memref<24x128xf32, #tpu.memory_space<vmem>>, vector<24x2xf32>,
    %221 = vector.extract_strided_slice %2 {offsets = [864, 0], sizes = [24, 2], strides = [1, 1]} : vector<1536x4xf32> to vector<24x2xf32>
    %222 = vector.extract_strided_slice %4 {offsets = [864, 2], sizes = [24, 2], strides = [1, 1]} : vector<1536x4xf32> to vector<24x2xf32>
    %223 = arith.addf %221, %222 : vector<24x2xf32>
    %cst_79 = arith.constant 0.0339911245 : f32
    %224 = vector.broadcast %cst_79 : f32 to vector<24x2xf32>
    %225 = arith.addf %223, %224 : vector<24x2xf32>
    %c0_80 = arith.constant 0 : index
    %c72 = arith.constant 72 : index
    %226 = vector.load %arg4[%c0_80, %c72] : memref<24x128xf32, #tpu.memory_space<vmem>>, vector<24x2xf32>
    tpu.vector_store %arg4[%c0_80, %c72], %225 {strides = array<i32>} : memref<24x128xf32, #tpu.memory_space<vmem>>, vector<24x2xf32>,
    %227 = vector.extract_strided_slice %2 {offsets = [888, 0], sizes = [24, 2], strides = [1, 1]} : vector<1536x4xf32> to vector<24x2xf32>
    %228 = vector.extract_strided_slice %4 {offsets = [888, 2], sizes = [24, 2], strides = [1, 1]} : vector<1536x4xf32> to vector<24x2xf32>
    %229 = arith.addf %227, %228 : vector<24x2xf32>
    %cst_81 = arith.constant 0.0339911245 : f32
    %230 = vector.broadcast %cst_81 : f32 to vector<24x2xf32>
    %231 = arith.addf %229, %230 : vector<24x2xf32>
    %c0_82 = arith.constant 0 : index
    %c74 = arith.constant 74 : index
    %232 = vector.load %arg4[%c0_82, %c74] : memref<24x128xf32, #tpu.memory_space<vmem>>, vector<24x2xf32>
    tpu.vector_store %arg4[%c0_82, %c74], %231 {strides = array<i32>} : memref<24x128xf32, #tpu.memory_space<vmem>>, vector<24x2xf32>,
    %233 = vector.extract_strided_slice %2 {offsets = [912, 0], sizes = [24, 2], strides = [1, 1]} : vector<1536x4xf32> to vector<24x2xf32>
    %234 = vector.extract_strided_slice %4 {offsets = [912, 2], sizes = [24, 2], strides = [1, 1]} : vector<1536x4xf32> to vector<24x2xf32>
    %235 = arith.addf %233, %234 : vector<24x2xf32>
    %cst_83 = arith.constant 0.0339911245 : f32
    %236 = vector.broadcast %cst_83 : f32 to vector<24x2xf32>
    %237 = arith.addf %235, %236 : vector<24x2xf32>
    %c0_84 = arith.constant 0 : index
    %c76 = arith.constant 76 : index
    %238 = vector.load %arg4[%c0_84, %c76] : memref<24x128xf32, #tpu.memory_space<vmem>>, vector<24x2xf32>
    tpu.vector_store %arg4[%c0_84, %c76], %237 {strides = array<i32>} : memref<24x128xf32, #tpu.memory_space<vmem>>, vector<24x2xf32>,
    %239 = vector.extract_strided_slice %2 {offsets = [936, 0], sizes = [24, 2], strides = [1, 1]} : vector<1536x4xf32> to vector<24x2xf32>
    %240 = vector.extract_strided_slice %4 {offsets = [936, 2], sizes = [24, 2], strides = [1, 1]} : vector<1536x4xf32> to vector<24x2xf32>
    %241 = arith.addf %239, %240 : vector<24x2xf32>
    %cst_85 = arith.constant 0.0339911245 : f32
    %242 = vector.broadcast %cst_85 : f32 to vector<24x2xf32>
    %243 = arith.addf %241, %242 : vector<24x2xf32>
    %c0_86 = arith.constant 0 : index
    %c78 = arith.constant 78 : index
    %244 = vector.load %arg4[%c0_86, %c78] : memref<24x128xf32, #tpu.memory_space<vmem>>, vector<24x2xf32>
    tpu.vector_store %arg4[%c0_86, %c78], %243 {strides = array<i32>} : memref<24x128xf32, #tpu.memory_space<vmem>>, vector<24x2xf32>,
    %245 = vector.extract_strided_slice %2 {offsets = [960, 0], sizes = [24, 2], strides = [1, 1]} : vector<1536x4xf32> to vector<24x2xf32>
    %246 = vector.extract_strided_slice %4 {offsets = [960, 2], sizes = [24, 2], strides = [1, 1]} : vector<1536x4xf32> to vector<24x2xf32>
    %247 = arith.addf %245, %246 : vector<24x2xf32>
    %cst_87 = arith.constant 0.0339911245 : f32
    %248 = vector.broadcast %cst_87 : f32 to vector<24x2xf32>
    %249 = arith.addf %247, %248 : vector<24x2xf32>
    %c0_88 = arith.constant 0 : index
    %c80 = arith.constant 80 : index
    %250 = vector.load %arg4[%c0_88, %c80] : memref<24x128xf32, #tpu.memory_space<vmem>>, vector<24x2xf32>
    tpu.vector_store %arg4[%c0_88, %c80], %249 {strides = array<i32>} : memref<24x128xf32, #tpu.memory_space<vmem>>, vector<24x2xf32>,
    %251 = vector.extract_strided_slice %2 {offsets = [984, 0], sizes = [24, 2], strides = [1, 1]} : vector<1536x4xf32> to vector<24x2xf32>
    %252 = vector.extract_strided_slice %4 {offsets = [984, 2], sizes = [24, 2], strides = [1, 1]} : vector<1536x4xf32> to vector<24x2xf32>
    %253 = arith.addf %251, %252 : vector<24x2xf32>
    %cst_89 = arith.constant 0.0339911245 : f32
    %254 = vector.broadcast %cst_89 : f32 to vector<24x2xf32>
    %255 = arith.addf %253, %254 : vector<24x2xf32>
    %c0_90 = arith.constant 0 : index
    %c82 = arith.constant 82 : index
    %256 = vector.load %arg4[%c0_90, %c82] : memref<24x128xf32, #tpu.memory_space<vmem>>, vector<24x2xf32>
    tpu.vector_store %arg4[%c0_90, %c82], %255 {strides = array<i32>} : memref<24x128xf32, #tpu.memory_space<vmem>>, vector<24x2xf32>,
    %257 = vector.extract_strided_slice %2 {offsets = [1008, 0], sizes = [24, 2], strides = [1, 1]} : vector<1536x4xf32> to vector<24x2xf32>
    %258 = vector.extract_strided_slice %4 {offsets = [1008, 2], sizes = [24, 2], strides = [1, 1]} : vector<1536x4xf32> to vector<24x2xf32>
    %259 = arith.addf %257, %258 : vector<24x2xf32>
    %cst_91 = arith.constant 0.0339911245 : f32
    %260 = vector.broadcast %cst_91 : f32 to vector<24x2xf32>
    %261 = arith.addf %259, %260 : vector<24x2xf32>
    %c0_92 = arith.constant 0 : index
    %c84 = arith.constant 84 : index
    %262 = vector.load %arg4[%c0_92, %c84] : memref<24x128xf32, #tpu.memory_space<vmem>>, vector<24x2xf32>
    tpu.vector_store %arg4[%c0_92, %c84], %261 {strides = array<i32>} : memref<24x128xf32, #tpu.memory_space<vmem>>, vector<24x2xf32>,
    %263 = vector.extract_strided_slice %2 {offsets = [1032, 0], sizes = [24, 2], strides = [1, 1]} : vector<1536x4xf32> to vector<24x2xf32>
    %264 = vector.extract_strided_slice %4 {offsets = [1032, 2], sizes = [24, 2], strides = [1, 1]} : vector<1536x4xf32> to vector<24x2xf32>
    %265 = arith.addf %263, %264 : vector<24x2xf32>
    %cst_93 = arith.constant 0.0339911245 : f32
    %266 = vector.broadcast %cst_93 : f32 to vector<24x2xf32>
    %267 = arith.addf %265, %266 : vector<24x2xf32>
    %c0_94 = arith.constant 0 : index
    %c86 = arith.constant 86 : index
    %268 = vector.load %arg4[%c0_94, %c86] : memref<24x128xf32, #tpu.memory_space<vmem>>, vector<24x2xf32>
    tpu.vector_store %arg4[%c0_94, %c86], %267 {strides = array<i32>} : memref<24x128xf32, #tpu.memory_space<vmem>>, vector<24x2xf32>,
    %269 = vector.extract_strided_slice %2 {offsets = [1056, 0], sizes = [24, 2], strides = [1, 1]} : vector<1536x4xf32> to vector<24x2xf32>
    %270 = vector.extract_strided_slice %4 {offsets = [1056, 2], sizes = [24, 2], strides = [1, 1]} : vector<1536x4xf32> to vector<24x2xf32>
    %271 = arith.addf %269, %270 : vector<24x2xf32>
    %cst_95 = arith.constant 0.0339911245 : f32
    %272 = vector.broadcast %cst_95 : f32 to vector<24x2xf32>
    %273 = arith.addf %271, %272 : vector<24x2xf32>
    %c0_96 = arith.constant 0 : index
    %c88 = arith.constant 88 : index
    %274 = vector.load %arg4[%c0_96, %c88] : memref<24x128xf32, #tpu.memory_space<vmem>>, vector<24x2xf32>
    tpu.vector_store %arg4[%c0_96, %c88], %273 {strides = array<i32>} : memref<24x128xf32, #tpu.memory_space<vmem>>, vector<24x2xf32>,
    %275 = vector.extract_strided_slice %2 {offsets = [1080, 0], sizes = [24, 2], strides = [1, 1]} : vector<1536x4xf32> to vector<24x2xf32>
    %276 = vector.extract_strided_slice %4 {offsets = [1080, 2], sizes = [24, 2], strides = [1, 1]} : vector<1536x4xf32> to vector<24x2xf32>
    %277 = arith.addf %275, %276 : vector<24x2xf32>
    %cst_97 = arith.constant 0.0339911245 : f32
    %278 = vector.broadcast %cst_97 : f32 to vector<24x2xf32>
    %279 = arith.addf %277, %278 : vector<24x2xf32>
    %c0_98 = arith.constant 0 : index
    %c90 = arith.constant 90 : index
    %280 = vector.load %arg4[%c0_98, %c90] : memref<24x128xf32, #tpu.memory_space<vmem>>, vector<24x2xf32>
    tpu.vector_store %arg4[%c0_98, %c90], %279 {strides = array<i32>} : memref<24x128xf32, #tpu.memory_space<vmem>>, vector<24x2xf32>,
    %281 = vector.extract_strided_slice %2 {offsets = [1104, 0], sizes = [24, 2], strides = [1, 1]} : vector<1536x4xf32> to vector<24x2xf32>
    %282 = vector.extract_strided_slice %4 {offsets = [1104, 2], sizes = [24, 2], strides = [1, 1]} : vector<1536x4xf32> to vector<24x2xf32>
    %283 = arith.addf %281, %282 : vector<24x2xf32>
    %cst_99 = arith.constant 0.0339911245 : f32
    %284 = vector.broadcast %cst_99 : f32 to vector<24x2xf32>
    %285 = arith.addf %283, %284 : vector<24x2xf32>
    %c0_100 = arith.constant 0 : index
    %c92 = arith.constant 92 : index
    %286 = vector.load %arg4[%c0_100, %c92] : memref<24x128xf32, #tpu.memory_space<vmem>>, vector<24x2xf32>
    tpu.vector_store %arg4[%c0_100, %c92], %285 {strides = array<i32>} : memref<24x128xf32, #tpu.memory_space<vmem>>, vector<24x2xf32>,
    %287 = vector.extract_strided_slice %2 {offsets = [1128, 0], sizes = [24, 2], strides = [1, 1]} : vector<1536x4xf32> to vector<24x2xf32>
    %288 = vector.extract_strided_slice %4 {offsets = [1128, 2], sizes = [24, 2], strides = [1, 1]} : vector<1536x4xf32> to vector<24x2xf32>
    %289 = arith.addf %287, %288 : vector<24x2xf32>
    %cst_101 = arith.constant 0.0339911245 : f32
    %290 = vector.broadcast %cst_101 : f32 to vector<24x2xf32>
    %291 = arith.addf %289, %290 : vector<24x2xf32>
    %c0_102 = arith.constant 0 : index
    %c94 = arith.constant 94 : index
    %292 = vector.load %arg4[%c0_102, %c94] : memref<24x128xf32, #tpu.memory_space<vmem>>, vector<24x2xf32>
    tpu.vector_store %arg4[%c0_102, %c94], %291 {strides = array<i32>} : memref<24x128xf32, #tpu.memory_space<vmem>>, vector<24x2xf32>,
    %293 = vector.extract_strided_slice %2 {offsets = [1152, 0], sizes = [24, 2], strides = [1, 1]} : vector<1536x4xf32> to vector<24x2xf32>
    %294 = vector.extract_strided_slice %4 {offsets = [1152, 2], sizes = [24, 2], strides = [1, 1]} : vector<1536x4xf32> to vector<24x2xf32>
    %295 = arith.addf %293, %294 : vector<24x2xf32>
    %cst_103 = arith.constant 0.0339911245 : f32
    %296 = vector.broadcast %cst_103 : f32 to vector<24x2xf32>
    %297 = arith.addf %295, %296 : vector<24x2xf32>
    %c0_104 = arith.constant 0 : index
    %c96 = arith.constant 96 : index
    %298 = vector.load %arg4[%c0_104, %c96] : memref<24x128xf32, #tpu.memory_space<vmem>>, vector<24x2xf32>
    tpu.vector_store %arg4[%c0_104, %c96], %297 {strides = array<i32>} : memref<24x128xf32, #tpu.memory_space<vmem>>, vector<24x2xf32>,
    %299 = vector.extract_strided_slice %2 {offsets = [1176, 0], sizes = [24, 2], strides = [1, 1]} : vector<1536x4xf32> to vector<24x2xf32>
    %300 = vector.extract_strided_slice %4 {offsets = [1176, 2], sizes = [24, 2], strides = [1, 1]} : vector<1536x4xf32> to vector<24x2xf32>
    %301 = arith.addf %299, %300 : vector<24x2xf32>
    %cst_105 = arith.constant 0.0339911245 : f32
    %302 = vector.broadcast %cst_105 : f32 to vector<24x2xf32>
    %303 = arith.addf %301, %302 : vector<24x2xf32>
    %c0_106 = arith.constant 0 : index
    %c98 = arith.constant 98 : index
    %304 = vector.load %arg4[%c0_106, %c98] : memref<24x128xf32, #tpu.memory_space<vmem>>, vector<24x2xf32>
    tpu.vector_store %arg4[%c0_106, %c98], %303 {strides = array<i32>} : memref<24x128xf32, #tpu.memory_space<vmem>>, vector<24x2xf32>,
    %305 = vector.extract_strided_slice %2 {offsets = [1200, 0], sizes = [24, 2], strides = [1, 1]} : vector<1536x4xf32> to vector<24x2xf32>
    %306 = vector.extract_strided_slice %4 {offsets = [1200, 2], sizes = [24, 2], strides = [1, 1]} : vector<1536x4xf32> to vector<24x2xf32>
    %307 = arith.addf %305, %306 : vector<24x2xf32>
    %cst_107 = arith.constant 0.0339911245 : f32
    %308 = vector.broadcast %cst_107 : f32 to vector<24x2xf32>
    %309 = arith.addf %307, %308 : vector<24x2xf32>
    %c0_108 = arith.constant 0 : index
    %c100 = arith.constant 100 : index
    %310 = vector.load %arg4[%c0_108, %c100] : memref<24x128xf32, #tpu.memory_space<vmem>>, vector<24x2xf32>
    tpu.vector_store %arg4[%c0_108, %c100], %309 {strides = array<i32>} : memref<24x128xf32, #tpu.memory_space<vmem>>, vector<24x2xf32>,
    %311 = vector.extract_strided_slice %2 {offsets = [1224, 0], sizes = [24, 2], strides = [1, 1]} : vector<1536x4xf32> to vector<24x2xf32>
    %312 = vector.extract_strided_slice %4 {offsets = [1224, 2], sizes = [24, 2], strides = [1, 1]} : vector<1536x4xf32> to vector<24x2xf32>
    %313 = arith.addf %311, %312 : vector<24x2xf32>
    %cst_109 = arith.constant 0.0339911245 : f32
    %314 = vector.broadcast %cst_109 : f32 to vector<24x2xf32>
    %315 = arith.addf %313, %314 : vector<24x2xf32>
    %c0_110 = arith.constant 0 : index
    %c102 = arith.constant 102 : index
    %316 = vector.load %arg4[%c0_110, %c102] : memref<24x128xf32, #tpu.memory_space<vmem>>, vector<24x2xf32>
    tpu.vector_store %arg4[%c0_110, %c102], %315 {strides = array<i32>} : memref<24x128xf32, #tpu.memory_space<vmem>>, vector<24x2xf32>,
    %317 = vector.extract_strided_slice %2 {offsets = [1248, 0], sizes = [24, 2], strides = [1, 1]} : vector<1536x4xf32> to vector<24x2xf32>
    %318 = vector.extract_strided_slice %4 {offsets = [1248, 2], sizes = [24, 2], strides = [1, 1]} : vector<1536x4xf32> to vector<24x2xf32>
    %319 = arith.addf %317, %318 : vector<24x2xf32>
    %cst_111 = arith.constant 0.0339911245 : f32
    %320 = vector.broadcast %cst_111 : f32 to vector<24x2xf32>
    %321 = arith.addf %319, %320 : vector<24x2xf32>
    %c0_112 = arith.constant 0 : index
    %c104 = arith.constant 104 : index
    %322 = vector.load %arg4[%c0_112, %c104] : memref<24x128xf32, #tpu.memory_space<vmem>>, vector<24x2xf32>
    tpu.vector_store %arg4[%c0_112, %c104], %321 {strides = array<i32>} : memref<24x128xf32, #tpu.memory_space<vmem>>, vector<24x2xf32>,
    %323 = vector.extract_strided_slice %2 {offsets = [1272, 0], sizes = [24, 2], strides = [1, 1]} : vector<1536x4xf32> to vector<24x2xf32>
    %324 = vector.extract_strided_slice %4 {offsets = [1272, 2], sizes = [24, 2], strides = [1, 1]} : vector<1536x4xf32> to vector<24x2xf32>
    %325 = arith.addf %323, %324 : vector<24x2xf32>
    %cst_113 = arith.constant 0.0339911245 : f32
    %326 = vector.broadcast %cst_113 : f32 to vector<24x2xf32>
    %327 = arith.addf %325, %326 : vector<24x2xf32>
    %c0_114 = arith.constant 0 : index
    %c106 = arith.constant 106 : index
    %328 = vector.load %arg4[%c0_114, %c106] : memref<24x128xf32, #tpu.memory_space<vmem>>, vector<24x2xf32>
    tpu.vector_store %arg4[%c0_114, %c106], %327 {strides = array<i32>} : memref<24x128xf32, #tpu.memory_space<vmem>>, vector<24x2xf32>,
    %329 = vector.extract_strided_slice %2 {offsets = [1296, 0], sizes = [24, 2], strides = [1, 1]} : vector<1536x4xf32> to vector<24x2xf32>
    %330 = vector.extract_strided_slice %4 {offsets = [1296, 2], sizes = [24, 2], strides = [1, 1]} : vector<1536x4xf32> to vector<24x2xf32>
    %331 = arith.addf %329, %330 : vector<24x2xf32>
    %cst_115 = arith.constant 0.0339911245 : f32
    %332 = vector.broadcast %cst_115 : f32 to vector<24x2xf32>
    %333 = arith.addf %331, %332 : vector<24x2xf32>
    %c0_116 = arith.constant 0 : index
    %c108 = arith.constant 108 : index
    %334 = vector.load %arg4[%c0_116, %c108] : memref<24x128xf32, #tpu.memory_space<vmem>>, vector<24x2xf32>
    tpu.vector_store %arg4[%c0_116, %c108], %333 {strides = array<i32>} : memref<24x128xf32, #tpu.memory_space<vmem>>, vector<24x2xf32>,
    %335 = vector.extract_strided_slice %2 {offsets = [1320, 0], sizes = [24, 2], strides = [1, 1]} : vector<1536x4xf32> to vector<24x2xf32>
    %336 = vector.extract_strided_slice %4 {offsets = [1320, 2], sizes = [24, 2], strides = [1, 1]} : vector<1536x4xf32> to vector<24x2xf32>
    %337 = arith.addf %335, %336 : vector<24x2xf32>
    %cst_117 = arith.constant 0.0339911245 : f32
    %338 = vector.broadcast %cst_117 : f32 to vector<24x2xf32>
    %339 = arith.addf %337, %338 : vector<24x2xf32>
    %c0_118 = arith.constant 0 : index
    %c110 = arith.constant 110 : index
    %340 = vector.load %arg4[%c0_118, %c110] : memref<24x128xf32, #tpu.memory_space<vmem>>, vector<24x2xf32>
    tpu.vector_store %arg4[%c0_118, %c110], %339 {strides = array<i32>} : memref<24x128xf32, #tpu.memory_space<vmem>>, vector<24x2xf32>,
    %341 = vector.extract_strided_slice %2 {offsets = [1344, 0], sizes = [24, 2], strides = [1, 1]} : vector<1536x4xf32> to vector<24x2xf32>
    %342 = vector.extract_strided_slice %4 {offsets = [1344, 2], sizes = [24, 2], strides = [1, 1]} : vector<1536x4xf32> to vector<24x2xf32>
    %343 = arith.addf %341, %342 : vector<24x2xf32>
    %cst_119 = arith.constant 0.0339911245 : f32
    %344 = vector.broadcast %cst_119 : f32 to vector<24x2xf32>
    %345 = arith.addf %343, %344 : vector<24x2xf32>
    %c0_120 = arith.constant 0 : index
    %c112 = arith.constant 112 : index
    %346 = vector.load %arg4[%c0_120, %c112] : memref<24x128xf32, #tpu.memory_space<vmem>>, vector<24x2xf32>
    tpu.vector_store %arg4[%c0_120, %c112], %345 {strides = array<i32>} : memref<24x128xf32, #tpu.memory_space<vmem>>, vector<24x2xf32>,
    %347 = vector.extract_strided_slice %2 {offsets = [1368, 0], sizes = [24, 2], strides = [1, 1]} : vector<1536x4xf32> to vector<24x2xf32>
    %348 = vector.extract_strided_slice %4 {offsets = [1368, 2], sizes = [24, 2], strides = [1, 1]} : vector<1536x4xf32> to vector<24x2xf32>
    %349 = arith.addf %347, %348 : vector<24x2xf32>
    %cst_121 = arith.constant 0.0339911245 : f32
    %350 = vector.broadcast %cst_121 : f32 to vector<24x2xf32>
    %351 = arith.addf %349, %350 : vector<24x2xf32>
    %c0_122 = arith.constant 0 : index
    %c114 = arith.constant 114 : index
    %352 = vector.load %arg4[%c0_122, %c114] : memref<24x128xf32, #tpu.memory_space<vmem>>, vector<24x2xf32>
    tpu.vector_store %arg4[%c0_122, %c114], %351 {strides = array<i32>} : memref<24x128xf32, #tpu.memory_space<vmem>>, vector<24x2xf32>,
    %353 = vector.extract_strided_slice %2 {offsets = [1392, 0], sizes = [24, 2], strides = [1, 1]} : vector<1536x4xf32> to vector<24x2xf32>
    %354 = vector.extract_strided_slice %4 {offsets = [1392, 2], sizes = [24, 2], strides = [1, 1]} : vector<1536x4xf32> to vector<24x2xf32>
    %355 = arith.addf %353, %354 : vector<24x2xf32>
    %cst_123 = arith.constant 0.0339911245 : f32
    %356 = vector.broadcast %cst_123 : f32 to vector<24x2xf32>
    %357 = arith.addf %355, %356 : vector<24x2xf32>
    %c0_124 = arith.constant 0 : index
    %c116 = arith.constant 116 : index
    %358 = vector.load %arg4[%c0_124, %c116] : memref<24x128xf32, #tpu.memory_space<vmem>>, vector<24x2xf32>
    tpu.vector_store %arg4[%c0_124, %c116], %357 {strides = array<i32>} : memref<24x128xf32, #tpu.memory_space<vmem>>, vector<24x2xf32>,
    %359 = vector.extract_strided_slice %2 {offsets = [1416, 0], sizes = [24, 2], strides = [1, 1]} : vector<1536x4xf32> to vector<24x2xf32>
    %360 = vector.extract_strided_slice %4 {offsets = [1416, 2], sizes = [24, 2], strides = [1, 1]} : vector<1536x4xf32> to vector<24x2xf32>
    %361 = arith.addf %359, %360 : vector<24x2xf32>
    %cst_125 = arith.constant 0.0339911245 : f32
    %362 = vector.broadcast %cst_125 : f32 to vector<24x2xf32>
    %363 = arith.addf %361, %362 : vector<24x2xf32>
    %c0_126 = arith.constant 0 : index
    %c118 = arith.constant 118 : index
    %364 = vector.load %arg4[%c0_126, %c118] : memref<24x128xf32, #tpu.memory_space<vmem>>, vector<24x2xf32>
    tpu.vector_store %arg4[%c0_126, %c118], %363 {strides = array<i32>} : memref<24x128xf32, #tpu.memory_space<vmem>>, vector<24x2xf32>,
    %365 = vector.extract_strided_slice %2 {offsets = [1440, 0], sizes = [24, 2], strides = [1, 1]} : vector<1536x4xf32> to vector<24x2xf32>
    %366 = vector.extract_strided_slice %4 {offsets = [1440, 2], sizes = [24, 2], strides = [1, 1]} : vector<1536x4xf32> to vector<24x2xf32>
    %367 = arith.addf %365, %366 : vector<24x2xf32>
    %cst_127 = arith.constant 0.0339911245 : f32
    %368 = vector.broadcast %cst_127 : f32 to vector<24x2xf32>
    %369 = arith.addf %367, %368 : vector<24x2xf32>
    %c0_128 = arith.constant 0 : index
    %c120 = arith.constant 120 : index
    %370 = vector.load %arg4[%c0_128, %c120] : memref<24x128xf32, #tpu.memory_space<vmem>>, vector<24x2xf32>
    tpu.vector_store %arg4[%c0_128, %c120], %369 {strides = array<i32>} : memref<24x128xf32, #tpu.memory_space<vmem>>, vector<24x2xf32>,
    %371 = vector.extract_strided_slice %2 {offsets = [1464, 0], sizes = [24, 2], strides = [1, 1]} : vector<1536x4xf32> to vector<24x2xf32>
    %372 = vector.extract_strided_slice %4 {offsets = [1464, 2], sizes = [24, 2], strides = [1, 1]} : vector<1536x4xf32> to vector<24x2xf32>
    %373 = arith.addf %371, %372 : vector<24x2xf32>
    %cst_129 = arith.constant 0.0339911245 : f32
    %374 = vector.broadcast %cst_129 : f32 to vector<24x2xf32>
    %375 = arith.addf %373, %374 : vector<24x2xf32>
    %c0_130 = arith.constant 0 : index
    %c122 = arith.constant 122 : index
    %376 = vector.load %arg4[%c0_130, %c122] : memref<24x128xf32, #tpu.memory_space<vmem>>, vector<24x2xf32>
    tpu.vector_store %arg4[%c0_130, %c122], %375 {strides = array<i32>} : memref<24x128xf32, #tpu.memory_space<vmem>>, vector<24x2xf32>,
    %377 = vector.extract_strided_slice %2 {offsets = [1488, 0], sizes = [24, 2], strides = [1, 1]} : vector<1536x4xf32> to vector<24x2xf32>
    %378 = vector.extract_strided_slice %4 {offsets = [1488, 2], sizes = [24, 2], strides = [1, 1]} : vector<1536x4xf32> to vector<24x2xf32>
    %379 = arith.addf %377, %378 : vector<24x2xf32>
    %cst_131 = arith.constant 0.0339911245 : f32
    %380 = vector.broadcast %cst_131 : f32 to vector<24x2xf32>
    %381 = arith.addf %379, %380 : vector<24x2xf32>
    %c0_132 = arith.constant 0 : index
    %c124 = arith.constant 124 : index
    %382 = vector.load %arg4[%c0_132, %c124] : memref<24x128xf32, #tpu.memory_space<vmem>>, vector<24x2xf32>
    tpu.vector_store %arg4[%c0_132, %c124], %381 {strides = array<i32>} : memref<24x128xf32, #tpu.memory_space<vmem>>, vector<24x2xf32>,
    %383 = vector.extract_strided_slice %2 {offsets = [1512, 0], sizes = [24, 2], strides = [1, 1]} : vector<1536x4xf32> to vector<24x2xf32>
    %384 = vector.extract_strided_slice %4 {offsets = [1512, 2], sizes = [24, 2], strides = [1, 1]} : vector<1536x4xf32> to vector<24x2xf32>
    %385 = arith.addf %383, %384 : vector<24x2xf32>
    %cst_133 = arith.constant 0.0339911245 : f32
    %386 = vector.broadcast %cst_133 : f32 to vector<24x2xf32>
    %387 = arith.addf %385, %386 : vector<24x2xf32>
    %c0_134 = arith.constant 0 : index
    %c126 = arith.constant 126 : index
    %388 = vector.load %arg4[%c0_134, %c126] : memref<24x128xf32, #tpu.memory_space<vmem>>, vector<24x2xf32>
    tpu.vector_store %arg4[%c0_134, %c126], %387 {strides = array<i32>} : memref<24x128xf32, #tpu.memory_space<vmem>>, vector<24x2xf32>,
    return
  }
  func.func @transform_0(%arg0: i32) -> (i32, i32) {
    %c0_i32 = arith.constant 0 : i32
    %c0_i32_0 = arith.constant 0 : i32
    return %arg0, %c0_i32 : i32, i32
  }
  func.func @transform_1(%arg0: i32) -> (i32, i32) {
    %c0_i32 = arith.constant 0 : i32
    %c0_i32_0 = arith.constant 0 : i32
    return %arg0, %c0_i32 : i32, i32
  }
  func.func @transform_2(%arg0: i32) -> (i32, i32) {
    %c0_i32 = arith.constant 0 : i32
    %c0_i32_0 = arith.constant 0 : i32
    %c0_i32_1 = arith.constant 0 : i32
    return %c0_i32, %c0_i32_0 : i32, i32
  }
  func.func @transform_3(%arg0: i32) -> (i32, i32) {
    %c0_i32 = arith.constant 0 : i32
    %c0_i32_0 = arith.constant 0 : i32
    return %c0_i32, %arg0 : i32, i32
  }
}

</mosaic_0001>

<bundles_post_ra>
// kernel: _convtasnet_forward.1
= control target key start
LH: loop header
LB: loop body
LE: loop exit
PB: predicated region body
PF: predicated region fallthrough
CT: control target
= control target key end

     0   :  { %vm784_vm0 = vcmask 1044480   ;;  %vm207_vm1 = vcmask 39936   ;;  %s7189_s16 = smov 126   ;;  %vm3624_vm2 = vcmask 15360   ;;  %s7190_s12 = smov 2   ;;  %vm3658_vm3 = vcmask 31760   ;;  %s10974_s2 = inlined_call_operand.vmem [shape: f32[5,4], index: 2, kind: input, shape index: {}]   ;;  %s10975_s1 = inlined_call_operand.vmem [shape: f32[1536,5], index: 1, kind: input, shape index: {}]   ;;  %s10976_s0 = inlined_call_operand.vmem [shape: f32[1536,5], index: 0, kind: input, shape index: {}]   ;;  %s10977_s3 = inlined_call_operand.vmem [shape: f32[24,128], index: 3, kind: output, shape index: {}]  }
   0x1   :  { %v14_v0 = vld [vmem:[%s10974_s2] sm:$0x1f]  ;;  %v1814_v2 = vld [vmem:[%s10975_s1 + $0x8] sm:$0xff]  ;;  %v1815_v3 = vld [vmem:[%s10975_s1 + $0x10] sm:$0xff]  ;;  %s7191_s25 = smov 4   ;;  %s7192_s28 = smov 6  }
   0x2   :  { %v1813_v1 = vld [vmem:[%s10975_s1] sm:$0xff]  ;;  %6836 = vmatprep.subr.msk.mxu1 %vm784_vm0, %v14_v0  ;;  %6546 = vmatprep.subr.msk.mxu0 %vm784_vm0, %v14_v0  ;;  %v1816_v4 = vld [vmem:[%s10975_s1 + $0x18] sm:$0xff]  ;;  %v1818_v6 = vld [vmem:[%s10975_s1 + $0x28] sm:$0xff]  ;;  %s7193_s15 = smov 8   ;;  %s7194_s17 = smov 10   ;;  %vm3692_vm4 = vcmask 48160  }
   0x3   :  { %6838 = vmatprep.mubr.msk.f32.mxu1 %vm207_vm1, %v1813_v1  ;;  %6837 = vmatpush3.msk.msra.mxu1 %vm784_vm0, %v14_v0  ;;  %v1817_v5 = vld [vmem:[%s10975_s1 + $0x20] sm:$0xff]  ;;  %v1819_v7 = vld [vmem:[%s10975_s1 + $0x30] sm:$0xff]  ;;  %v1820_v8 = vld [vmem:[%s10975_s1 + $0x38] sm:$0xff]  ;;  %s7195_s10 = smov 12   ;;  %s7196_s11 = smov 14   ;;  %vm3726_vm5 = vcmask 64560  }
   0x4   :  { %6839 = vmatmul.mubr.msk.f32.vlgmr.msra.gmra.mxu1 %vm207_vm1, %v1814_v2  ;;  %6547 = vmatpush3.msk.msra.mxu0 %vm784_vm0, %v14_v0  ;;  %v1821_v9 = vld [vmem:[%s10975_s1 + $0x40] sm:$0xff]  ;;  %v1822_v10 = vld [vmem:[%s10975_s1 + $0x48] sm:$0xff]  ;;  %v1823_v11 = vld [vmem:[%s10975_s1 + $0x50] sm:$0xff]  ;;  %s7197_s29 = smov 16   ;;  %s7198_s4 = smov 18   ;;  %vm3760_vm6 = vcmask 80960  }
   0x5   :  { %6841 = vmatprep.mubr.msk.f32.mxu1 %vm207_vm1, %v1815_v3  ;;  %v15_v12 = vld [vmem:[%s10976_s0] sm:$0xff]  ;;  %v1824_v13 = vld [vmem:[%s10975_s1 + $0x58] sm:$0xff]  ;;  %v16_v14 = vld [vmem:[%s10976_s0 + $0x8] sm:$0xff]  ;;  %s7200_s24 = smov 22   ;;  %s7201_s13 = smov 24   ;;  %vm3794_vm7 = vcmask 97360  }
   0x6   :  { %6548 = vmatprep.mubr.msk.f32.mxu0 %vm207_vm1, %v15_v12  ;;  %v1825_v15 = vld [vmem:[%s10975_s1 + $0x60] sm:$0xff]  ;;  %v17_v16 = vld [vmem:[%s10976_s0 + $0x10] sm:$0xff]  ;;  %v18_v17 = vld [vmem:[%s10976_s0 + $0x18] sm:$0xff]  ;;  %s7202_s19 = smov 26   ;;  %s7203_s30 = smov 28   ;;  %vm3828_vm8 = vcmask 113760  }
   0x7   :  { %6549 = vmatmul.mubr.msk.f32.vlgmr.msra.gmra.mxu0 %vm207_vm1, %v16_v14  ;;  %v19_v18 = vld [vmem:[%s10976_s0 + $0x20] sm:$0xff]  ;;  %v1826_v19 = vld [vmem:[%s10975_s1 + $0x68] sm:$0xff]  ;;  %v1827_v20 = vld [vmem:[%s10975_s1 + $0x70] sm:$0xff]  ;;  %s7204_s18 = smov 30   ;;  %vm3862_vm9 = vcmask 130160   ;;  %s7206_s6 = smov 34  }
   0x8   :  { %6842 = vmatmul.mubr.msk.f32.gmra.mxu1 %vm207_vm1, %v1816_v4  ;;  %6551 = vmatprep.mubr.msk.f32.mxu0 %vm207_vm1, %v17_v16  ;;  %v20_v21 = vld [vmem:[%s10976_s0 + $0x28] sm:$0xff]  ;;  %v21_v22 = vld [vmem:[%s10976_s0 + $0x30] sm:$0xff]  ;;  %v1828_v23 = vld [vmem:[%s10975_s1 + $0x78] sm:$0xff]  ;;  %vm3896_vm10 = vcmask 146560   ;;  %vm3930_vm11 = vcmask 162960   ;;  %vm3964_vm12 = vcmask 179360  }
   0x9   :  { %6844 = vmatprep.mubr.msk.f32.mxu1 %vm207_vm1, %v1817_v5  ;;  %v1829_v24 = vld [vmem:[%s10975_s1 + $0x80] sm:$0xff]  ;;  %v22_v25 = vld [vmem:[%s10976_s0 + $0x38] sm:$0xff]  ;;  %v1830_v27 = vld [vmem:[%s10975_s1 + $0x88] sm:$0xff]  ;;  %vm3998_vm13 = vcmask 195760   ;;  %s7209_s2 = smov 40   ;;  %vm4032_vm14 = vcmask 212160  }
   0xa   :  { %v23_v26 = vld [vmem:[%s10976_s0 + $0x40] sm:$0xff]  ;;  %v1831_v28 = vld [vmem:[%s10975_s1 + $0x90] sm:$0xff]  ;;  %v24_v29 = vld [vmem:[%s10976_s0 + $0x48] sm:$0xff]  ;;  %vm4066_vm15 = vcmask 228560   ;;  %vm4100_vm0 = vcmask 244960   ;;  %s7215_s21 = smov 52  }
   0xb   :  { %6552 = vmatmul.mubr.msk.f32.gmra.mxu0 %vm207_vm1, %v18_v17  ;;  %v25_v30 = vld [vmem:[%s10976_s0 + $0x50] sm:$0xff]  ;;  %v1832_v31 = vld [vmem:[%s10975_s1 + $0x98] sm:$0xff]  ;;  %v1833_v32 = vld [vmem:[%s10975_s1 + $0xa0] sm:$0xff]  ;;  %s7217_s27 = smov 56   ;;  %s7218_s7 = smov 58  }
   0xc   :  { %6845 = vmatmul.mubr.msk.f32.gmra.mxu1 %vm207_vm1, %v1818_v6  ;;  %6554 = vmatprep.mubr.msk.f32.mxu0 %vm207_vm1, %v19_v18  ;;  %v26_v33 = vld [vmem:[%s10976_s0 + $0x58] sm:$0xff]  ;;  %v27_v34 = vld [vmem:[%s10976_s0 + $0x60] sm:$0xff]  ;;  %v1834_v35 = vld [vmem:[%s10975_s1 + $0xa8] sm:$0xff]  ;;  %s7222_s23 = smov 66   ;;  %s7225_s14 = smov 72  }
   0xd   :  { %6847 = vmatprep.mubr.msk.f32.mxu1 %vm207_vm1, %v1819_v7  ;;  %v1835_v36 = vld [vmem:[%s10975_s1 + $0xb0] sm:$0xff]  ;;  %v28_v37 = vld [vmem:[%s10976_s0 + $0x68] sm:$0xff]  ;;  %v1836_v39 = vld [vmem:[%s10975_s1 + $0xb8] sm:$0xff]  ;;  %s7229_s22 = smov 80   ;;  %s7231_s8 = smov 84  }
   0xe   :  { %v29_v38 = vld [vmem:[%s10976_s0 + $0x70] sm:$0xff]  ;;  %v1837_v40 = vld [vmem:[%s10975_s1 + $0xc0] sm:$0xff]  ;;  %v30_v41 = vld [vmem:[%s10976_s0 + $0x78] sm:$0xff]  ;;  %s7241_s5 = smov 104   ;;  %s7242_s26 = smov 106  }
   0xf   :  { %6555 = vmatmul.mubr.msk.f32.gmra.mxu0 %vm207_vm1, %v20_v21  ;;  %v31_v42 = vld [vmem:[%s10976_s0 + $0x80] sm:$0xff]  ;;  %v1838_v43 = vld [vmem:[%s10975_s1 + $0xc8] sm:$0xff]  ;;  %v1839_v44 = vld [vmem:[%s10975_s1 + $0xd0] sm:$0xff]  ;;  %s7248_s20 = smov 118  }
  0x10   :  { %6848 = vmatmul.mubr.msk.f32.gmra.mxu1 %vm207_vm1, %v1820_v8  ;;  %6557 = vmatprep.mubr.msk.f32.mxu0 %vm207_vm1, %v21_v22  ;;  %v32_v45 = vld [vmem:[%s10976_s0 + $0x88] sm:$0xff]  ;;  %v33_v46 = vld [vmem:[%s10976_s0 + $0x90] sm:$0xff]  ;;  %v1840_v47 = vld [vmem:[%s10975_s1 + $0xd8] sm:$0xff] }
  0x11   :  { %6850 = vmatprep.mubr.msk.f32.mxu1 %vm207_vm1, %v1821_v9  ;;  %v1841_v48 = vld [vmem:[%s10975_s1 + $0xe0] sm:$0xff]  ;;  %v34_v49 = vld [vmem:[%s10976_s0 + $0x98] sm:$0xff]  ;;  %v1842_v51 = vld [vmem:[%s10975_s1 + $0xe8] sm:$0xff] }
  0x12   :  { %v35_v50 = vld [vmem:[%s10976_s0 + $0xa0] sm:$0xff]  ;;  %v1843_v52 = vld [vmem:[%s10975_s1 + $0xf0] sm:$0xff]  ;;  %v36_v53 = vld [vmem:[%s10976_s0 + $0xa8] sm:$0xff] }
  0x13   :  { %6558 = vmatmul.mubr.msk.f32.gmra.mxu0 %vm207_vm1, %v22_v25  ;;  %v37_v54 = vld [vmem:[%s10976_s0 + $0xb0] sm:$0xff]  ;;  %v1844_v55 = vld [vmem:[%s10975_s1 + $0xf8] sm:$0xff]  ;;  %v1845_v56 = vld [vmem:[%s10975_s1 + $0x100] sm:$0xff] }
  0x14   :  { %6851 = vmatmul.mubr.msk.f32.gmra.mxu1 %vm207_vm1, %v1822_v10  ;;  %6560 = vmatprep.mubr.msk.f32.mxu0 %vm207_vm1, %v23_v26  ;;  %v38_v57 = vld [vmem:[%s10976_s0 + $0xb8] sm:$0xff]  ;;  %v39_v58 = vld [vmem:[%s10976_s0 + $0xc0] sm:$0xff]  ;;  %v1846_v59 = vld [vmem:[%s10975_s1 + $0x108] sm:$0xff] }
  0x15   :  { %6853 = vmatprep.mubr.msk.f32.mxu1 %vm207_vm1, %v1823_v11  ;;  %v1847_v60 = vld [vmem:[%s10975_s1 + $0x110] sm:$0xff]  ;;  %v40_v61 = vld [vmem:[%s10976_s0 + $0xc8] sm:$0xff]  ;;  %v1848_v63 = vld [vmem:[%s10975_s1 + $0x118] sm:$0xff] }
  0x16   :  { %v41_v62 = vld [vmem:[%s10976_s0 + $0xd0] sm:$0xff]  ;;  %v1849_v0 = vld [vmem:[%s10975_s1 + $0x120] sm:$0xff]  ;;  %v42_v1 = vld [vmem:[%s10976_s0 + $0xd8] sm:$0xff] }
  0x17   :  { %6561 = vmatmul.mubr.msk.f32.gmra.mxu0 %vm207_vm1, %v24_v29  ;;  %v43_v2 = vld [vmem:[%s10976_s0 + $0xe0] sm:$0xff]  ;;  %v1850_v3 = vld [vmem:[%s10975_s1 + $0x128] sm:$0xff]  ;;  %v1851_v4 = vld [vmem:[%s10975_s1 + $0x130] sm:$0xff] }
  0x18   :  { %6854 = vmatmul.mubr.msk.f32.gmra.mxu1 %vm207_vm1, %v1824_v13  ;;  %6563 = vmatprep.mubr.msk.f32.mxu0 %vm207_vm1, %v25_v30  ;;  %v44_v5 = vld [vmem:[%s10976_s0 + $0xe8] sm:$0xff]  ;;  %v45_v6 = vld [vmem:[%s10976_s0 + $0xf0] sm:$0xff]  ;;  %v1852_v7 = vld [vmem:[%s10975_s1 + $0x138] sm:$0xff] }
  0x19   :  { %6856 = vmatprep.mubr.msk.f32.mxu1 %vm207_vm1, %v1825_v15  ;;  %v1853_v8 = vld [vmem:[%s10975_s1 + $0x140] sm:$0xff]  ;;  %v46_v9 = vld [vmem:[%s10976_s0 + $0xf8] sm:$0xff]  ;;  %v1854_v11 = vld [vmem:[%s10975_s1 + $0x148] sm:$0xff] }
  0x1a   :  { %v47_v10 = vld [vmem:[%s10976_s0 + $0x100] sm:$0xff]  ;;  %v1855_v12 = vld [vmem:[%s10975_s1 + $0x150] sm:$0xff]  ;;  %v48_v13 = vld [vmem:[%s10976_s0 + $0x108] sm:$0xff] }
  0x1b   :  { %6564 = vmatmul.mubr.msk.f32.gmra.mxu0 %vm207_vm1, %v26_v33  ;;  %v49_v14 = vld [vmem:[%s10976_s0 + $0x110] sm:$0xff]  ;;  %v1856_v15 = vld [vmem:[%s10975_s1 + $0x158] sm:$0xff]  ;;  %v1857_v16 = vld [vmem:[%s10975_s1 + $0x160] sm:$0xff] }
  0x1c   :  { %6857 = vmatmul.mubr.msk.f32.gmra.mxu1 %vm207_vm1, %v1826_v19  ;;  %6566 = vmatprep.mubr.msk.f32.mxu0 %vm207_vm1, %v27_v34  ;;  %v50_v17 = vld [vmem:[%s10976_s0 + $0x118] sm:$0xff]  ;;  %v51_v18 = vld [vmem:[%s10976_s0 + $0x120] sm:$0xff]  ;;  %v1858_v19 = vld [vmem:[%s10975_s1 + $0x168] sm:$0xff] }
  0x1d   :  { %6859 = vmatprep.mubr.msk.f32.mxu1 %vm207_vm1, %v1827_v20  ;;  %v1859_v20 = vld [vmem:[%s10975_s1 + $0x170] sm:$0xff]  ;;  %v52_v21 = vld [vmem:[%s10976_s0 + $0x128] sm:$0xff]  ;;  %v54_v25 = vld [vmem:[%s10976_s0 + $0x138] sm:$0xff] }
  0x1e   :  { %v53_v22 = vld [vmem:[%s10976_s0 + $0x130] sm:$0xff]  ;;  %v55_v26 = vld [vmem:[%s10976_s0 + $0x140] sm:$0xff]  ;;  %v56_v29 = vld [vmem:[%s10976_s0 + $0x148] sm:$0xff] }
  0x1f   :  { %6567 = vmatmul.mubr.msk.f32.gmra.mxu0 %vm207_vm1, %v28_v37  ;;  %v57_v30 = vld [vmem:[%s10976_s0 + $0x150] sm:$0xff]  ;;  %v58_v33 = vld [vmem:[%s10976_s0 + $0x158] sm:$0xff]  ;;  %v59_v34 = vld [vmem:[%s10976_s0 + $0x160] sm:$0xff] }
  0x20   :  { %6860 = vmatmul.mubr.msk.f32.gmra.mxu1 %vm207_vm1, %v1828_v23  ;;  %6569 = vmatprep.mubr.msk.f32.mxu0 %vm207_vm1, %v29_v38  ;;  %v1860_v23 = vld [vmem:[%s10975_s1 + $0x178] sm:$0xff]  ;;  %v60_v37 = vld [vmem:[%s10976_s0 + $0x168] sm:$0xff]  ;;  %v61_v38 = vld [vmem:[%s10976_s0 + $0x170] sm:$0xff] }
  0x21   :  { %6862 = vmatprep.mubr.msk.f32.mxu1 %vm207_vm1, %v1829_v24  ;;  %v1861_v24 = vld [vmem:[%s10975_s1 + $0x180] sm:$0xff] }
  0x23   :  { %6570 = vmatmul.mubr.msk.f32.gmra.mxu0 %vm207_vm1, %v30_v41  ;;  %v62_v41 = vld [vmem:[%s10976_s0 + $0x178] sm:$0xff] }
  0x24   :  { %6863 = vmatmul.mubr.msk.f32.gmra.mxu1 %vm207_vm1, %v1830_v27  ;;  %6572 = vmatprep.mubr.msk.f32.mxu0 %vm207_vm1, %v31_v42  ;;  %v1862_v27 = vld [vmem:[%s10975_s1 + $0x188] sm:$0xff]  ;;  %v63_v42 = vld [vmem:[%s10976_s0 + $0x180] sm:$0xff] }
  0x25   :  { %6865 = vmatprep.mubr.msk.f32.mxu1 %vm207_vm1, %v1831_v28  ;;  %v1863_v28 = vld [vmem:[%s10975_s1 + $0x190] sm:$0xff] }
  0x27   :  { %6573 = vmatmul.mubr.msk.f32.gmra.mxu0 %vm207_vm1, %v32_v45  ;;  %v64_v45 = vld [vmem:[%s10976_s0 + $0x188] sm:$0xff] }
  0x28   :  { %6866 = vmatmul.mubr.msk.f32.gmra.mxu1 %vm207_vm1, %v1832_v31  ;;  %6575 = vmatprep.mubr.msk.f32.mxu0 %vm207_vm1, %v33_v46  ;;  %v1864_v31 = vld [vmem:[%s10975_s1 + $0x198] sm:$0xff]  ;;  %v65_v46 = vld [vmem:[%s10976_s0 + $0x190] sm:$0xff] }
  0x29   :  { %6868 = vmatprep.mubr.msk.f32.mxu1 %vm207_vm1, %v1833_v32  ;;  %v1865_v32 = vld [vmem:[%s10975_s1 + $0x1a0] sm:$0xff] }
  0x2b   :  { %6576 = vmatmul.mubr.msk.f32.gmra.mxu0 %vm207_vm1, %v34_v49  ;;  %v66_v49 = vld [vmem:[%s10976_s0 + $0x198] sm:$0xff] }
  0x2c   :  { %6869 = vmatmul.mubr.msk.f32.gmra.mxu1 %vm207_vm1, %v1834_v35  ;;  %6578 = vmatprep.mubr.msk.f32.mxu0 %vm207_vm1, %v35_v50  ;;  %v1866_v35 = vld [vmem:[%s10975_s1 + $0x1a8] sm:$0xff]  ;;  %v67_v50 = vld [vmem:[%s10976_s0 + $0x1a0] sm:$0xff] }
  0x2d   :  { %6871 = vmatprep.mubr.msk.f32.mxu1 %vm207_vm1, %v1835_v36  ;;  %v1867_v36 = vld [vmem:[%s10975_s1 + $0x1b0] sm:$0xff] }
  0x2f   :  { %6579 = vmatmul.mubr.msk.f32.gmra.mxu0 %vm207_vm1, %v36_v53  ;;  %v68_v53 = vld [vmem:[%s10976_s0 + $0x1a8] sm:$0xff] }
  0x30   :  { %6872 = vmatmul.mubr.msk.f32.gmra.mxu1 %vm207_vm1, %v1836_v39  ;;  %6581 = vmatprep.mubr.msk.f32.mxu0 %vm207_vm1, %v37_v54  ;;  %v1868_v39 = vld [vmem:[%s10975_s1 + $0x1b8] sm:$0xff]  ;;  %v69_v54 = vld [vmem:[%s10976_s0 + $0x1b0] sm:$0xff] }
  0x31   :  { %6874 = vmatprep.mubr.msk.f32.mxu1 %vm207_vm1, %v1837_v40  ;;  %v1869_v40 = vld [vmem:[%s10975_s1 + $0x1c0] sm:$0xff] }
  0x33   :  { %6582 = vmatmul.mubr.msk.f32.gmra.mxu0 %vm207_vm1, %v38_v57  ;;  %v70_v57 = vld [vmem:[%s10976_s0 + $0x1b8] sm:$0xff] }
  0x34   :  { %6875 = vmatmul.mubr.msk.f32.gmra.mxu1 %vm207_vm1, %v1838_v43  ;;  %6584 = vmatprep.mubr.msk.f32.mxu0 %vm207_vm1, %v39_v58  ;;  %v1870_v43 = vld [vmem:[%s10975_s1 + $0x1c8] sm:$0xff]  ;;  %v71_v58 = vld [vmem:[%s10976_s0 + $0x1c0] sm:$0xff] }
  0x35   :  { %6877 = vmatprep.mubr.msk.f32.mxu1 %vm207_vm1, %v1839_v44  ;;  %v1871_v44 = vld [vmem:[%s10975_s1 + $0x1d0] sm:$0xff] }
  0x37   :  { %6585 = vmatmul.mubr.msk.f32.gmra.mxu0 %vm207_vm1, %v40_v61  ;;  %v72_v61 = vld [vmem:[%s10976_s0 + $0x1c8] sm:$0xff] }
  0x38   :  { %6878 = vmatmul.mubr.msk.f32.gmra.mxu1 %vm207_vm1, %v1840_v47  ;;  %6587 = vmatprep.mubr.msk.f32.mxu0 %vm207_vm1, %v41_v62  ;;  %v1872_v47 = vld [vmem:[%s10975_s1 + $0x1d8] sm:$0xff]  ;;  %v73_v62 = vld [vmem:[%s10976_s0 + $0x1d0] sm:$0xff] }
  0x39   :  { %6880 = vmatprep.mubr.msk.f32.mxu1 %vm207_vm1, %v1841_v48  ;;  %v1873_v48 = vld [vmem:[%s10975_s1 + $0x1e0] sm:$0xff] }
  0x3b   :  { %6588 = vmatmul.mubr.msk.f32.gmra.mxu0 %vm207_vm1, %v42_v1  ;;  %v74_v1 = vld [vmem:[%s10976_s0 + $0x1d8] sm:$0xff] }
  0x3c   :  { %6881 = vmatmul.mubr.msk.f32.gmra.mxu1 %vm207_vm1, %v1842_v51  ;;  %6590 = vmatprep.mubr.msk.f32.mxu0 %vm207_vm1, %v43_v2  ;;  %v1874_v51 = vld [vmem:[%s10975_s1 + $0x1e8] sm:$0xff]  ;;  %v75_v2 = vld [vmem:[%s10976_s0 + $0x1e0] sm:$0xff] }
  0x3d   :  { %6883 = vmatprep.mubr.msk.f32.mxu1 %vm207_vm1, %v1843_v52  ;;  %v1875_v52 = vld [vmem:[%s10975_s1 + $0x1f0] sm:$0xff] }
  0x3f   :  { %6591 = vmatmul.mubr.msk.f32.gmra.mxu0 %vm207_vm1, %v44_v5  ;;  %v76_v5 = vld [vmem:[%s10976_s0 + $0x1e8] sm:$0xff] }
  0x40   :  { %6884 = vmatmul.mubr.msk.f32.gmra.mxu1 %vm207_vm1, %v1844_v55  ;;  %6593 = vmatprep.mubr.msk.f32.mxu0 %vm207_vm1, %v45_v6  ;;  %v1876_v55 = vld [vmem:[%s10975_s1 + $0x1f8] sm:$0xff]  ;;  %v77_v6 = vld [vmem:[%s10976_s0 + $0x1f0] sm:$0xff] }
  0x41   :  { %6886 = vmatprep.mubr.msk.f32.mxu1 %vm207_vm1, %v1845_v56  ;;  %v1877_v56 = vld [vmem:[%s10975_s1 + $0x200] sm:$0xff] }
  0x43   :  { %6594 = vmatmul.mubr.msk.f32.gmra.mxu0 %vm207_vm1, %v46_v9  ;;  %v78_v9 = vld [vmem:[%s10976_s0 + $0x1f8] sm:$0xff] }
  0x44   :  { %6887 = vmatmul.mubr.msk.f32.gmra.mxu1 %vm207_vm1, %v1846_v59  ;;  %6596 = vmatprep.mubr.msk.f32.mxu0 %vm207_vm1, %v47_v10  ;;  %v1878_v59 = vld [vmem:[%s10975_s1 + $0x208] sm:$0xff]  ;;  %v79_v10 = vld [vmem:[%s10976_s0 + $0x200] sm:$0xff] }
  0x45   :  { %6889 = vmatprep.mubr.msk.f32.mxu1 %vm207_vm1, %v1847_v60  ;;  %v1879_v60 = vld [vmem:[%s10975_s1 + $0x210] sm:$0xff] }
  0x47   :  { %6597 = vmatmul.mubr.msk.f32.gmra.mxu0 %vm207_vm1, %v48_v13  ;;  %v80_v13 = vld [vmem:[%s10976_s0 + $0x208] sm:$0xff] }
  0x48   :  { %6890 = vmatmul.mubr.msk.f32.gmra.mxu1 %vm207_vm1, %v1848_v63  ;;  %6599 = vmatprep.mubr.msk.f32.mxu0 %vm207_vm1, %v49_v14  ;;  %v1880_v63 = vld [vmem:[%s10975_s1 + $0x218] sm:$0xff]  ;;  %v81_v14 = vld [vmem:[%s10976_s0 + $0x210] sm:$0xff] }
  0x49   :  { %6892 = vmatprep.mubr.msk.f32.mxu1 %vm207_vm1, %v1849_v0  ;;  %v1881_v0 = vld [vmem:[%s10975_s1 + $0x220] sm:$0xff] }
  0x4b   :  { %6600 = vmatmul.mubr.msk.f32.gmra.mxu0 %vm207_vm1, %v50_v17  ;;  %v82_v17 = vld [vmem:[%s10976_s0 + $0x218] sm:$0xff] }
  0x4c   :  { %6893 = vmatmul.mubr.msk.f32.gmra.mxu1 %vm207_vm1, %v1850_v3  ;;  %6602 = vmatprep.mubr.msk.f32.mxu0 %vm207_vm1, %v51_v18  ;;  %v1882_v3 = vld [vmem:[%s10975_s1 + $0x228] sm:$0xff]  ;;  %v83_v18 = vld [vmem:[%s10976_s0 + $0x220] sm:$0xff] }
  0x4d   :  { %6895 = vmatprep.mubr.msk.f32.mxu1 %vm207_vm1, %v1851_v4  ;;  %v1883_v4 = vld [vmem:[%s10975_s1 + $0x230] sm:$0xff] }
  0x4f   :  { %6603 = vmatmul.mubr.msk.f32.gmra.mxu0 %vm207_vm1, %v52_v21  ;;  %v84_v21 = vld [vmem:[%s10976_s0 + $0x228] sm:$0xff] }
  0x50   :  { %6896 = vmatmul.mubr.msk.f32.gmra.mxu1 %vm207_vm1, %v1852_v7  ;;  %6605 = vmatprep.mubr.msk.f32.mxu0 %vm207_vm1, %v53_v22  ;;  %v1884_v7 = vld [vmem:[%s10975_s1 + $0x238] sm:$0xff]  ;;  %v85_v22 = vld [vmem:[%s10976_s0 + $0x230] sm:$0xff] }
  0x51   :  { %6898 = vmatprep.mubr.msk.f32.mxu1 %vm207_vm1, %v1853_v8  ;;  %v1885_v8 = vld [vmem:[%s10975_s1 + $0x240] sm:$0xff] }
  0x53   :  { %6606 = vmatmul.mubr.msk.f32.gmra.mxu0 %vm207_vm1, %v54_v25  ;;  %v86_v25 = vld [vmem:[%s10976_s0 + $0x238] sm:$0xff] }
  0x54   :  { %6899 = vmatmul.mubr.msk.f32.gmra.mxu1 %vm207_vm1, %v1854_v11  ;;  %6608 = vmatprep.mubr.msk.f32.mxu0 %vm207_vm1, %v55_v26  ;;  %v1886_v11 = vld [vmem:[%s10975_s1 + $0x248] sm:$0xff]  ;;  %v87_v26 = vld [vmem:[%s10976_s0 + $0x240] sm:$0xff] }
  0x55   :  { %6901 = vmatprep.mubr.msk.f32.mxu1 %vm207_vm1, %v1855_v12  ;;  %v1887_v12 = vld [vmem:[%s10975_s1 + $0x250] sm:$0xff] }
  0x57   :  { %6609 = vmatmul.mubr.msk.f32.gmra.mxu0 %vm207_vm1, %v56_v29  ;;  %v88_v29 = vld [vmem:[%s10976_s0 + $0x248] sm:$0xff] }
  0x58   :  { %6902 = vmatmul.mubr.msk.f32.gmra.mxu1 %vm207_vm1, %v1856_v15  ;;  %6611 = vmatprep.mubr.msk.f32.mxu0 %vm207_vm1, %v57_v30  ;;  %v1888_v15 = vld [vmem:[%s10975_s1 + $0x258] sm:$0xff] }
  0x59   :  { %6904 = vmatprep.mubr.msk.f32.mxu1 %vm207_vm1, %v1857_v16  ;;  %v1889_v16 = vld [vmem:[%s10975_s1 + $0x260] sm:$0xff]  ;;  %v1896_v30 = vld [vmem:[%s10975_s1 + $0x298] sm:$0xff] }
  0x5b   :  { %6612 = vmatmul.mubr.msk.f32.gmra.mxu0 %vm207_vm1, %v58_v33  ;;  %v90_v33 = vld [vmem:[%s10976_s0 + $0x258] sm:$0xff] }
  0x5c   :  { %6905 = vmatmul.mubr.msk.f32.gmra.mxu1 %vm207_vm1, %v1858_v19  ;;  %6614 = vmatprep.mubr.msk.f32.mxu0 %vm207_vm1, %v59_v34  ;;  %v1890_v19 = vld [vmem:[%s10975_s1 + $0x268] sm:$0xff] }
  0x5d   :  { %6907 = vmatprep.mubr.msk.f32.mxu1 %vm207_vm1, %v1859_v20  ;;  %v1891_v20 = vld [vmem:[%s10975_s1 + $0x270] sm:$0xff]  ;;  %v1898_v34 = vld [vmem:[%s10975_s1 + $0x2a8] sm:$0xff] }
  0x5f   :  { %6615 = vmatmul.mubr.msk.f32.gmra.mxu0 %vm207_vm1, %v60_v37  ;;  %v92_v37 = vld [vmem:[%s10976_s0 + $0x268] sm:$0xff] }
  0x60   :  { %6908 = vmatmul.mubr.msk.f32.gmra.mxu1 %vm207_vm1, %v1860_v23  ;;  %6617 = vmatprep.mubr.msk.f32.mxu0 %vm207_vm1, %v61_v38  ;;  %v1892_v23 = vld [vmem:[%s10975_s1 + $0x278] sm:$0xff] }
  0x61   :  { %6910 = vmatprep.mubr.msk.f32.mxu1 %vm207_vm1, %v1861_v24  ;;  %v1893_v24 = vld [vmem:[%s10975_s1 + $0x280] sm:$0xff]  ;;  %v1900_v38 = vld [vmem:[%s10975_s1 + $0x2b8] sm:$0xff] }
  0x63   :  { %6618 = vmatmul.mubr.msk.f32.gmra.mxu0 %vm207_vm1, %v62_v41  ;;  %v1902_v41 = vld [vmem:[%s10975_s1 + $0x2c8] sm:$0xff] }
  0x64   :  { %6911 = vmatmul.mubr.msk.f32.gmra.mxu1 %vm207_vm1, %v1862_v27  ;;  %6620 = vmatprep.mubr.msk.f32.mxu0 %vm207_vm1, %v63_v42  ;;  %v1894_v27 = vld [vmem:[%s10975_s1 + $0x288] sm:$0xff]  ;;  %v94_v42 = vld [vmem:[%s10976_s0 + $0x278] sm:$0xff] }
  0x65   :  { %6913 = vmatprep.mubr.msk.f32.mxu1 %vm207_vm1, %v1863_v28  ;;  %v1895_v28 = vld [vmem:[%s10975_s1 + $0x290] sm:$0xff] }
  0x67   :  { %6621 = vmatmul.mubr.msk.f32.gmra.mxu0 %vm207_vm1, %v64_v45  ;;  %v1905_v45 = vld [vmem:[%s10975_s1 + $0x2e0] sm:$0xff] }
  0x68   :  { %6914 = vmatmul.mubr.msk.f32.gmra.mxu1 %vm207_vm1, %v1864_v31  ;;  %6623 = vmatprep.mubr.msk.f32.mxu0 %vm207_vm1, %v65_v46  ;;  %v1897_v31 = vld [vmem:[%s10975_s1 + $0x2a0] sm:$0xff]  ;;  %v1906_v46 = vld [vmem:[%s10975_s1 + $0x2e8] sm:$0xff] }
  0x69   :  { %6916 = vmatprep.mubr.msk.f32.mxu1 %vm207_vm1, %v1865_v32  ;;  %v89_v32 = vld [vmem:[%s10976_s0 + $0x250] sm:$0xff] }
  0x6b   :  { %6624 = vmatmul.mubr.msk.f32.gmra.mxu0 %vm207_vm1, %v66_v49  ;;  %v1909_v49 = vld [vmem:[%s10975_s1 + $0x300] sm:$0xff] }
  0x6c   :  { %6917 = vmatmul.mubr.msk.f32.gmra.mxu1 %vm207_vm1, %v1866_v35  ;;  %6626 = vmatprep.mubr.msk.f32.mxu0 %vm207_vm1, %v67_v50  ;;  %v1899_v35 = vld [vmem:[%s10975_s1 + $0x2b0] sm:$0xff]  ;;  %v95_v50 = vld [vmem:[%s10976_s0 + $0x280] sm:$0xff] }
  0x6d   :  { %6919 = vmatprep.mubr.msk.f32.mxu1 %vm207_vm1, %v1867_v36  ;;  %v91_v36 = vld [vmem:[%s10976_s0 + $0x260] sm:$0xff] }
  0x6f   :  { %6627 = vmatmul.mubr.msk.f32.gmra.mxu0 %vm207_vm1, %v68_v53  ;;  %v1911_v53 = vld [vmem:[%s10975_s1 + $0x310] sm:$0xff] }
  0x70   :  { %6920 = vmatmul.mubr.msk.f32.gmra.mxu1 %vm207_vm1, %v1868_v39  ;;  %6629 = vmatprep.mubr.msk.f32.mxu0 %vm207_vm1, %v69_v54  ;;  %v1901_v39 = vld [vmem:[%s10975_s1 + $0x2c0] sm:$0xff]  ;;  %v97_v54 = vld [vmem:[%s10976_s0 + $0x290] sm:$0xff] }
  0x71   :  { %6922 = vmatprep.mubr.msk.f32.mxu1 %vm207_vm1, %v1869_v40  ;;  %v93_v40 = vld [vmem:[%s10976_s0 + $0x270] sm:$0xff] }
  0x73   :  { %6630 = vmatmul.mubr.msk.f32.gmra.mxu0 %vm207_vm1, %v70_v57  ;;  %v1912_v57 = vld [vmem:[%s10975_s1 + $0x318] sm:$0xff] }
  0x74   :  { %6923 = vmatmul.mubr.msk.f32.gmra.mxu1 %vm207_vm1, %v1870_v43  ;;  %6632 = vmatprep.mubr.msk.f32.mxu0 %vm207_vm1, %v71_v58  ;;  %v1903_v43 = vld [vmem:[%s10975_s1 + $0x2d0] sm:$0xff] }
  0x75   :  { %6925 = vmatprep.mubr.msk.f32.mxu1 %vm207_vm1, %v1871_v44  ;;  %v1904_v44 = vld [vmem:[%s10975_s1 + $0x2d8] sm:$0xff] }
  0x77   :  { %6633 = vmatmul.mubr.msk.f32.gmra.mxu0 %vm207_vm1, %v72_v61  ;;  %v99_v61 = vld [vmem:[%s10976_s0 + $0x2a0] sm:$0xff] }
  0x78   :  { %6926 = vmatmul.mubr.msk.f32.gmra.mxu1 %vm207_vm1, %v1872_v47  ;;  %6635 = vmatprep.mubr.msk.f32.mxu0 %vm207_vm1, %v73_v62  ;;  %v1907_v47 = vld [vmem:[%s10975_s1 + $0x2f0] sm:$0xff]  ;;  %v1914_v62 = vld [vmem:[%s10975_s1 + $0x328] sm:$0xff] }
  0x79   :  { %6928 = vmatprep.mubr.msk.f32.mxu1 %vm207_vm1, %v1873_v48  ;;  %v1908_v48 = vld [vmem:[%s10975_s1 + $0x2f8] sm:$0xff] }
  0x7b   :  { %6636 = vmatmul.mubr.msk.f32.gmra.mxu0 %vm207_vm1, %v74_v1  ;;  %v1915_v1 = vld [vmem:[%s10975_s1 + $0x330] sm:$0xff] }
  0x7c   :  { %6929 = vmatmul.mubr.msk.f32.gmra.mxu1 %vm207_vm1, %v1874_v51  ;;  %6638 = vmatprep.mubr.msk.f32.mxu0 %vm207_vm1, %v75_v2  ;;  %v96_v51 = vld [vmem:[%s10976_s0 + $0x288] sm:$0xff] }
  0x7d   :  { %6931 = vmatprep.mubr.msk.f32.mxu1 %vm207_vm1, %v1875_v52  ;;  %v1910_v52 = vld [vmem:[%s10975_s1 + $0x308] sm:$0xff] }
  0x7f   :  { %6639 = vmatmul.mubr.msk.f32.gmra.mxu0 %vm207_vm1, %v76_v5  ;;  %v1917_v5 = vld [vmem:[%s10975_s1 + $0x340] sm:$0xff] }
  0x80   :  { %6932 = vmatmul.mubr.msk.f32.gmra.mxu1 %vm207_vm1, %v1876_v55  ;;  %6641 = vmatprep.mubr.msk.f32.mxu0 %vm207_vm1, %v77_v6  ;;  %v98_v55 = vld [vmem:[%s10976_s0 + $0x298] sm:$0xff] }
  0x81   :  { %6934 = vmatprep.mubr.msk.f32.mxu1 %vm207_vm1, %v1877_v56 }
  0x83   :  { %6642 = vmatmul.mubr.msk.f32.gmra.mxu0 %vm207_vm1, %v78_v9  ;;  %v1919_v9 = vld [vmem:[%s10975_s1 + $0x350] sm:$0xff] }
  0x84   :  { %6935 = vmatmul.mubr.msk.f32.gmra.mxu1 %vm207_vm1, %v1878_v59  ;;  %6644 = vmatprep.mubr.msk.f32.mxu0 %vm207_vm1, %v79_v10  ;;  %v1913_v59 = vld [vmem:[%s10975_s1 + $0x320] sm:$0xff] }
  0x85   :  { %6937 = vmatprep.mubr.msk.f32.mxu1 %vm207_vm1, %v1879_v60 }
  0x87   :  { %6645 = vmatmul.mubr.msk.f32.gmra.mxu0 %vm207_vm1, %v80_v13  ;;  %v1921_v13 = vld [vmem:[%s10975_s1 + $0x360] sm:$0xff] }
  0x88   :  { %6938 = vmatmul.mubr.msk.f32.gmra.mxu1 %vm207_vm1, %v1880_v63  ;;  %6647 = vmatprep.mubr.msk.f32.mxu0 %vm207_vm1, %v81_v14  ;;  %v100_v63 = vld [vmem:[%s10976_s0 + $0x2a8] sm:$0xff]  ;;  %v101_v14 = vld [vmem:[%s10976_s0 + $0x2b0] sm:$0xff] }
  0x89   :  { %6940 = vmatprep.mubr.msk.f32.mxu1 %vm207_vm1, %v1881_v0 }
  0x8b   :  { %6648 = vmatmul.mubr.msk.f32.gmra.mxu0 %vm207_vm1, %v82_v17  ;;  %v1922_v17 = vld [vmem:[%s10975_s1 + $0x368] sm:$0xff] }
  0x8c   :  { %6941 = vmatmul.mubr.msk.f32.gmra.mxu1 %vm207_vm1, %v1882_v3  ;;  %6650 = vmatprep.mubr.msk.f32.mxu0 %vm207_vm1, %v83_v18  ;;  %v1916_v3 = vld [vmem:[%s10975_s1 + $0x338] sm:$0xff] }
  0x8d   :  { %6943 = vmatprep.mubr.msk.f32.mxu1 %vm207_vm1, %v1883_v4 }
  0x8f   :  { %6651 = vmatmul.mubr.msk.f32.gmra.mxu0 %vm207_vm1, %v84_v21  ;;  %v104_v21 = vld [vmem:[%s10976_s0 + $0x2c8] sm:$0xff] }
  0x90   :  { %6944 = vmatmul.mubr.msk.f32.gmra.mxu1 %vm207_vm1, %v1884_v7  ;;  %6653 = vmatprep.mubr.msk.f32.mxu0 %vm207_vm1, %v85_v22  ;;  %v1918_v7 = vld [vmem:[%s10975_s1 + $0x348] sm:$0xff] }
  0x91   :  { %6946 = vmatprep.mubr.msk.f32.mxu1 %vm207_vm1, %v1885_v8 }
  0x93   :  { %6654 = vmatmul.mubr.msk.f32.gmra.mxu0 %vm207_vm1, %v86_v25  ;;  %v1925_v25 = vld [vmem:[%s10975_s1 + $0x380] sm:$0xff] }
  0x94   :  { %6947 = vmatmul.mubr.msk.f32.gmra.mxu1 %vm207_vm1, %v1886_v11  ;;  %6656 = vmatprep.mubr.msk.f32.mxu0 %vm207_vm1, %v87_v26  ;;  %v1920_v11 = vld [vmem:[%s10975_s1 + $0x358] sm:$0xff] }
  0x95   :  { %6949 = vmatprep.mubr.msk.f32.mxu1 %vm207_vm1, %v1887_v12 }
  0x97   :  { %6657 = vmatmul.mubr.msk.f32.gmra.mxu0 %vm207_vm1, %v88_v29  ;;  %v106_v29 = vld [vmem:[%s10976_s0 + $0x2d8] sm:$0xff] }
  0x98   :  { %6950 = vmatmul.mubr.msk.f32.gmra.mxu1 %vm207_vm1, %v1888_v15  ;;  %6659 = vmatprep.mubr.msk.f32.mxu0 %vm207_vm1, %v89_v32  ;;  %v102_v15 = vld [vmem:[%s10976_s0 + $0x2b8] sm:$0xff] }
  0x99   :  { %6952 = vmatprep.mubr.msk.f32.mxu1 %vm207_vm1, %v1889_v16 }
  0x9b   :  { %6660 = vmatmul.mubr.msk.f32.gmra.mxu0 %vm207_vm1, %v90_v33  ;;  %v1928_v33 = vld [vmem:[%s10975_s1 + $0x398] sm:$0xff] }
  0x9c   :  { %6953 = vmatmul.mubr.msk.f32.gmra.mxu1 %vm207_vm1, %v1890_v19  ;;  %6662 = vmatprep.mubr.msk.f32.mxu0 %vm207_vm1, %v91_v36  ;;  %v1923_v19 = vld [vmem:[%s10975_s1 + $0x370] sm:$0xff] }
  0x9d   :  { %6955 = vmatprep.mubr.msk.f32.mxu1 %vm207_vm1, %v1891_v20  ;;  %v103_v20 = vld [vmem:[%s10976_s0 + $0x2c0] sm:$0xff] }
  0x9f   :  { %6663 = vmatmul.mubr.msk.f32.gmra.mxu0 %vm207_vm1, %v92_v37  ;;  %v1930_v37 = vld [vmem:[%s10975_s1 + $0x3a8] sm:$0xff] }
  0xa0   :  { %6956 = vmatmul.mubr.msk.f32.gmra.mxu1 %vm207_vm1, %v1892_v23  ;;  %6665 = vmatprep.mubr.msk.f32.mxu0 %vm207_vm1, %v93_v40  ;;  %v1924_v23 = vld [vmem:[%s10975_s1 + $0x378] sm:$0xff] }
  0xa1   :  { %6958 = vmatprep.mubr.msk.f32.mxu1 %vm207_vm1, %v1893_v24 }
  0xa3   :  { %6666 = vmatmul.mubr.msk.f32.gmra.mxu0 %vm207_vm1, %v94_v42 }
  0xa4   :  { %6959 = vmatmul.mubr.msk.f32.gmra.mxu1 %vm207_vm1, %v1894_v27  ;;  %6668 = vmatprep.mubr.msk.f32.mxu0 %vm207_vm1, %v95_v50  ;;  %v105_v27 = vld [vmem:[%s10976_s0 + $0x2d0] sm:$0xff] }
  0xa5   :  { %6961 = vmatprep.mubr.msk.f32.mxu1 %vm207_vm1, %v1895_v28  ;;  %v1926_v28 = vld [vmem:[%s10975_s1 + $0x388] sm:$0xff]  ;;  %v109_v50 = vld [vmem:[%s10976_s0 + $0x2f0] sm:$0xff] }
  0xa7   :  { %6669 = vmatmul.mubr.msk.f32.gmra.mxu0 %vm207_vm1, %v96_v51  ;;  %v110_v51 = vld [vmem:[%s10976_s0 + $0x2f8] sm:$0xff] }
  0xa8   :  { %6962 = vmatmul.mubr.msk.f32.gmra.mxu1 %vm207_vm1, %v1896_v30  ;;  %6671 = vmatprep.mubr.msk.f32.mxu0 %vm207_vm1, %v97_v54 }
  0xa9   :  { %6964 = vmatprep.mubr.msk.f32.mxu1 %vm207_vm1, %v1897_v31  ;;  %v1927_v31 = vld [vmem:[%s10975_s1 + $0x390] sm:$0xff] }
  0xab   :  { %6672 = vmatmul.mubr.msk.f32.gmra.mxu0 %vm207_vm1, %v98_v55  ;;  %v1937_v55 = vld [vmem:[%s10975_s1 + $0x3e0] sm:$0xff] }
  0xac   :  { %6965 = vmatmul.mubr.msk.f32.gmra.mxu1 %vm207_vm1, %v1898_v34  ;;  %6674 = vmatprep.mubr.msk.f32.mxu0 %vm207_vm1, %v99_v61  ;;  %v1939_v61 = vld [vmem:[%s10975_s1 + $0x3f0] sm:$0xff] }
  0xad   :  { %6967 = vmatprep.mubr.msk.f32.mxu1 %vm207_vm1, %v1899_v35  ;;  %v1929_v35 = vld [vmem:[%s10975_s1 + $0x3a0] sm:$0xff] }
  0xaf   :  { %6675 = vmatmul.mubr.msk.f32.gmra.mxu0 %vm207_vm1, %v100_v63  ;;  %v1940_v63 = vld [vmem:[%s10975_s1 + $0x3f8] sm:$0xff] }
  0xb0   :  { %6968 = vmatmul.mubr.msk.f32.gmra.mxu1 %vm207_vm1, %v1900_v38  ;;  %6677 = vmatprep.mubr.msk.f32.mxu0 %vm207_vm1, %v101_v14  ;;  %v1943_v14 = vld [vmem:[%s10975_s1 + $0x410] sm:$0xff] }
  0xb1   :  { %6970 = vmatprep.mubr.msk.f32.mxu1 %vm207_vm1, %v1901_v39  ;;  %v1931_v39 = vld [vmem:[%s10975_s1 + $0x3b0] sm:$0xff] }
  0xb3   :  { %6678 = vmatmul.mubr.msk.f32.gmra.mxu0 %vm207_vm1, %v102_v15 }
  0xb4   :  { %6971 = vmatmul.mubr.msk.f32.gmra.mxu1 %vm207_vm1, %v1902_v41  ;;  %6680 = vmatprep.mubr.msk.f32.mxu0 %vm207_vm1, %v103_v20  ;;  %v1932_v41 = vld [vmem:[%s10975_s1 + $0x3b8] sm:$0xff] }
  0xb5   :  { %6973 = vmatprep.mubr.msk.f32.mxu1 %vm207_vm1, %v1903_v43  ;;  %v1933_v43 = vld [vmem:[%s10975_s1 + $0x3c0] sm:$0xff] }
  0xb7   :  { %6681 = vmatmul.mubr.msk.f32.gmra.mxu0 %vm207_vm1, %v104_v21 }
  0xb8   :  { %6974 = vmatmul.mubr.msk.f32.gmra.mxu1 %vm207_vm1, %v1904_v44  ;;  %6683 = vmatprep.mubr.msk.f32.mxu0 %vm207_vm1, %v105_v27  ;;  %v107_v44 = vld [vmem:[%s10976_s0 + $0x2e0] sm:$0xff] }
  0xb9   :  { %6976 = vmatprep.mubr.msk.f32.mxu1 %vm207_vm1, %v1905_v45  ;;  %v108_v45 = vld [vmem:[%s10976_s0 + $0x2e8] sm:$0xff] }
  0xbb   :  { %6684 = vmatmul.mubr.msk.f32.gmra.mxu0 %vm207_vm1, %v106_v29 }
  0xbc   :  { %6977 = vmatmul.mubr.msk.f32.gmra.mxu1 %vm207_vm1, %v1906_v46  ;;  %6686 = vmatprep.mubr.msk.f32.mxu0 %vm207_vm1, %v107_v44 }
  0xbd   :  { %6979 = vmatprep.mubr.msk.f32.mxu1 %vm207_vm1, %v1907_v47  ;;  %v1934_v47 = vld [vmem:[%s10975_s1 + $0x3c8] sm:$0xff] }
  0xbf   :  { %6687 = vmatmul.mubr.msk.f32.gmra.mxu0 %vm207_vm1, %v108_v45 }
  0xc0   :  { %6980 = vmatmul.mubr.msk.f32.gmra.mxu1 %vm207_vm1, %v1908_v48  ;;  %6689 = vmatprep.mubr.msk.f32.mxu0 %vm207_vm1, %v109_v50 }
  0xc1   :  { %6982 = vmatprep.mubr.msk.f32.mxu1 %vm207_vm1, %v1909_v49  ;;  %v1935_v49 = vld [vmem:[%s10975_s1 + $0x3d0] sm:$0xff] }
  0xc3   :  { %6690 = vmatmul.mubr.msk.f32.gmra.mxu0 %vm207_vm1, %v110_v51 }
  0xc4   :  { %v6840_v56 = vpop.f32.mrf.mxu1  ;;  %6983 = vmatmul.mubr.msk.f32.gmra.mxu1 %vm207_vm1, %v1910_v52 }
  0xc5   :  { %3611 = vrot.lane.b32.xlu0 %v6840_v56, %s7189_s16  ;;  %6985 = vmatprep.mubr.msk.f32.mxu1 %vm207_vm1, %v1911_v53  ;;  %v1936_v53 = vld [vmem:[%s10975_s1 + $0x3d8] sm:$0xff] }
  0xc6   :  { %v2647_v58 = vpop.f32.mrf.mxu1 }
  0xc7   :  { %v8251_v21 = vpop.f32.mrf.mxu0 }
  0xc8   :  { %v6843_v60 = vpop.f32.mrf.mxu1  ;;  %6986 = vmatmul.mubr.msk.f32.gmra.mxu1 %vm207_vm1, %v1912_v57  ;;  %v111_v57 = vld [vmem:[%s10976_s0 + $0x300] sm:$0xff] }
  0xc9   :  { %3609 = vrot.lane.b32.xlu0 %v2647_v58, %s7189_s16  ;;  %3631 = vrot.lane.b32.xlu1 %v6843_v60, %s7189_s16  ;;  %v1938_v58 = vld [vmem:[%s10975_s1 + $0x3e8] sm:$0xff] }
  0xca   :  { %v2657_v0 = vpop.f32.mrf.mxu1  ;;  %6988 = vmatprep.mubr.msk.f32.mxu1 %vm207_vm1, %v1913_v59  ;;  %v112_v59 = vld [vmem:[%s10976_s0 + $0x308] sm:$0xff]  ;;  %6692 = vmatprep.mubr.msk.f32.mxu0 %vm207_vm1, %v111_v57 }
  0xcb   :  { %6693 = vmatmul.mubr.msk.f32.gmra.mxu0 %vm207_vm1, %v112_v59 }
  0xcc   :  { %v6846_v2 = vpop.f32.mrf.mxu1  ;;  %6989 = vmatmul.mubr.msk.f32.gmra.mxu1 %vm207_vm1, %v1914_v62 }
  0xcd   :  { %3613 = vrot.lane.b32.xlu1 %v2657_v0, %s7189_s16  ;;  %6991 = vmatprep.mubr.msk.f32.mxu1 %vm207_vm1, %v1915_v1 }
  0xce   :  { %v2667_v4 = vpop.f32.mrf.mxu1 }
  0xcf   :  { %3633 = vrot.lane.b32.xlu0 %v2667_v4, %s7189_s16 }
  0xd0   :  { %v6849_v6 = vpop.f32.mrf.mxu1  ;;  %6992 = vmatmul.mubr.msk.f32.gmra.mxu1 %vm207_vm1, %v1916_v3 }
  0xd1   :  { %3635 = vrot.lane.b32.xlu1 %v6846_v2, %s7189_s16  ;;  %6994 = vmatprep.mubr.msk.f32.mxu1 %vm207_vm1, %v1917_v5  ;;  %v113_v5 = vld [vmem:[%s10976_s0 + $0x310] sm:$0xff] }
  0xd2   :  { %v2677_v8 = vpop.f32.mrf.mxu1  ;;  %6695 = vmatprep.mubr.msk.f32.mxu0 %vm207_vm1, %v113_v5 }
  0xd3   :  { %3667 = vrot.lane.b32.xlu0 %v6849_v6, %s7189_s16  ;;  %v114_v6 = vld [vmem:[%s10976_s0 + $0x318] sm:$0xff] }
  0xd4   :  { %v6852_v10 = vpop.f32.mrf.mxu1  ;;  %6995 = vmatmul.mubr.msk.f32.gmra.mxu1 %vm207_vm1, %v1918_v7  ;;  %6696 = vmatmul.mubr.msk.f32.gmra.mxu0 %vm207_vm1, %v114_v6 }
  0xd5   :  { %3665 = vrot.lane.b32.xlu1 %v2677_v8, %s7189_s16  ;;  %6997 = vmatprep.mubr.msk.f32.mxu1 %vm207_vm1, %v1919_v9  ;;  %v1941_v8 = vld [vmem:[%s10975_s1 + $0x400] sm:$0xff] }
  0xd6   :  { %v2687_v12 = vpop.f32.mrf.mxu1 }
  0xd8   :  { %v6855_v16 = vpop.f32.mrf.mxu1  ;;  %6998 = vmatmul.mubr.msk.f32.gmra.mxu1 %vm207_vm1, %v1920_v11  ;;  %v115_v11 = vld [vmem:[%s10976_s0 + $0x320] sm:$0xff] }
  0xd9   :  { %3699 = vrot.lane.b32.xlu1 %v6852_v10, %s7189_s16  ;;  %7000 = vmatprep.mubr.msk.f32.mxu1 %vm207_vm1, %v1921_v13  ;;  %v1942_v10 = vld [vmem:[%s10975_s1 + $0x408] sm:$0xff] }
  0xda   :  { %v2697_v18 = vpop.f32.mrf.mxu1  ;;  %6698 = vmatprep.mubr.msk.f32.mxu0 %vm207_vm1, %v115_v11 }
  0xdb   :  { %3701 = vrot.lane.b32.xlu0 %v2697_v18, %s7189_s16  ;;  %v117_v18 = vld [vmem:[%s10976_s0 + $0x330] sm:$0xff] }
  0xdc   :  { %v6858_v22 = vpop.f32.mrf.mxu1  ;;  %7001 = vmatmul.mubr.msk.f32.gmra.mxu1 %vm207_vm1, %v1922_v17 }
  0xdd   :  { %3669 = vrot.lane.b32.xlu1 %v2687_v12, %s7189_s16  ;;  %7003 = vmatprep.mubr.msk.f32.mxu1 %vm207_vm1, %v1923_v19  ;;  %v116_v12 = vld [vmem:[%s10976_s0 + $0x328] sm:$0xff]  ;;  %v118_v19 = vld [vmem:[%s10976_s0 + $0x338] sm:$0xff] }
  0xde   :  { %v2707_v24 = vpop.f32.mrf.mxu1  ;;  %6699 = vmatmul.mubr.msk.f32.gmra.mxu0 %vm207_vm1, %v116_v12  ;;  %v128_v12 = vld [vmem:[%s10976_s0 + $0x388] sm:$0xff] }
  0xdf   :  { %3735 = vrot.lane.b32.xlu0 %v6858_v22, %s7189_s16  ;;  %6701 = vmatprep.mubr.msk.f32.mxu0 %vm207_vm1, %v117_v18  ;;  %v1945_v22 = vld [vmem:[%s10975_s1 + $0x420] sm:$0xff] }
  0xe0   :  { %v6861_v26 = vpop.f32.mrf.mxu1  ;;  %7004 = vmatmul.mubr.msk.f32.gmra.mxu1 %vm207_vm1, %v1924_v23 }
  0xe1   :  { %3703 = vrot.lane.b32.xlu1 %v6855_v16, %s7189_s16  ;;  %7006 = vmatprep.mubr.msk.f32.mxu1 %vm207_vm1, %v1925_v25  ;;  %v1944_v16 = vld [vmem:[%s10975_s1 + $0x418] sm:$0xff] }
  0xe2   :  { %v2717_v30 = vpop.f32.mrf.mxu1  ;;  %6702 = vmatmul.mubr.msk.f32.gmra.mxu0 %vm207_vm1, %v118_v19 }
  0xe4   :  { %v6864_v32 = vpop.f32.mrf.mxu1  ;;  %7007 = vmatmul.mubr.msk.f32.gmra.mxu1 %vm207_vm1, %v1926_v28 }
  0xe5   :  { %3733 = vrot.lane.b32.xlu1 %v2707_v24, %s7189_s16  ;;  %7009 = vmatprep.mubr.msk.f32.mxu1 %vm207_vm1, %v1927_v31  ;;  %v1946_v24 = vld [vmem:[%s10975_s1 + $0x428] sm:$0xff] }
  0xe6   :  { %v2727_v34 = vpop.f32.mrf.mxu1 }
  0xe7   :  { %3769 = vrot.lane.b32.xlu0 %v2727_v34, %s7189_s16  ;;  %v120_v34 = vld [vmem:[%s10976_s0 + $0x348] sm:$0xff] }
  0xe8   :  { %v6867_v36 = vpop.f32.mrf.mxu1  ;;  %7010 = vmatmul.mubr.msk.f32.gmra.mxu1 %vm207_vm1, %v1928_v33  ;;  %v119_v33 = vld [vmem:[%s10976_s0 + $0x340] sm:$0xff] }
  0xe9   :  { %3767 = vrot.lane.b32.xlu1 %v6861_v26, %s7189_s16  ;;  %7012 = vmatprep.mubr.msk.f32.mxu1 %vm207_vm1, %v1929_v35  ;;  %v8263_v26 = vpop.f32.mrf.mxu0 }
  0xea   :  { %v2737_v38 = vpop.f32.mrf.mxu1  ;;  %6704 = vmatprep.mubr.msk.f32.mxu0 %vm207_vm1, %v119_v33 }
  0xeb   :  { %3803 = vrot.lane.b32.xlu0 %v6867_v36, %s7189_s16  ;;  %v8267_v29 = vpop.f32.mrf.mxu0  ;;  %6705 = vmatmul.mubr.msk.f32.gmra.mxu0 %vm207_vm1, %v120_v34  ;;  %v1947_v36 = vld [vmem:[%s10975_s1 + $0x430] sm:$0xff] }
  0xec   :  { %v6870_v40 = vpop.f32.mrf.mxu1  ;;  %7013 = vmatmul.mubr.msk.f32.gmra.mxu1 %vm207_vm1, %v1930_v37 }
  0xed   :  { %3737 = vrot.lane.b32.xlu1 %v2717_v30, %s7189_s16  ;;  %7015 = vmatprep.mubr.msk.f32.mxu1 %vm207_vm1, %v1931_v39  ;;  %v1948_v39 = vld [vmem:[%s10975_s1 + $0x438] sm:$0xff] }
  0xee   :  { %v2747_v42 = vpop.f32.mrf.mxu1 }
  0xf0   :  { %v6873_v46 = vpop.f32.mrf.mxu1  ;;  %7016 = vmatmul.mubr.msk.f32.gmra.mxu1 %vm207_vm1, %v1932_v41  ;;  %v122_v41 = vld [vmem:[%s10976_s0 + $0x358] sm:$0xff] }
  0xf1   :  { %3771 = vrot.lane.b32.xlu1 %v6864_v32, %s7189_s16  ;;  %7018 = vmatprep.mubr.msk.f32.mxu1 %vm207_vm1, %v1933_v43  ;;  %v8275_v32 = vpop.f32.mrf.mxu0  ;;  %v1949_v43 = vld [vmem:[%s10975_s1 + $0x440] sm:$0xff] }
  0xf2   :  { %v2757_v48 = vpop.f32.mrf.mxu1 }
  0xf3   :  { %3837 = vrot.lane.b32.xlu0 %v2757_v48, %s7189_s16  ;;  %v123_v48 = vld [vmem:[%s10976_s0 + $0x360] sm:$0xff] }
  0xf4   :  { %v6876_v52 = vpop.f32.mrf.mxu1  ;;  %7019 = vmatmul.mubr.msk.f32.gmra.mxu1 %vm207_vm1, %v1934_v47 }
  0xf5   :  { %3801 = vrot.lane.b32.xlu1 %v2737_v38, %s7189_s16  ;;  %7021 = vmatprep.mubr.msk.f32.mxu1 %vm207_vm1, %v1935_v49  ;;  %v8291_v38 = vpop.f32.mrf.mxu0  ;;  %v124_v49 = vld [vmem:[%s10976_s0 + $0x368] sm:$0xff] }
  0xf6   :  { %v2767_v54 = vpop.f32.mrf.mxu1 }
  0xf7   :  { %3871 = vrot.lane.b32.xlu0 %v6876_v52, %s7189_s16  ;;  %v8313_v45 = vpop.f32.mrf.mxu0  ;;  %v1951_v52 = vld [vmem:[%s10975_s1 + $0x450] sm:$0xff] }
  0xf8   :  { %v6879_v56 = vpop.f32.mrf.mxu1  ;;  %7022 = vmatmul.mubr.msk.f32.gmra.mxu1 %vm207_vm1, %v1936_v53 }
  0xf9   :  { %3835 = vrot.lane.b32.xlu1 %v6870_v40, %s7189_s16  ;;  %7024 = vmatprep.mubr.msk.f32.mxu1 %vm207_vm1, %v1937_v55  ;;  %v121_v40 = vld [vmem:[%s10976_s0 + $0x350] sm:$0xff]  ;;  %v8333_v51 = vpop.f32.mrf.mxu0 }
  0xfa   :  { %v2777_v60 = vpop.f32.mrf.mxu1  ;;  %6707 = vmatprep.mubr.msk.f32.mxu0 %vm207_vm1, %v121_v40 }
  0xfb   :  { %6708 = vmatmul.mubr.msk.f32.gmra.mxu0 %vm207_vm1, %v122_v41  ;;  %v131_v41 = vld [vmem:[%s10976_s0 + $0x3a0] sm:$0xff] }
  0xfc   :  { %v6882_v62 = vpop.f32.mrf.mxu1  ;;  %7025 = vmatmul.mubr.msk.f32.gmra.mxu1 %vm207_vm1, %v1938_v58  ;;  %6710 = vmatprep.mubr.msk.f32.mxu0 %vm207_vm1, %v123_v48 }
  0xfd   :  { %3805 = vrot.lane.b32.xlu1 %v2747_v42, %s7189_s16  ;;  %7027 = vmatprep.mubr.msk.f32.mxu1 %vm207_vm1, %v1939_v61 }
  0xfe   :  { %v2787_v0 = vpop.f32.mrf.mxu1 }
  0xff   :  { %3905 = vrot.lane.b32.xlu0 %v2787_v0, %s7189_s16  ;;  %6711 = vmatmul.mubr.msk.f32.gmra.mxu0 %vm207_vm1, %v124_v49 }
 0x100   :  { %v6885_v1 = vpop.f32.mrf.mxu1  ;;  %7028 = vmatmul.mubr.msk.f32.gmra.mxu1 %vm207_vm1, %v1940_v63  ;;  %v125_v63 = vld [vmem:[%s10976_s0 + $0x370] sm:$0xff] }
 0x101   :  { %3839 = vrot.lane.b32.xlu1 %v6873_v46, %s7189_s16  ;;  %7030 = vmatprep.mubr.msk.f32.mxu1 %vm207_vm1, %v1941_v8  ;;  %v1950_v46 = vld [vmem:[%s10975_s1 + $0x448] sm:$0xff] }
 0x102   :  { %v2797_v2 = vpop.f32.mrf.mxu1  ;;  %6713 = vmatprep.mubr.msk.f32.mxu0 %vm207_vm1, %v125_v63  ;;  %v1954_v8 = vld [vmem:[%s10975_s1 + $0x468] sm:$0xff] }
 0x103   :  { %3939 = vrot.lane.b32.xlu0 %v6885_v1, %s7189_s16  ;;  %v126_v1 = vld [vmem:[%s10976_s0 + $0x378] sm:$0xff] }
 0x104   :  { %v6888_v3 = vpop.f32.mrf.mxu1  ;;  %7031 = vmatmul.mubr.msk.f32.gmra.mxu1 %vm207_vm1, %v1942_v10  ;;  %6714 = vmatmul.mubr.msk.f32.gmra.mxu0 %vm207_vm1, %v126_v1 }
 0x105   :  { %3869 = vrot.lane.b32.xlu1 %v2767_v54, %s7189_s16  ;;  %7033 = vmatprep.mubr.msk.f32.mxu1 %vm207_vm1, %v1943_v14  ;;  %v1952_v54 = vld [vmem:[%s10975_s1 + $0x458] sm:$0xff] }
 0x106   :  { %v2807_v4 = vpop.f32.mrf.mxu1 }
 0x108   :  { %v6891_v7 = vpop.f32.mrf.mxu1  ;;  %7034 = vmatmul.mubr.msk.f32.gmra.mxu1 %vm207_vm1, %v1944_v16  ;;  %v1955_v16 = vld [vmem:[%s10975_s1 + $0x470] sm:$0xff] }
 0x109   :  { %3903 = vrot.lane.b32.xlu1 %v6879_v56, %s7189_s16  ;;  %7036 = vmatprep.mubr.msk.f32.mxu1 %vm207_vm1, %v1945_v22  ;;  %v8347_v56 = vpop.f32.mrf.mxu0 }
 0x10a   :  { %v2817_v9 = vpop.f32.mrf.mxu1 }
 0x10b   :  { %3973 = vrot.lane.b32.xlu0 %v2817_v9, %s7189_s16  ;;  %v8353_v59 = vpop.f32.mrf.mxu0  ;;  %v127_v9 = vld [vmem:[%s10976_s0 + $0x380] sm:$0xff] }
 0x10c   :  { %v6894_v13 = vpop.f32.mrf.mxu1  ;;  %7037 = vmatmul.mubr.msk.f32.gmra.mxu1 %vm207_vm1, %v1946_v24  ;;  %6716 = vmatprep.mubr.msk.f32.mxu0 %vm207_vm1, %v127_v9  ;;  %v129_v24 = vld [vmem:[%s10976_s0 + $0x390] sm:$0xff] }
 0x10d   :  { %3873 = vrot.lane.b32.xlu1 %v2777_v60, %s7189_s16  ;;  %7039 = vmatprep.mubr.msk.f32.mxu1 %vm207_vm1, %v1947_v36 }
 0x10e   :  { %v2827_v15 = vpop.f32.mrf.mxu1  ;;  %6717 = vmatmul.mubr.msk.f32.gmra.mxu0 %vm207_vm1, %v128_v12 }
 0x10f   :  { %4007 = vrot.lane.b32.xlu0 %v6894_v13, %s7189_s16  ;;  %6719 = vmatprep.mubr.msk.f32.mxu0 %vm207_vm1, %v129_v24  ;;  %v138_v24 = vld [vmem:[%s10976_s0 + $0x3d8] sm:$0xff] }
 0x110   :  { %v6897_v17 = vpop.f32.mrf.mxu1  ;;  %7040 = vmatmul.mubr.msk.f32.gmra.mxu1 %vm207_vm1, %v1948_v39 }
 0x111   :  { %3907 = vrot.lane.b32.xlu1 %v6882_v62, %s7189_s16  ;;  %7042 = vmatprep.mubr.msk.f32.mxu1 %vm207_vm1, %v1949_v43  ;;  %v8361_v62 = vpop.f32.mrf.mxu0 }
 0x112   :  { %v2837_v20 = vpop.f32.mrf.mxu1 }
 0x114   :  { %v6900_v23 = vpop.f32.mrf.mxu1  ;;  %7043 = vmatmul.mubr.msk.f32.gmra.mxu1 %vm207_vm1, %v1950_v46 }
 0x115   :  { %3937 = vrot.lane.b32.xlu1 %v2797_v2, %s7189_s16  ;;  %7045 = vmatprep.mubr.msk.f32.mxu1 %vm207_vm1, %v1951_v52 }
 0x116   :  { %v2847_v25 = vpop.f32.mrf.mxu1 }
 0x117   :  { %4041 = vrot.lane.b32.xlu0 %v2847_v25, %s7189_s16 }
 0x118   :  { %v6903_v27 = vpop.f32.mrf.mxu1  ;;  %7046 = vmatmul.mubr.msk.f32.gmra.mxu1 %vm207_vm1, %v1952_v54  ;;  %v134_v54 = vld [vmem:[%s10976_s0 + $0x3b8] sm:$0xff] }
 0x119   :  { %3971 = vrot.lane.b32.xlu1 %v6888_v3, %s7189_s16 }
 0x11a   :  { %v2857_v28 = vpop.f32.mrf.mxu1 }
 0x11b   :  { %4075 = vrot.lane.b32.xlu0 %v6903_v27, %s7189_s16 }
 0x11c   :  { %v8270_v30 = vpop.f32.mrf.mxu1 }
 0x11d   :  { %3941 = vrot.lane.b32.xlu1 %v2807_v4, %s7189_s16  ;;  %v1953_v4 = vld [vmem:[%s10975_s1 + $0x460] sm:$0xff] }
 0x11e   :  { %v8273_v31 = vpop.f32.mrf.mxu1  ;;  %7048 = vmatprep.mubr.msk.f32.mxu1 %vm207_vm1, %v1953_v4 }
 0x11f   :  { %7049 = vmatmul.mubr.msk.f32.gmra.mxu1 %vm207_vm1, %v1954_v8 }
 0x120   :  { %v8284_v35 = vpop.f32.mrf.mxu1  ;;  %7051 = vmatprep.mubr.msk.f32.mxu1 %vm207_vm1, %v1955_v16 }
 0x121   :  { %3975 = vrot.lane.b32.xlu1 %v6891_v7, %s7189_s16  ;;  %v8379_v7 = vpop.f32.mrf.mxu0 }
 0x122   :  { %v2877_v37 = vpop.f32.mrf.mxu1 }
 0x123   :  { %4109 = vrot.lane.b32.xlu0 %v2877_v37, %s7189_s16  ;;  %v8408_v19 = vpop.f32.mrf.mxu0 }
 0x124   :  { %v6912_v42 = vpop.f32.mrf.mxu1 }
 0x125   :  { %4005 = vrot.lane.b32.xlu1 %v2827_v15, %s7189_s16 }
 0x126   :  { %v8311_v44 = vpop.f32.mrf.mxu1 }
 0x127   :  { %4143 = vrot.lane.b32.xlu0 %v6912_v42, %s7189_s16 }
 0x128   :  { %v8321_v47 = vpop.f32.mrf.mxu1 }
 0x129   :  { %4039 = vrot.lane.b32.xlu1 %v6897_v17, %s7189_s16 }
 0x12a   :  { %v8331_v50 = vpop.f32.mrf.mxu1 }
 0x12c   :  { %v8339_v53 = vpop.f32.mrf.mxu1 }
 0x12d   :  { %4009 = vrot.lane.b32.xlu1 %v2837_v20, %s7189_s16  ;;  %v1956_v20 = vld [vmem:[%s10975_s1 + $0x478] sm:$0xff] }
 0x12e   :  { %v2907_v55 = vpop.f32.mrf.mxu1  ;;  %7052 = vmatmul.mubr.msk.f32.gmra.mxu1 %vm207_vm1, %v1956_v20 }
 0x12f   :  { %4177 = vrot.lane.b32.xlu0 %v2907_v55, %s7189_s16  ;;  %v1958_v55 = vld [vmem:[%s10975_s1 + $0x488] sm:$0xff] }
 0x130   :  { %v6921_v57 = vpop.f32.mrf.mxu1 }
 0x131   :  { %4043 = vrot.lane.b32.xlu1 %v6900_v23, %s7189_s16 }
 0x132   :  { %v8351_v58 = vpop.f32.mrf.mxu1 }
 0x133   :  { %4211 = vrot.lane.b32.xlu0 %v6921_v57, %s7189_s16 }
 0x134   :  { %v8356_v60 = vpop.f32.mrf.mxu1 }
 0x135   :  { %4073 = vrot.lane.b32.xlu1 %v2857_v28, %s7189_s16  ;;  %v8432_v28 = vpop.f32.mrf.mxu0 }
 0x136   :  { %v8359_v61 = vpop.f32.mrf.mxu1 }
 0x137   :  { %v3612_v0 = vpop.permute.xlu0 %3611  ;;  %v8445_v33 = vpop.f32.mrf.mxu0 }
 0x138   :  { %v3619_v2 = vadd.f32 %v8251_v21, %v3612_v0  ;;  %v8371_v3 = vpop.f32.mrf.mxu1 }
 0x139   :  { %4107 = vrot.lane.b32.xlu1 %v8270_v30, %s7189_s16  ;;  %v8452_v36 = vpop.f32.mrf.mxu0 }
 0x13a   :  { %v3622_v5 = vadd.f32 0.033991124, %v3619_v2  ;;  %v2937_v6 = vpop.f32.mrf.mxu1 }
 0x13b   :  { %v3610_v10 = vpop.permute.xlu0 %3609  ;;  %v3632_v11 = vpop.permute.xlu1 %3631  ;;  %4245 = vrot.lane.b32.xlu0 %v2937_v6, %s7189_s16 }
 0x13c   :  { %3626 = vst.msk [vmem:[%s10977_s3 + $0x8] sm:$0xff] %vm3624_vm2, %v3622_v5  ;;  %v3618_v13 = vadd.f32 %v3610_v10, %v8263_v26  ;;  %v6930_v14 = vpop.f32.mrf.mxu1  ;;  %v3640_v15 = vadd.f32 %v8267_v29, %v3632_v11  ;;  %v130_v26 = vld [vmem:[%s10976_s0 + $0x398] sm:$0xff]  ;;  %v8458_v40 = vpop.f32.mrf.mxu0 }
 0x13d   :  { %4077 = vrot.lane.b32.xlu1 %v8273_v31, %s7189_s16  ;;  %6720 = vmatmul.mubr.msk.f32.gmra.mxu0 %vm207_vm1, %v130_v26 }
 0x13e   :  { %v3621_v17 = vadd.f32 0.033991124, %v3618_v13  ;;  %v8406_v18 = vpop.f32.mrf.mxu1  ;;  %v3643_v25 = vadd.f32 0.033991124, %v3640_v15  ;;  %6722 = vmatprep.mubr.msk.f32.mxu0 %vm207_vm1, %v131_v41  ;;  %v8474_v49 = vpop.f32.mrf.mxu0  ;;  %v141_v41 = vld [vmem:[%s10976_s0 + $0x3f0] sm:$0xff] }
 0x13f   :  { %v3614_v21 = vpop.permute.xlu1 %3613  ;;  %4279 = vrot.lane.b32.xlu0 %v6930_v14, %s7189_s16 }
 0x140   :  { %3625 = vst.msk [vmem:[%s10977_s3] sm:$0xff] %vm3624_vm2, %v3621_v17  ;;  %v3620_v22 = vadd.f32 %v3614_v21, %v8275_v32  ;;  %v8421_v23 = vpop.f32.mrf.mxu1  ;;  %v8497_v63 = vpop.f32.mrf.mxu0 }
 0x141   :  { %4111 = vrot.lane.b32.xlu1 %v8284_v35, %s7189_s16  ;;  %v8471_v46 = vpop.permute.xlu0 %3633 }
 0x142   :  { %v3623_v27 = vadd.f32 0.033991124, %v3620_v22  ;;  %v8436_v30 = vpop.f32.mrf.mxu1  ;;  %v8515_v6 = vpop.f32.mrf.mxu0 }
 0x143   :  { %v3636_v29 = vpop.permute.xlu1 %3635  ;;  %3649 = vrot.lane.b32.xlu0 %v3643_v25, %s7190_s12 }
 0x144   :  { %3627 = vst.msk [vmem:[%s10977_s3 + $0x10] sm:$0xff] %vm3624_vm2, %v3623_v27  ;;  %v3642_v31 = vadd.f32 %v8291_v38, %v3636_v29  ;;  %v8447_v35 = vpop.f32.mrf.mxu1  ;;  %v8525_v11 = vpop.f32.mrf.mxu0  ;;  %v139_v27 = vld [vmem:[%s10976_s0 + $0x3e0] sm:$0xff]  ;;  %vm4134_vm2 = vcmask 261360  }
 0x145   :  { %4141 = vrot.lane.b32.xlu1 %v8311_v44, %s7189_s16  ;;  %v132_v44 = vld [vmem:[%s10976_s0 + $0x3a8] sm:$0xff]  ;;  %v8502_v2 = vpop.permute.xlu0 %3667 }
 0x146   :  { %v3645_v32 = vadd.f32 0.033991124, %v3642_v31  ;;  %v2967_v37 = vpop.f32.mrf.mxu1  ;;  %6723 = vmatmul.mubr.msk.f32.gmra.mxu0 %vm207_vm1, %v132_v44  ;;  %v8534_v14 = vpop.f32.mrf.mxu0  ;;  %v140_v31 = vld [vmem:[%s10976_s0 + $0x3e8] sm:$0xff] }
 0x147   :  { %v3666_v34 = vpop.permute.xlu1 %3665 }
 0x148   :  { %3653 = vrot.lane.b32.xlu0 %v3645_v32, %s7190_s12  ;;  %v3674_v38 = vadd.f32 %v3666_v34, %v8347_v56  ;;  %v6939_v42 = vpop.f32.mrf.mxu1  ;;  %v8540_v17 = vpop.f32.mrf.mxu0 }
 0x149   :  { %4175 = vrot.lane.b32.xlu1 %v8321_v47, %s7189_s16 }
 0x14a   :  { %v3677_v47 = vadd.f32 0.033991124, %v3674_v38  ;;  %v8491_v56 = vpop.f32.mrf.mxu1  ;;  %v8558_v26 = vpop.f32.mrf.mxu0 }
 0x14b   :  { %v3700_v39 = vpop.permute.xlu1 %3699 }
 0x14c   :  { %4313 = vrot.lane.b32.xlu0 %v2967_v37, %s7189_s16  ;;  %v3708_v48 = vadd.f32 %v8353_v59, %v3700_v39  ;;  %v8500_v1 = vpop.f32.mrf.mxu1  ;;  %v3641_v39 = vadd.f32 %v8471_v46, %v8313_v45  ;;  %v142_v45 = vld [vmem:[%s10976_s0 + $0x3f8] sm:$0xff] }
 0x14d   :  { %4145 = vrot.lane.b32.xlu1 %v8331_v50, %s7189_s16  ;;  %v133_v50 = vld [vmem:[%s10976_s0 + $0x3b0] sm:$0xff]  ;;  %v8520_v10 = vpop.permute.xlu0 %3701 }
 0x14e   :  { %6725 = vmatprep.mubr.msk.f32.mxu0 %vm207_vm1, %v133_v50  ;;  %v3711_v57 = vadd.f32 0.033991124, %v3708_v48  ;;  %v8518_v9 = vpop.f32.mrf.mxu1  ;;  %v3675_v48 = vadd.f32 %v8333_v51, %v8502_v2  ;;  %v1962_v51 = vld [vmem:[%s10975_s1 + $0x4a8] sm:$0xff] }
 0x14f   :  { %v3670_v43 = vpop.permute.xlu1 %3669  ;;  %6726 = vmatmul.mubr.msk.f32.gmra.mxu0 %vm207_vm1, %v134_v54 }
 0x150   :  { %4347 = vrot.lane.b32.xlu0 %v6939_v42, %s7189_s16  ;;  %v3676_v59 = vadd.f32 %v3670_v43, %v8361_v62  ;;  %v136_v62 = vld [vmem:[%s10976_s0 + $0x3c8] sm:$0xff]  ;;  %v8527_v13 = vpop.f32.mrf.mxu1 }
 0x151   :  { %4179 = vrot.lane.b32.xlu1 %v8339_v53, %s7189_s16  ;;  %v1957_v53 = vld [vmem:[%s10975_s1 + $0x480] sm:$0xff] }
 0x152   :  { %7054 = vmatprep.mubr.msk.f32.mxu1 %vm207_vm1, %v1957_v53  ;;  %v3679_v4 = vadd.f32 0.033991124, %v3676_v59  ;;  %v2997_v15 = vpop.f32.mrf.mxu1 }
 0x153   :  { %v3704_v52 = vpop.permute.xlu1 %3703  ;;  %7055 = vmatmul.mubr.msk.f32.gmra.mxu1 %vm207_vm1, %v1958_v55  ;;  %v3678_v55 = vadd.f32 0.033991124, %v3675_v48 }
 0x154   :  { %3683 = vrot.lane.b32.xlu0 %v3677_v47, %s7191_s25  ;;  %v3710_v5 = vadd.f32 %v8379_v7, %v3704_v52  ;;  %v8532_v7 = vpop.permute.xlu0 %3735  ;;  %v6948_v20 = vpop.f32.mrf.mxu1  ;;  %v3644_v47 = vadd.f32 0.033991124, %v3641_v39 }
 0x155   :  { %4209 = vrot.lane.b32.xlu1 %v8351_v58, %s7189_s16  ;;  %v135_v58 = vld [vmem:[%s10976_s0 + $0x3c0] sm:$0xff] }
 0x156   :  { %6728 = vmatprep.mubr.msk.f32.mxu0 %vm207_vm1, %v135_v58  ;;  %v8569_v32 = vpop.f32.mrf.mxu1 }
 0x157   :  { %v3734_v0 = vpop.permute.xlu1 %3733  ;;  %6729 = vmatmul.mubr.msk.f32.gmra.mxu0 %vm207_vm1, %v136_v62 }
 0x158   :  { %3717 = vrot.lane.b32.xlu0 %v3711_v57, %s7192_s28  ;;  %v8580_v37 = vpop.f32.mrf.mxu1 }
 0x159   :  { %4243 = vrot.lane.b32.xlu1 %v8356_v60, %s7189_s16  ;;  %v3713_v60 = vadd.f32 0.033991124, %v3710_v5  ;;  %v8545_v21 = vpop.permute.xlu0 %3769 }
 0x15a   :  { %v8604_v46 = vpop.f32.mrf.mxu1 }
 0x15b   :  { %v3768_v8 = vpop.permute.xlu1 %3767 }
 0x15c   :  { %3687 = vrot.lane.b32.xlu0 %v3679_v4, %s7191_s25  ;;  %v3776_v25 = vadd.f32 %v8452_v36, %v3768_v8  ;;  %v8578_v36 = vpop.f32.mrf.mxu0  ;;  %v8621_v53 = vpop.f32.mrf.mxu1  ;;  %v143_v8 = vld [vmem:[%s10976_s0 + $0x400] sm:$0xff] }
 0x15d   :  { %4213 = vrot.lane.b32.xlu1 %v8359_v61, %s7189_s16  ;;  %v3742_v61 = vadd.f32 %v3734_v0, %v8445_v33 }
 0x15e   :  { %v3779_v33 = vadd.f32 0.033991124, %v3776_v25  ;;  %v8602_v44 = vpop.f32.mrf.mxu0  ;;  %v3027_v2 = vpop.f32.mrf.mxu1 }
 0x15f   :  { %v3738_v12 = vpop.permute.xlu1 %3737 }
 0x160   :  { %3721 = vrot.lane.b32.xlu0 %v3713_v60, %s7192_s28  ;;  %v3744_v34 = vadd.f32 %v3738_v12, %v8458_v40  ;;  %v1959_v40 = vld [vmem:[%s10975_s1 + $0x490] sm:$0xff]  ;;  %v8619_v54 = vpop.f32.mrf.mxu0  ;;  %v6957_v60 = vpop.f32.mrf.mxu1 }
 0x161   :  { %4247 = vrot.lane.b32.xlu1 %v8371_v3, %s7189_s16  ;;  %v137_v3 = vld [vmem:[%s10976_s0 + $0x3d0] sm:$0xff]  ;;  %7057 = vmatprep.mubr.msk.f32.mxu1 %vm207_vm1, %v1959_v40 }
 0x162   :  { %6731 = vmatprep.mubr.msk.f32.mxu0 %vm207_vm1, %v137_v3  ;;  %v3747_v42 = vadd.f32 0.033991124, %v3744_v34  ;;  %v8634_v0 = vpop.f32.mrf.mxu0 }
 0x163   :  { %v3772_v16 = vpop.permute.xlu1 %3771  ;;  %6732 = vmatmul.mubr.msk.f32.gmra.mxu0 %vm207_vm1, %v138_v24  ;;  %v8675_v24 = vpop.f32.mrf.mxu1 }
 0x164   :  { %4381 = vrot.lane.b32.xlu0 %v2997_v15, %s7189_s16  ;;  %6734 = vmatprep.mubr.msk.f32.mxu0 %vm207_vm1, %v139_v27  ;;  %v3778_v43 = vadd.f32 %v8474_v49, %v3772_v16  ;;  %v1961_v49 = vld [vmem:[%s10975_s1 + $0x4a0] sm:$0xff]  ;;  %v8645_v5 = vpop.f32.mrf.mxu0  ;;  %v144_v15 = vld [vmem:[%s10976_s0 + $0x408] sm:$0xff] }
 0x165   :  { %4277 = vrot.lane.b32.xlu1 %v8406_v18, %s7189_s16  ;;  %v3745_v18 = vadd.f32 0.033991124, %v3742_v61  ;;  %v8687_v27 = vpop.f32.mrf.mxu1 }
 0x166   :  { %v3781_v52 = vadd.f32 0.033991124, %v3778_v43  ;;  %v8664_v61 = vpop.f32.mrf.mxu0 }
 0x167   :  { %v8547_v22 = vpop.permute.xlu1 %3801  ;;  %6735 = vmatmul.mubr.msk.f32.gmra.mxu0 %vm207_vm1, %v140_v31  ;;  %v8706_v34 = vpop.f32.mrf.mxu1 }
 0x168   :  { %4415 = vrot.lane.b32.xlu0 %v6948_v20, %s7189_s16  ;;  %6737 = vmatprep.mubr.msk.f32.mxu0 %vm207_vm1, %v141_v41  ;;  %v3810_v4 = vadd.f32 %v8547_v22, %v8525_v11  ;;  %v145_v20 = vld [vmem:[%s10976_s0 + $0x410] sm:$0xff]  ;;  %v146_v22 = vld [vmem:[%s10976_s0 + $0x418] sm:$0xff]  ;;  %v8685_v25 = vpop.f32.mrf.mxu0 }
 0x169   :  { %4311 = vrot.lane.b32.xlu1 %v8421_v23, %s7189_s16  ;;  %v8573_v23 = vpop.permute.xlu0 %3803  ;;  %v8719_v40 = vpop.f32.mrf.mxu1 }
 0x16a   :  { %v3813_v11 = vadd.f32 0.033991124, %v3810_v4 }
 0x16b   :  { %v8563_v29 = vpop.permute.xlu1 %3835  ;;  %6738 = vmatmul.mubr.msk.f32.gmra.mxu0 %vm207_vm1, %v142_v45 }
 0x16c   :  { %3751 = vrot.lane.b32.xlu0 %v3745_v18, %s7193_s15  ;;  %6740 = vmatprep.mubr.msk.f32.mxu0 %vm207_vm1, %v143_v8  ;;  %v3844_v16 = vadd.f32 %v8534_v14, %v8563_v29  ;;  %v3709_v29 = vadd.f32 %v8520_v10, %v8408_v19  ;;  %v8704_v10 = vpop.f32.mrf.mxu0  ;;  %v151_v8 = vld [vmem:[%s10976_s0 + $0x440] sm:$0xff] }
 0x16d   :  { %4281 = vrot.lane.b32.xlu1 %v8436_v30, %s7189_s16  ;;  %v8590_v30 = vpop.permute.xlu0 %3837 }
 0x16e   :  { %v3847_v14 = vadd.f32 0.033991124, %v3844_v16  ;;  %v3712_v39 = vadd.f32 0.033991124, %v3709_v29 }
 0x16f   :  { %v8584_v38 = vpop.permute.xlu1 %3805  ;;  %6741 = vmatmul.mubr.msk.f32.gmra.mxu0 %vm207_vm1, %v144_v15  ;;  %v152_v15 = vld [vmem:[%s10976_s0 + $0x448] sm:$0xff] }
 0x170   :  { %3785 = vrot.lane.b32.xlu0 %v3779_v33, %s7194_s17  ;;  %6743 = vmatprep.mubr.msk.f32.mxu0 %vm207_vm1, %v145_v20  ;;  %v3812_v18 = vadd.f32 %v8584_v38, %v8540_v17  ;;  %v148_v17 = vld [vmem:[%s10976_s0 + $0x428] sm:$0xff]  ;;  %v3743_v38 = vadd.f32 %v8432_v28, %v8532_v7  ;;  %v3057_v7 = vpop.f32.mrf.mxu1 }
 0x171   :  { %4315 = vrot.lane.b32.xlu1 %v8447_v35, %s7189_s16  ;;  %v1960_v35 = vld [vmem:[%s10975_s1 + $0x498] sm:$0xff]  ;;  %v8627_v57 = vpop.permute.xlu0 %3871 }
 0x172   :  { %7058 = vmatmul.mubr.msk.f32.gmra.mxu1 %vm207_vm1, %v1960_v35  ;;  %v3815_v33 = vadd.f32 0.033991124, %v3812_v18 }
 0x173   :  { %v3840_v50 = vpop.permute.xlu1 %3839  ;;  %7060 = vmatprep.mubr.msk.f32.mxu1 %vm207_vm1, %v1961_v49  ;;  %6744 = vmatmul.mubr.msk.f32.gmra.mxu0 %vm207_vm1, %v146_v22 }
 0x174   :  { %3755 = vrot.lane.b32.xlu0 %v3747_v42, %s7193_s15  ;;  %v3846_v19 = vadd.f32 %v8558_v26, %v3840_v50  ;;  %v8717_v26 = vpop.f32.mrf.mxu0  ;;  %v3746_v42 = vadd.f32 0.033991124, %v3743_v38 }
 0x175   :  { %3651 = vrot.lane.b32.xlu1 %v3644_v47, %s7190_s12  ;;  %v8636_v58 = vpop.permute.xlu0 %3905  ;;  %s7205_s12 = smov 32  }
 0x176   :  { %7061 = vmatmul.mubr.msk.f32.gmra.mxu1 %vm207_vm1, %v1962_v51  ;;  %v3849_v45 = vadd.f32 0.033991124, %v3846_v19  ;;  %v8727_v28 = vpop.f32.mrf.mxu0  ;;  %v6966_v51 = vpop.f32.mrf.mxu1 }
 0x177   :  { %v8629_v59 = vpop.permute.xlu1 %3869 }
 0x178   :  { %3789 = vrot.lane.b32.xlu0 %v3781_v52, %s7194_s17  ;;  %v3878_v50 = vadd.f32 %v8629_v59, %v8619_v54  ;;  %v8738_v49 = vpop.f32.mrf.mxu0  ;;  %v149_v52 = vld [vmem:[%s10976_s0 + $0x430] sm:$0xff] }
 0x179   :  { %3685 = vrot.lane.b32.xlu1 %v3678_v55, %s7191_s25  ;;  %s7216_s25 = smov 54  }
 0x17a   :  { %v3881_v54 = vadd.f32 0.033991124, %v3878_v50  ;;  %v8757_v4 = vpop.f32.mrf.mxu0 }
 0x17b   :  { %v8638_v62 = vpop.permute.xlu1 %3903 }
 0x17c   :  { %4449 = vrot.lane.b32.xlu0 %v3027_v2, %s7189_s16  ;;  %v150_v2 = vld [vmem:[%s10976_s0 + $0x438] sm:$0xff]  ;;  %v3912_v59 = vadd.f32 %v8634_v0, %v8638_v62  ;;  %v8781_v16 = vpop.f32.mrf.mxu0 }
 0x17d   :  { %4345 = vrot.lane.b32.xlu1 %v8491_v56, %s7189_s16  ;;  %v8658_v56 = vpop.permute.xlu0 %3939  ;;  %v1964_v0 = vld [vmem:[%s10975_s1 + $0x4b8] sm:$0xff] }
 0x17e   :  { %v3915_v62 = vadd.f32 0.033991124, %v3912_v59 }
 0x17f   :  { %v8650_v12 = vpop.permute.xlu1 %3873 }
 0x180   :  { %4483 = vrot.lane.b32.xlu0 %v6957_v60, %s7189_s16  ;;  %v3880_v20 = vadd.f32 %v8650_v12, %v8645_v5  ;;  %v8804_v5 = vpop.f32.mrf.mxu0 }
 0x181   :  { %4379 = vrot.lane.b32.xlu1 %v8500_v1, %s7189_s16  ;;  %v8679_v1 = vpop.permute.xlu0 %3973 }
 0x183   :  { %v8669_v3 = vpop.permute.xlu1 %3907 }
 0x184   :  { %3819 = vrot.lane.b32.xlu0 %v3813_v11, %s7195_s10  ;;  %v8771_v11 = vpop.f32.mrf.mxu1  ;;  %v3914_v12 = vadd.f32 %v8664_v61, %v8669_v3 }
 0x185   :  { %4349 = vrot.lane.b32.xlu1 %v8518_v9, %s7189_s16  ;;  %v147_v9 = vld [vmem:[%s10976_s0 + $0x420] sm:$0xff] }
 0x186   :  { %6746 = vmatprep.mubr.msk.f32.mxu0 %vm207_vm1, %v147_v9  ;;  %v8785_v22 = vpop.f32.mrf.mxu1  ;;  %v3917_v38 = vadd.f32 0.033991124, %v3914_v12 }
 0x187   :  { %v8691_v31 = vpop.permute.xlu1 %3937  ;;  %6747 = vmatmul.mubr.msk.f32.gmra.mxu0 %vm207_vm1, %v148_v17 }
 0x188   :  { %3853 = vrot.lane.b32.xlu0 %v3847_v14, %s7196_s11  ;;  %6749 = vmatprep.mubr.msk.f32.mxu0 %vm207_vm1, %v149_v52  ;;  %v3777_v14 = vadd.f32 %v8545_v21, %v8497_v63  ;;  %v154_v63 = vld [vmem:[%s10976_s0 + $0x458] sm:$0xff]  ;;  %v3883_v21 = vadd.f32 0.033991124, %v3880_v20  ;;  %v8808_v9 = vpop.f32.mrf.mxu1  ;;  %v1966_v20 = vld [vmem:[%s10975_s1 + $0x4c8] sm:$0xff] }
 0x189   :  { %4383 = vrot.lane.b32.xlu1 %v8527_v13, %s7189_s16  ;;  %v8711_v13 = vpop.permute.xlu0 %4007 }
 0x18a   :  { %v3780_v17 = vadd.f32 0.033991124, %v3777_v14 }
 0x18b   :  { %v8713_v41 = vpop.permute.xlu1 %3971  ;;  %6750 = vmatmul.mubr.msk.f32.gmra.mxu0 %vm207_vm1, %v150_v2  ;;  %v155_v2 = vld [vmem:[%s10976_s0 + $0x460] sm:$0xff] }
 0x18c   :  { %3823 = vrot.lane.b32.xlu0 %v3815_v33, %s7195_s10  ;;  %6752 = vmatprep.mubr.msk.f32.mxu0 %vm207_vm1, %v151_v8  ;;  %v156_v8 = vld [vmem:[%s10976_s0 + $0x468] sm:$0xff] }
 0x18d   :  { %3719 = vrot.lane.b32.xlu1 %v3712_v39, %s7192_s28  ;;  %v8721_v43 = vpop.permute.xlu0 %4041  ;;  %v8819_v39 = vpop.f32.mrf.mxu0  ;;  %s7199_s28 = smov 20  }
 0x18f   :  { %v8723_v35 = vpop.permute.xlu1 %3941  ;;  %6753 = vmatmul.mubr.msk.f32.gmra.mxu0 %vm207_vm1, %v152_v15  ;;  %v3980_v15 = vadd.f32 %v8727_v28, %v8713_v41 }
 0x190   :  { %3857 = vrot.lane.b32.xlu0 %v3849_v45, %s7196_s11  ;;  %v8823_v45 = vpop.f32.mrf.mxu1 }
 0x191   :  { %3753 = vrot.lane.b32.xlu1 %v3746_v42, %s7193_s15  ;;  %v8732_v48 = vpop.permute.xlu0 %4075  ;;  %s7227_s15 = smov 76  }
 0x193   :  { %v8729_v47 = vpop.permute.xlu1 %3975 }
 0x194   :  { %4517 = vrot.lane.b32.xlu0 %v3057_v7, %s7189_s16 }
 0x195   :  { %4413 = vrot.lane.b32.xlu1 %v8569_v32, %s7189_s16  ;;  %v8751_v32 = vpop.permute.xlu0 %4109 }
 0x197   :  { %v8743_v55 = vpop.permute.xlu1 %4005 }
 0x198   :  { %4551 = vrot.lane.b32.xlu0 %v6966_v51, %s7189_s16  ;;  %v3946_v51 = vadd.f32 %v8691_v31, %v8717_v26 }
 0x199   :  { %4447 = vrot.lane.b32.xlu1 %v8580_v37, %s7189_s16  ;;  %v1963_v37 = vld [vmem:[%s10975_s1 + $0x4b0] sm:$0xff]  ;;  %v8790_v18 = vpop.permute.xlu0 %4143 }
 0x19a   :  { %7063 = vmatprep.mubr.msk.f32.mxu1 %vm207_vm1, %v1963_v37  ;;  %v3949_v31 = vadd.f32 0.033991124, %v3946_v51  ;;  %v157_v37 = vld [vmem:[%s10976_s0 + $0x470] sm:$0xff] }
 0x19b   :  { %v8762_v60 = vpop.permute.xlu1 %4039  ;;  %7064 = vmatmul.mubr.msk.f32.gmra.mxu1 %vm207_vm1, %v1964_v0 }
 0x19c   :  { %3887 = vrot.lane.b32.xlu0 %v3881_v54, %s7197_s29 }
 0x19d   :  { %4417 = vrot.lane.b32.xlu1 %v8604_v46, %s7189_s16  ;;  %v153_v46 = vld [vmem:[%s10976_s0 + $0x450] sm:$0xff] }
 0x19e   :  { %6755 = vmatprep.mubr.msk.f32.mxu0 %vm207_vm1, %v153_v46  ;;  %v3983_v46 = vadd.f32 0.033991124, %v3980_v15 }
 0x19f   :  { %v8792_v29 = vpop.permute.xlu1 %4009  ;;  %6756 = vmatmul.mubr.msk.f32.gmra.mxu0 %vm207_vm1, %v154_v63  ;;  %v3948_v63 = vadd.f32 %v8723_v35, %v8738_v49 }
 0x1a0   :  { %3921 = vrot.lane.b32.xlu0 %v3915_v62, %s7198_s4  ;;  %6758 = vmatprep.mubr.msk.f32.mxu0 %vm207_vm1, %v155_v2  ;;  %v158_v62 = vld [vmem:[%s10976_s0 + $0x478] sm:$0xff] }
 0x1a1   :  { %4451 = vrot.lane.b32.xlu1 %v8621_v53, %s7189_s16  ;;  %v3811_v53 = vadd.f32 %v8515_v6, %v8573_v23  ;;  %v8813_v33 = vpop.permute.xlu0 %4177  ;;  %v8829_v6 = vpop.f32.mrf.mxu0  ;;  %v3951_v49 = vadd.f32 0.033991124, %v3948_v63 }
 0x1a2   :  { %v3087_v23 = vpop.f32.mrf.mxu1  ;;  %v4048_v63 = vadd.f32 %v8829_v6, %v8762_v60 }
 0x1a3   :  { %v8815_v19 = vpop.permute.xlu1 %4043  ;;  %v3814_v61 = vadd.f32 0.033991124, %v3811_v53  ;;  %v8838_v52 = vpop.f32.mrf.mxu0  ;;  %6759 = vmatmul.mubr.msk.f32.gmra.mxu0 %vm207_vm1, %v156_v8 }
 0x1a4   :  { %3891 = vrot.lane.b32.xlu0 %v3883_v21, %s7197_s29  ;;  %v6975_v54 = vpop.f32.mrf.mxu1  ;;  %6761 = vmatprep.mubr.msk.f32.mxu0 %vm207_vm1, %v157_v37  ;;  %v4051_v60 = vadd.f32 0.033991124, %v4048_v63  ;;  %v4016_v6 = vadd.f32 %v8792_v29, %v8838_v52 }
 0x1a5   :  { %3787 = vrot.lane.b32.xlu1 %v3780_v17, %s7194_s17  ;;  %v8826_v42 = vpop.permute.xlu0 %4211  ;;  %v8857_v26 = vpop.f32.mrf.mxu0  ;;  %v3982_v17 = vadd.f32 %v8757_v4, %v8729_v47  ;;  %v1968_v4 = vld [vmem:[%s10975_s1 + $0x4d8] sm:$0xff]  ;;  %s7220_s17 = smov 62  }
 0x1a6   :  { %v8875_v41 = vpop.f32.mrf.mxu1 }
 0x1a7   :  { %v8821_v3 = vpop.permute.xlu1 %4073  ;;  %6762 = vmatmul.mubr.msk.f32.gmra.mxu0 %vm207_vm1, %v158_v62  ;;  %v8883_v14 = vpop.f32.mrf.mxu0  ;;  %v4014_v62 = vadd.f32 %v8743_v55, %v8819_v39  ;;  %v160_v55 = vld [vmem:[%s10976_s0 + $0x488] sm:$0xff] }
 0x1a8   :  { %3925 = vrot.lane.b32.xlu0 %v3917_v38, %s7198_s4  ;;  %v8896_v12 = vpop.f32.mrf.mxu1 }
 0x1a9   :  { %3821 = vrot.lane.b32.xlu1 %v3814_v61, %s7195_s10  ;;  %v8901_v35 = vpop.f32.mrf.mxu0  ;;  %s7243_s10 = smov 108  }
 0x1aa   :  { %v8913_v61 = vpop.f32.mrf.mxu1 }
 0x1ab   :  { %v8831_v7 = vpop.permute.xlu1 %4107  ;;  %v8920_v47 = vpop.f32.mrf.mxu0 }
 0x1ac   :  { %4585 = vrot.lane.b32.xlu0 %v3087_v23, %s7189_s16  ;;  %v8930_v2 = vpop.f32.mrf.mxu1 }
 0x1ad   :  { %v8834_v50 = vpop.permute.xlu0 %4245  ;;  %4481 = vrot.lane.b32.xlu1 %v8675_v24, %s7189_s16 }
 0x1af   :  { %v8845_v59 = vpop.permute.xlu1 %4077 }
 0x1b0   :  { %4619 = vrot.lane.b32.xlu0 %v6975_v54, %s7189_s16  ;;  %v8935_v54 = vpop.f32.mrf.mxu0 }
 0x1b1   :  { %v8853_v24 = vpop.permute.xlu0 %4279  ;;  %4515 = vrot.lane.b32.xlu1 %v8687_v27, %s7189_s16  ;;  %v1965_v27 = vld [vmem:[%s10975_s1 + $0x4c0] sm:$0xff] }
 0x1b2   :  { %7066 = vmatprep.mubr.msk.f32.mxu1 %vm207_vm1, %v1965_v27  ;;  %v8944_v37 = vpop.f32.mrf.mxu0 }
 0x1b3   :  { %v8864_v0 = vpop.permute.xlu1 %4111  ;;  %7067 = vmatmul.mubr.msk.f32.gmra.mxu1 %vm207_vm1, %v1966_v20 }
 0x1b4   :  { %3955 = vrot.lane.b32.xlu0 %v3949_v31, %s7199_s28  ;;  %v3117_v31 = vpop.f32.mrf.mxu1  ;;  %v8964_v39 = vpop.f32.mrf.mxu0 }
 0x1b5   :  { %v3650_v28 = vpop.permute.xlu0 %3649  ;;  %4485 = vrot.lane.b32.xlu1 %v8706_v34, %s7189_s16  ;;  %v3845_v34 = vadd.f32 %v8590_v30, %v8578_v36  ;;  %v3879_v36 = vadd.f32 %v8602_v44, %v8627_v57  ;;  %v3985_v44 = vadd.f32 0.033991124, %v3982_v17 }
 0x1b6   :  { %3659 = vst.msk [vmem:[%s10977_s3] sm:$0xff] %vm3658_vm3, %v3650_v28  ;;  %v6984_v28 = vpop.f32.mrf.mxu1  ;;  %v8980_v17 = vpop.f32.mrf.mxu0 }
 0x1b7   :  { %v8894_v21 = vpop.permute.xlu1 %4141  ;;  %v3848_v38 = vadd.f32 0.033991124, %v3845_v34  ;;  %v3882_v23 = vadd.f32 0.033991124, %v3879_v36 }
 0x1b8   :  { %3989 = vrot.lane.b32.xlu0 %v3983_v46, %s7200_s24  ;;  %v4017_v46 = vadd.f32 0.033991124, %v4014_v62  ;;  %v8997_v29 = vpop.f32.mrf.mxu0  ;;  %v1969_v62 = vld [vmem:[%s10975_s1 + $0x4e0] sm:$0xff] }
 0x1b9   :  { %4519 = vrot.lane.b32.xlu1 %v8719_v40, %s7189_s16  ;;  %v1967_v40 = vld [vmem:[%s10975_s1 + $0x4d0] sm:$0xff] }
 0x1ba   :  { %v3654_v53 = vpop.permute.xlu0 %3653  ;;  %7069 = vmatprep.mubr.msk.f32.mxu1 %vm207_vm1, %v1967_v40 }
 0x1bb   :  { %3661 = vst.msk [vmem:[%s10977_s3 + $0x10] sm:$0xff] %vm3658_vm3, %v3654_v53  ;;  %v8911_v30 = vpop.permute.xlu1 %4175  ;;  %7070 = vmatmul.mubr.msk.f32.gmra.mxu1 %vm207_vm1, %v1968_v4 }
 0x1bc   :  { %3959 = vrot.lane.b32.xlu0 %v3951_v49, %s7199_s28  ;;  %v8976_v49 = vpop.f32.mrf.mxu1  ;;  %7072 = vmatprep.mubr.msk.f32.mxu1 %vm207_vm1, %v1969_v62 }
 0x1bd   :  { %3855 = vrot.lane.b32.xlu1 %v3848_v38, %s7196_s11  ;;  %v3913_v38 = vadd.f32 %v8636_v58, %v8685_v25  ;;  %v4050_v58 = vadd.f32 %v8857_v26, %v8815_v19 }
 0x1be   :  { %v8922_v57 = vpop.permute.xlu0 %4313  ;;  %v8992_v40 = vpop.f32.mrf.mxu1 }
 0x1bf   :  { %v8928_v51 = vpop.permute.xlu1 %4145  ;;  %v3916_v52 = vadd.f32 0.033991124, %v3913_v38  ;;  %v4053_v19 = vadd.f32 0.033991124, %v4050_v58 }
 0x1c0   :  { %3993 = vrot.lane.b32.xlu0 %v3985_v44, %s7200_s24  ;;  %v3947_v44 = vadd.f32 %v8704_v10, %v8658_v56 }
 0x1c1   :  { %3889 = vrot.lane.b32.xlu1 %v3882_v23, %s7197_s29  ;;  %v9009_v23 = vpop.f32.mrf.mxu1 }
 0x1c2   :  { %v8937_v8 = vpop.permute.xlu0 %4347 }
 0x1c3   :  { %v8939_v15 = vpop.permute.xlu1 %4179  ;;  %v9019_v10 = vpop.f32.mrf.mxu1 }
 0x1c4   :  { %4653 = vrot.lane.b32.xlu0 %v3117_v31, %s7189_s16  ;;  %v3950_v31 = vadd.f32 0.033991124, %v3947_v44 }
 0x1c5   :  { %4549 = vrot.lane.b32.xlu1 %v8771_v11, %s7189_s16  ;;  %v159_v11 = vld [vmem:[%s10976_s0 + $0x480] sm:$0xff] }
 0x1c6   :  { %v3684_v27 = vpop.permute.xlu0 %3683  ;;  %6764 = vmatprep.mubr.msk.f32.mxu0 %vm207_vm1, %v159_v11 }
 0x1c7   :  { %3693 = vst.msk [vmem:[%s10977_s3] sm:$0xff] %vm3692_vm4, %v3684_v27  ;;  %v8952_v20 = vpop.permute.xlu1 %4209  ;;  %6765 = vmatmul.mubr.msk.f32.gmra.mxu0 %vm207_vm1, %v160_v55  ;;  %v1970_v27 = vld [vmem:[%s10975_s1 + $0x4e8] sm:$0xff]  ;;  %v3147_v55 = vpop.f32.mrf.mxu1 }
 0x1c8   :  { %4687 = vrot.lane.b32.xlu0 %v6984_v28, %s7189_s16  ;;  %7073 = vmatmul.mubr.msk.f32.gmra.mxu1 %vm207_vm1, %v1970_v27 }
 0x1c9   :  { %4583 = vrot.lane.b32.xlu1 %v8785_v22, %s7189_s16 }
 0x1ca   :  { %v3718_v34 = vpop.permute.xlu0 %3717 }
 0x1cb   :  { %3727 = vst.msk [vmem:[%s10977_s3] sm:$0xff] %vm3726_vm5, %v3718_v34  ;;  %v8973_v22 = vpop.permute.xlu1 %4243  ;;  %v4082_v34 = vadd.f32 %v8821_v3, %v8920_v47  ;;  %v4116_v3 = vadd.f32 %v8935_v54, %v8831_v7  ;;  %v1972_v7 = vld [vmem:[%s10975_s1 + $0x4f8] sm:$0xff] }
 0x1cc   :  { %4023 = vrot.lane.b32.xlu0 %v4017_v46, %s7201_s13 }
 0x1cd   :  { %4553 = vrot.lane.b32.xlu1 %v8808_v9, %s7189_s16  ;;  %v4019_v9 = vadd.f32 0.033991124, %v4016_v6  ;;  %v6993_v6 = vpop.f32.mrf.mxu1  ;;  %v4085_v38 = vadd.f32 0.033991124, %v4082_v34 }
 0x1ce   :  { %v3688_v53 = vpop.permute.xlu0 %3687 }
 0x1cf   :  { %3695 = vst.msk [vmem:[%s10977_s3 + $0x10] sm:$0xff] %vm3692_vm4, %v3688_v53  ;;  %v8990_v36 = vpop.permute.xlu1 %4213  ;;  %v9067_v58 = vpop.f32.mrf.mxu1 }
 0x1d0   :  { %4057 = vrot.lane.b32.xlu0 %v4051_v60, %s7202_s19 }
 0x1d1   :  { %4587 = vrot.lane.b32.xlu1 %v8823_v45, %s7189_s16  ;;  %v9013_v45 = vpop.f32.mrf.mxu0  ;;  %v9089_v62 = vpop.f32.mrf.mxu1 }
 0x1d2   :  { %v3722_v25 = vpop.permute.xlu0 %3721 }
 0x1d3   :  { %3729 = vst.msk [vmem:[%s10977_s3 + $0x10] sm:$0xff] %vm3726_vm5, %v3722_v25  ;;  %v9007_v4 = vpop.permute.xlu1 %4247  ;;  %v9030_v28 = vpop.f32.mrf.mxu0  ;;  %v4119_v25 = vadd.f32 0.033991124, %v4116_v3 }
 0x1d4   :  { %4027 = vrot.lane.b32.xlu0 %v4019_v9, %s7201_s13 }
 0x1d5   :  { %3923 = vrot.lane.b32.xlu1 %v3916_v52, %s7198_s4  ;;  %v9040_v63 = vpop.f32.mrf.mxu0  ;;  %v4084_v52 = vadd.f32 %v8845_v59, %v8944_v37  ;;  %v162_v59 = vld [vmem:[%s10976_s0 + $0x498] sm:$0xff]  ;;  %v4118_v37 = vadd.f32 %v8964_v39, %v8864_v0  ;;  %v164_v0 = vld [vmem:[%s10976_s0 + $0x4a8] sm:$0xff]  ;;  %s7207_s4 = smov 36  }
 0x1d6   :  { %v9015_v26 = vpop.permute.xlu0 %4381 }
 0x1d7   :  { %v9017_v56 = vpop.permute.xlu1 %4277 }
 0x1d8   :  { %4061 = vrot.lane.b32.xlu0 %v4053_v19, %s7202_s19  ;;  %v161_v19 = vld [vmem:[%s10976_s0 + $0x490] sm:$0xff] }
 0x1d9   :  { %3957 = vrot.lane.b32.xlu1 %v3950_v31, %s7199_s28  ;;  %6767 = vmatprep.mubr.msk.f32.mxu0 %vm207_vm1, %v161_v19  ;;  %v4150_v19 = vadd.f32 %v8894_v21, %v9013_v45  ;;  %v4184_v21 = vadd.f32 %v9030_v28, %v8911_v30  ;;  %v4152_v30 = vadd.f32 %v8928_v51, %v9040_v63  ;;  %s7210_s28 = smov 42  }
 0x1da   :  { %v9032_v11 = vpop.permute.xlu0 %4415  ;;  %6768 = vmatmul.mubr.msk.f32.gmra.mxu0 %vm207_vm1, %v162_v59 }
 0x1db   :  { %v9035_v46 = vpop.permute.xlu1 %4311 }
 0x1dc   :  { %4721 = vrot.lane.b32.xlu0 %v3147_v55, %s7189_s16  ;;  %v163_v55 = vld [vmem:[%s10976_s0 + $0x4a0] sm:$0xff] }
 0x1dd   :  { %4617 = vrot.lane.b32.xlu1 %v8875_v41, %s7189_s16  ;;  %v9053_v41 = vpop.f32.mrf.mxu0  ;;  %6770 = vmatprep.mubr.msk.f32.mxu0 %vm207_vm1, %v163_v55  ;;  %v4187_v55 = vadd.f32 0.033991124, %v4184_v21 }
 0x1de   :  { %v3752_v60 = vpop.permute.xlu0 %3751  ;;  %6771 = vmatmul.mubr.msk.f32.gmra.mxu0 %vm207_vm1, %v164_v0  ;;  %v4186_v51 = vadd.f32 %v9053_v41, %v8939_v15 }
 0x1df   :  { %3761 = vst.msk [vmem:[%s10977_s3] sm:$0xff] %vm3760_vm6, %v3752_v60  ;;  %v9048_v53 = vpop.permute.xlu1 %4281  ;;  %v9075_v54 = vpop.f32.mrf.mxu0  ;;  %v4015_v60 = vadd.f32 %v8804_v5, %v8711_v13  ;;  %v4121_v5 = vadd.f32 0.033991124, %v4118_v37 }
 0x1e0   :  { %4755 = vrot.lane.b32.xlu0 %v6993_v6, %s7189_s16  ;;  %v9116_v6 = vpop.f32.mrf.mxu1 }
 0x1e1   :  { %4651 = vrot.lane.b32.xlu1 %v8896_v12, %s7189_s16  ;;  %v1971_v12 = vld [vmem:[%s10975_s1 + $0x4f0] sm:$0xff] }
 0x1e2   :  { %v3786_v47 = vpop.permute.xlu0 %3785  ;;  %7075 = vmatprep.mubr.msk.f32.mxu1 %vm207_vm1, %v1971_v12  ;;  %v9133_v3 = vpop.f32.mrf.mxu1 }
 0x1e3   :  { %3795 = vst.msk [vmem:[%s10977_s3] sm:$0xff] %vm3794_vm7, %v3786_v47  ;;  %v9061_v9 = vpop.permute.xlu1 %4315  ;;  %7076 = vmatmul.mubr.msk.f32.gmra.mxu1 %vm207_vm1, %v1972_v7 }
 0x1e4   :  { %4091 = vrot.lane.b32.xlu0 %v4085_v38, %s7203_s30  ;;  %v4018_v38 = vadd.f32 0.033991124, %v4015_v60 }
 0x1e5   :  { %4621 = vrot.lane.b32.xlu1 %v8913_v61, %s7189_s16  ;;  %v3981_v61 = vadd.f32 %v8679_v1, %v8781_v16  ;;  %v9103_v1 = vpop.f32.mrf.mxu0  ;;  %v4087_v16 = vadd.f32 0.033991124, %v4084_v52 }
 0x1e6   :  { %v3756_v44 = vpop.permute.xlu0 %3755 }
 0x1e7   :  { %3763 = vst.msk [vmem:[%s10977_s3 + $0x10] sm:$0xff] %vm3760_vm6, %v3756_v44  ;;  %v3652_v31 = vpop.permute.xlu1 %3651  ;;  %v3984_v34 = vadd.f32 0.033991124, %v3981_v61  ;;  %v9129_v13 = vpop.f32.mrf.mxu0 }
 0x1e8   :  { %3660 = vst.msk [vmem:[%s10977_s3 + $0x8] sm:$0xff] %vm3658_vm3, %v3652_v31  ;;  %4125 = vrot.lane.b32.xlu0 %v4119_v25, %s7204_s18  ;;  %v3177_v25 = vpop.f32.mrf.mxu1  ;;  %vm4168_vm3 = vcmask 277760  }
 0x1e9   :  { %4655 = vrot.lane.b32.xlu1 %v8930_v2, %s7189_s16  ;;  %v9139_v12 = vpop.f32.mrf.mxu0 }
 0x1ea   :  { %v3790_v27 = vpop.permute.xlu0 %3789  ;;  %v7002_v31 = vpop.f32.mrf.mxu1 }
 0x1eb   :  { %3797 = vst.msk [vmem:[%s10977_s3 + $0x10] sm:$0xff] %vm3794_vm7, %v3790_v27  ;;  %v3686_v2 = vpop.permute.xlu1 %3685  ;;  %v9148_v44 = vpop.f32.mrf.mxu0 }
 0x1ec   :  { %3694 = vst.msk [vmem:[%s10977_s3 + $0x8] sm:$0xff] %vm3692_vm4, %v3686_v2  ;;  %4095 = vrot.lane.b32.xlu0 %v4087_v16, %s7203_s30  ;;  %v4153_v16 = vadd.f32 0.033991124, %v4150_v19  ;;  %v9172_v27 = vpop.f32.mrf.mxu1  ;;  %vm4202_vm4 = vcmask 294160  }
 0x1ed   :  { %3991 = vrot.lane.b32.xlu1 %v3984_v34, %s7200_s24  ;;  %v4049_v34 = vadd.f32 %v8721_v43, %v8883_v14  ;;  %v4155_v14 = vadd.f32 0.033991124, %v4152_v30 }
 0x1ee   :  { %v9131_v39 = vpop.permute.xlu0 %4449  ;;  %v9186_v2 = vpop.f32.mrf.mxu1 }
 0x1ef   :  { %v9135_v47 = vpop.permute.xlu1 %4345  ;;  %v4052_v63 = vadd.f32 0.033991124, %v4049_v34 }
 0x1f0   :  { %4129 = vrot.lane.b32.xlu0 %v4121_v5, %s7204_s18  ;;  %v4083_v5 = vadd.f32 %v8901_v35, %v8732_v48  ;;  %v4189_v48 = vadd.f32 0.033991124, %v4186_v51 }
 0x1f1   :  { %4025 = vrot.lane.b32.xlu1 %v4018_v38, %s7201_s13  ;;  %s7208_s13 = smov 38  }
 0x1f2   :  { %v9141_v7 = vpop.permute.xlu0 %4483 }
 0x1f3   :  { %v9143_v52 = vpop.permute.xlu1 %4379 }
 0x1f4   :  { %4789 = vrot.lane.b32.xlu0 %v3177_v25, %s7189_s16  ;;  %v9207_v25 = vpop.f32.mrf.mxu1 }
 0x1f5   :  { %4685 = vrot.lane.b32.xlu1 %v8976_v49, %s7189_s16  ;;  %v9161_v49 = vpop.f32.mrf.mxu0 }
 0x1f6   :  { %v3820_v61 = vpop.permute.xlu0 %3819  ;;  %v9219_v41 = vpop.f32.mrf.mxu1 }
 0x1f7   :  { %3829 = vst.msk [vmem:[%s10977_s3] sm:$0xff] %vm3828_vm8, %v3820_v61  ;;  %v9156_v59 = vpop.permute.xlu1 %4349 }
 0x1f8   :  { %4823 = vrot.lane.b32.xlu0 %v7002_v31, %s7189_s16 }
 0x1f9   :  { %4719 = vrot.lane.b32.xlu1 %v8992_v40, %s7189_s16  ;;  %v9176_v40 = vpop.f32.mrf.mxu0 }
 0x1fa   :  { %v3854_v45 = vpop.permute.xlu0 %3853 }
 0x1fb   :  { %3863 = vst.msk [vmem:[%s10977_s3] sm:$0xff] %vm3862_vm9, %v3854_v45  ;;  %v9169_v37 = vpop.permute.xlu1 %4383  ;;  %v9188_v0 = vpop.f32.mrf.mxu0 }
 0x1fc   :  { %4159 = vrot.lane.b32.xlu0 %v4153_v16, %s7205_s12  ;;  %v3207_v16 = vpop.f32.mrf.mxu1 }
 0x1fd   :  { %4689 = vrot.lane.b32.xlu1 %v9009_v23, %s7189_s16  ;;  %v9197_v43 = vpop.f32.mrf.mxu0 }
 0x1fe   :  { %v3824_v28 = vpop.permute.xlu0 %3823 }
 0x1ff   :  { %3831 = vst.msk [vmem:[%s10977_s3 + $0x10] sm:$0xff] %vm3828_vm8, %v3824_v28  ;;  %v3720_v60 = vpop.permute.xlu1 %3719  ;;  %v9215_v15 = vpop.f32.mrf.mxu0 }
 0x200   :  { %3728 = vst.msk [vmem:[%s10977_s3 + $0x8] sm:$0xff] %vm3726_vm5, %v3720_v60  ;;  %4193 = vrot.lane.b32.xlu0 %v4187_v55, %s7206_s6  ;;  %v4218_v55 = vadd.f32 %v8952_v20, %v9129_v13  ;;  %v7011_v28 = vpop.f32.mrf.mxu1  ;;  %v166_v20 = vld [vmem:[%s10976_s0 + $0x4b8] sm:$0xff]  ;;  %vm4236_vm5 = vcmask 310560  }
 0x201   :  { %4723 = vrot.lane.b32.xlu1 %v9019_v10, %s7189_s16  ;;  %v4086_v10 = vadd.f32 0.033991124, %v4083_v5  ;;  %v9225_v61 = vpop.f32.mrf.mxu0  ;;  %v4220_v5 = vadd.f32 %v8990_v36, %v9148_v44  ;;  %v4254_v36 = vadd.f32 %v9161_v49, %v9007_v4 }
 0x202   :  { %v3858_v23 = vpop.permute.xlu0 %3857  ;;  %v4221_v60 = vadd.f32 0.033991124, %v4218_v55  ;;  %v4151_v55 = vadd.f32 %v8997_v29, %v8790_v18  ;;  %v1974_v18 = vld [vmem:[%s10975_s1 + $0x508] sm:$0xff] }
 0x203   :  { %3865 = vst.msk [vmem:[%s10977_s3 + $0x10] sm:$0xff] %vm3862_vm9, %v3858_v23  ;;  %v3754_v38 = vpop.permute.xlu1 %3753  ;;  %v9234_v45 = vpop.f32.mrf.mxu0  ;;  %v4257_v4 = vadd.f32 0.033991124, %v4254_v36 }
 0x204   :  { %3762 = vst.msk [vmem:[%s10977_s3 + $0x8] sm:$0xff] %vm3760_vm6, %v3754_v38  ;;  %4163 = vrot.lane.b32.xlu0 %v4155_v14, %s7205_s12  ;;  %v4252_v14 = vadd.f32 %v9139_v12, %v8973_v22  ;;  %vm4270_vm6 = vcmask 326960  }
 0x205   :  { %4059 = vrot.lane.b32.xlu1 %v4052_v63, %s7202_s19  ;;  %v9254_v13 = vpop.f32.mrf.mxu0  ;;  %v9268_v63 = vpop.f32.mrf.mxu1  ;;  %s7214_s19 = smov 50  }
 0x206   :  { %v9217_v35 = vpop.permute.xlu0 %4517  ;;  %v4255_v22 = vadd.f32 0.033991124, %v4252_v14 }
 0x207   :  { %v9221_v19 = vpop.permute.xlu1 %4413  ;;  %v9265_v23 = vpop.f32.mrf.mxu0 }
 0x208   :  { %4197 = vrot.lane.b32.xlu0 %v4189_v48, %s7206_s6  ;;  %v4117_v48 = vadd.f32 %v8751_v32, %v8980_v17  ;;  %v4223_v32 = vadd.f32 0.033991124, %v4220_v5 }
 0x209   :  { %4093 = vrot.lane.b32.xlu1 %v4086_v10, %s7203_s30  ;;  %v9272_v12 = vpop.f32.mrf.mxu0  ;;  %s7212_s30 = smov 46  }
 0x20a   :  { %v9227_v31 = vpop.permute.xlu0 %4551  ;;  %v4120_v44 = vadd.f32 0.033991124, %v4117_v48  ;;  %v4286_v48 = vadd.f32 %v9017_v56, %v9197_v43  ;;  %v168_v56 = vld [vmem:[%s10976_s0 + $0x4c8] sm:$0xff] }
 0x20b   :  { %v9229_v21 = vpop.permute.xlu1 %4447  ;;  %v9291_v17 = vpop.f32.mrf.mxu0 }
 0x20c   :  { %4857 = vrot.lane.b32.xlu0 %v3207_v16, %s7189_s16  ;;  %v9282_v16 = vpop.f32.mrf.mxu1  ;;  %v4289_v43 = vadd.f32 0.033991124, %v4286_v48 }
 0x20d   :  { %4753 = vrot.lane.b32.xlu1 %v9067_v58, %s7189_s16  ;;  %v165_v58 = vld [vmem:[%s10976_s0 + $0x4b0] sm:$0xff]  ;;  %v9317_v29 = vpop.f32.mrf.mxu0 }
 0x20e   :  { %v3888_v30 = vpop.permute.xlu0 %3887  ;;  %6773 = vmatprep.mubr.msk.f32.mxu0 %vm207_vm1, %v165_v58  ;;  %v4154_v58 = vadd.f32 0.033991124, %v4151_v55 }
 0x20f   :  { %3897 = vst.msk [vmem:[%s10977_s3] sm:$0xff] %vm3896_vm10, %v3888_v30  ;;  %v9242_v34 = vpop.permute.xlu1 %4417  ;;  %6774 = vmatmul.mubr.msk.f32.gmra.mxu0 %vm207_vm1, %v166_v20  ;;  %v9327_v14 = vpop.f32.mrf.mxu0 }
 0x210   :  { %4891 = vrot.lane.b32.xlu0 %v7011_v28, %s7189_s16  ;;  %v9301_v28 = vpop.f32.mrf.mxu1 }
 0x211   :  { %4787 = vrot.lane.b32.xlu1 %v9089_v62, %s7189_s16 }
 0x212   :  { %v3922_v51 = vpop.permute.xlu0 %3921  ;;  %v9321_v20 = vpop.f32.mrf.mxu1 }
 0x213   :  { %3931 = vst.msk [vmem:[%s10977_s3] sm:$0xff] %vm3930_vm11, %v3922_v51  ;;  %v9263_v62 = vpop.permute.xlu1 %4451 }
 0x214   :  { %4227 = vrot.lane.b32.xlu0 %v4221_v60, %s7207_s4 }
 0x215   :  { %4757 = vrot.lane.b32.xlu1 %v9116_v6, %s7189_s16 }
 0x216   :  { %v3892_v38 = vpop.permute.xlu0 %3891 }
 0x217   :  { %3899 = vst.msk [vmem:[%s10977_s3 + $0x10] sm:$0xff] %vm3896_vm10, %v3892_v38  ;;  %v3788_v10 = vpop.permute.xlu1 %3787  ;;  %v9336_v38 = vpop.f32.mrf.mxu0 }
 0x218   :  { %3796 = vst.msk [vmem:[%s10977_s3 + $0x8] sm:$0xff] %vm3794_vm7, %v3788_v10  ;;  %4261 = vrot.lane.b32.xlu0 %v4255_v22, %s7208_s13  ;;  %v3237_v22 = vpop.f32.mrf.mxu1  ;;  %vm4304_vm7 = vcmask 343360  }
 0x219   :  { %4791 = vrot.lane.b32.xlu1 %v9133_v3, %s7189_s16  ;;  %v1973_v3 = vld [vmem:[%s10975_s1 + $0x500] sm:$0xff] }
 0x21a   :  { %v3926_v6 = vpop.permute.xlu0 %3925  ;;  %7078 = vmatprep.mubr.msk.f32.mxu1 %vm207_vm1, %v1973_v3 }
 0x21b   :  { %3933 = vst.msk [vmem:[%s10977_s3 + $0x10] sm:$0xff] %vm3930_vm11, %v3926_v6  ;;  %v3822_v30 = vpop.permute.xlu1 %3821  ;;  %7079 = vmatmul.mubr.msk.f32.gmra.mxu1 %vm207_vm1, %v1974_v18  ;;  %v9346_v6 = vpop.f32.mrf.mxu0 }
 0x21c   :  { %3830 = vst.msk [vmem:[%s10977_s3 + $0x8] sm:$0xff] %vm3828_vm8, %v3822_v30  ;;  %4231 = vrot.lane.b32.xlu0 %v4223_v32, %s7207_s4  ;;  %v7020_v32 = vpop.f32.mrf.mxu1  ;;  %vm4338_vm8 = vcmask 359760  }
 0x21d   :  { %4127 = vrot.lane.b32.xlu1 %v4120_v44, %s7204_s18  ;;  %v4320_v44 = vadd.f32 %v9215_v15, %v9035_v46  ;;  %v9360_v55 = vpop.f32.mrf.mxu0  ;;  %v4288_v15 = vadd.f32 %v9048_v53, %v9225_v61  ;;  %v4322_v53 = vadd.f32 %v9234_v45, %v9061_v9  ;;  %v169_v61 = vld [vmem:[%s10976_s0 + $0x4d0] sm:$0xff]  ;;  %v170_v9 = vld [vmem:[%s10976_s0 + $0x4d8] sm:$0xff]  ;;  %s7211_s18 = smov 44  }
 0x21e   :  { %v9319_v49 = vpop.permute.xlu0 %4585  ;;  %v9370_v3 = vpop.f32.mrf.mxu1 }
 0x21f   :  { %v9323_v60 = vpop.permute.xlu1 %4481  ;;  %v4323_v46 = vadd.f32 0.033991124, %v4320_v44  ;;  %v9376_v18 = vpop.f32.mrf.mxu0 }
 0x220   :  { %4265 = vrot.lane.b32.xlu0 %v4257_v4, %s7208_s13  ;;  %v9384_v48 = vpop.f32.mrf.mxu1 }
 0x221   :  { %4161 = vrot.lane.b32.xlu1 %v4154_v58, %s7205_s12  ;;  %v4185_v58 = vadd.f32 %v8813_v33, %v9075_v54  ;;  %v4291_v33 = vadd.f32 0.033991124, %v4288_v15  ;;  %v9395_v54 = vpop.f32.mrf.mxu0 }
 0x222   :  { %v9329_v51 = vpop.permute.xlu0 %4619 }
 0x223   :  { %v9331_v5 = vpop.permute.xlu1 %4515 }
 0x224   :  { %4925 = vrot.lane.b32.xlu0 %v3237_v22, %s7189_s16 }
 0x225   :  { %4821 = vrot.lane.b32.xlu1 %v9172_v27, %s7189_s16  ;;  %v167_v27 = vld [vmem:[%s10976_s0 + $0x4c0] sm:$0xff] }
 0x226   :  { %v3956_v10 = vpop.permute.xlu0 %3955  ;;  %6776 = vmatprep.mubr.msk.f32.mxu0 %vm207_vm1, %v167_v27  ;;  %v9406_v27 = vpop.f32.mrf.mxu1 }
 0x227   :  { %3965 = vst.msk [vmem:[%s10977_s3] sm:$0xff] %vm3964_vm12, %v3956_v10  ;;  %v9344_v36 = vpop.permute.xlu1 %4485  ;;  %6777 = vmatmul.mubr.msk.f32.gmra.mxu0 %vm207_vm1, %v168_v56  ;;  %v4188_v10 = vadd.f32 0.033991124, %v4185_v58 }
 0x228   :  { %4959 = vrot.lane.b32.xlu0 %v7020_v32, %s7189_s16  ;;  %v4219_v32 = vadd.f32 %v9103_v1, %v8826_v42  ;;  %6779 = vmatprep.mubr.msk.f32.mxu0 %vm207_vm1, %v169_v61  ;;  %v4325_v42 = vadd.f32 0.033991124, %v4322_v53  ;;  %v9419_v1 = vpop.f32.mrf.mxu0 }
 0x229   :  { %4855 = vrot.lane.b32.xlu1 %v9186_v2, %s7189_s16 }
 0x22a   :  { %v3990_v30 = vpop.permute.xlu0 %3989  ;;  %v4222_v56 = vadd.f32 0.033991124, %v4219_v32 }
 0x22b   :  { %3999 = vst.msk [vmem:[%s10977_s3] sm:$0xff] %vm3998_vm13, %v3990_v30  ;;  %v9367_v2 = vpop.permute.xlu1 %4519  ;;  %6780 = vmatmul.mubr.msk.f32.gmra.mxu0 %vm207_vm1, %v170_v9  ;;  %v9429_v30 = vpop.f32.mrf.mxu0 }
 0x22c   :  { %4295 = vrot.lane.b32.xlu0 %v4289_v43, %s7209_s2  ;;  %v9423_v43 = vpop.f32.mrf.mxu1 }
 0x22d   :  { %4825 = vrot.lane.b32.xlu1 %v9207_v25, %s7189_s16  ;;  %v9435_v58 = vpop.f32.mrf.mxu0 }
 0x22e   :  { %v3960_v4 = vpop.permute.xlu0 %3959  ;;  %v3267_v15 = vpop.f32.mrf.mxu1 }
 0x22f   :  { %3967 = vst.msk [vmem:[%s10977_s3 + $0x10] sm:$0xff] %vm3964_vm12, %v3960_v4  ;;  %v3856_v22 = vpop.permute.xlu1 %3855 }
 0x230   :  { %3864 = vst.msk [vmem:[%s10977_s3 + $0x8] sm:$0xff] %vm3862_vm9, %v3856_v22  ;;  %4329 = vrot.lane.b32.xlu0 %v4323_v46, %s7210_s28  ;;  %v4354_v22 = vadd.f32 %v9135_v47, %v9272_v12  ;;  %v4388_v47 = vadd.f32 %v9291_v17, %v9143_v52  ;;  %v4356_v52 = vadd.f32 %v9156_v59, %v9317_v29  ;;  %vm4372_vm9 = vcmask 376160  }
 0x231   :  { %4859 = vrot.lane.b32.xlu1 %v9219_v41, %s7189_s16  ;;  %v4390_v59 = vadd.f32 %v9327_v14, %v9169_v37  ;;  %v171_v37 = vld [vmem:[%s10976_s0 + $0x4e0] sm:$0xff] }
 0x232   :  { %v3994_v25 = vpop.permute.xlu0 %3993  ;;  %6782 = vmatprep.mubr.msk.f32.mxu0 %vm207_vm1, %v171_v37 }
 0x233   :  { %4001 = vst.msk [vmem:[%s10977_s3 + $0x10] sm:$0xff] %vm3998_vm13, %v3994_v25  ;;  %v3890_v41 = vpop.permute.xlu1 %3889  ;;  %v7029_v25 = vpop.f32.mrf.mxu1 }
 0x234   :  { %3898 = vst.msk [vmem:[%s10977_s3 + $0x8] sm:$0xff] %vm3896_vm10, %v3890_v41  ;;  %4299 = vrot.lane.b32.xlu0 %v4291_v33, %s7209_s2  ;;  %v9442_v33 = vpop.f32.mrf.mxu0  ;;  %vm4406_vm10 = vcmask 392560  }
 0x235   :  { %4195 = vrot.lane.b32.xlu1 %v4188_v10, %s7206_s6  ;;  %v9464_v41 = vpop.f32.mrf.mxu1  ;;  %s7213_s6 = smov 48  }
 0x236   :  { %v9421_v45 = vpop.permute.xlu0 %4653  ;;  %v9455_v12 = vpop.f32.mrf.mxu0 }
 0x237   :  { %v9425_v44 = vpop.permute.xlu1 %4549 }
 0x238   :  { %4333 = vrot.lane.b32.xlu0 %v4325_v42, %s7210_s28  ;;  %v9470_v17 = vpop.f32.mrf.mxu0  ;;  %v4253_v42 = vadd.f32 %v8834_v50, %v9176_v40  ;;  %v4359_v50 = vadd.f32 0.033991124, %v4356_v52 }
 0x239   :  { %4229 = vrot.lane.b32.xlu1 %v4222_v56, %s7207_s4  ;;  %s7219_s4 = smov 60  }
 0x23a   :  { %v9431_v46 = vpop.permute.xlu0 %4687  ;;  %v9489_v40 = vpop.f32.mrf.mxu0  ;;  %v4256_v29 = vadd.f32 0.033991124, %v4253_v42 }
 0x23b   :  { %v9433_v4 = vpop.permute.xlu1 %4583 }
 0x23c   :  { %4993 = vrot.lane.b32.xlu0 %v3267_v15, %s7189_s16  ;;  %v9478_v15 = vpop.f32.mrf.mxu1 }
 0x23d   :  { %4889 = vrot.lane.b32.xlu1 %v9268_v63, %s7189_s16  ;;  %v4357_v63 = vadd.f32 0.033991124, %v4354_v22  ;;  %v4287_v22 = vadd.f32 %v9188_v0, %v8853_v24  ;;  %v172_v24 = vld [vmem:[%s10976_s0 + $0x4e8] sm:$0xff]  ;;  %v4393_v0 = vadd.f32 0.033991124, %v4390_v59 }
 0x23e   :  { %v4024_v53 = vpop.permute.xlu0 %4023  ;;  %6783 = vmatmul.mubr.msk.f32.gmra.mxu0 %vm207_vm1, %v172_v24 }
 0x23f   :  { %4033 = vst.msk [vmem:[%s10977_s3] sm:$0xff] %vm4032_vm14, %v4024_v53  ;;  %v9448_v61 = vpop.permute.xlu1 %4553 }
 0x240   :  { %5027 = vrot.lane.b32.xlu0 %v7029_v25, %s7189_s16  ;;  %v9497_v25 = vpop.f32.mrf.mxu1 }
 0x241   :  { %4923 = vrot.lane.b32.xlu1 %v9282_v16, %s7189_s16  ;;  %v4391_v16 = vadd.f32 0.033991124, %v4388_v47 }
 0x242   :  { %v4058_v10 = vpop.permute.xlu0 %4057  ;;  %v9517_v47 = vpop.f32.mrf.mxu1 }
 0x243   :  { %4067 = vst.msk [vmem:[%s10977_s3] sm:$0xff] %vm4066_vm15, %v4058_v10  ;;  %v9461_v32 = vpop.permute.xlu1 %4587 }
 0x244   :  { %4363 = vrot.lane.b32.xlu0 %v4357_v63, %s7211_s18  ;;  %v4290_v63 = vadd.f32 0.033991124, %v4287_v22  ;;  %v3297_v42 = vpop.f32.mrf.mxu1 }
 0x245   :  { %4893 = vrot.lane.b32.xlu1 %v9301_v28, %s7189_s16 }
 0x246   :  { %v4028_v9 = vpop.permute.xlu0 %4027 }
 0x247   :  { %4035 = vst.msk [vmem:[%s10977_s3 + $0x10] sm:$0xff] %vm4032_vm14, %v4028_v9  ;;  %v3924_v56 = vpop.permute.xlu1 %3923 }
 0x248   :  { %3932 = vst.msk [vmem:[%s10977_s3 + $0x8] sm:$0xff] %vm3930_vm11, %v3924_v56  ;;  %4397 = vrot.lane.b32.xlu0 %v4391_v16, %s7212_s30  ;;  %vm4440_vm11 = vcmask 408960  }
 0x249   :  { %4927 = vrot.lane.b32.xlu1 %v9321_v20, %s7189_s16  ;;  %v9512_v20 = vpop.f32.mrf.mxu0 }
 0x24a   :  { %v4062_v28 = vpop.permute.xlu0 %4061 }
 0x24b   :  { %4069 = vst.msk [vmem:[%s10977_s3 + $0x10] sm:$0xff] %vm4066_vm15, %v4062_v28  ;;  %v3958_v53 = vpop.permute.xlu1 %3957  ;;  %v9521_v16 = vpop.f32.mrf.mxu0 }
 0x24c   :  { %3966 = vst.msk [vmem:[%s10977_s3 + $0x8] sm:$0xff] %vm3964_vm12, %v3958_v53  ;;  %4367 = vrot.lane.b32.xlu0 %v4359_v50, %s7211_s18  ;;  %v4422_v50 = vadd.f32 %v9221_v19, %v9360_v55  ;;  %v173_v53 = vld [vmem:[%s10976_s0 + $0x4f0] sm:$0xff]  ;;  %v174_v19 = vld [vmem:[%s10976_s0 + $0x4f8] sm:$0xff]  ;;  %vm4474_vm12 = vcmask 425360  }
 0x24d   :  { %4263 = vrot.lane.b32.xlu1 %v4256_v29, %s7208_s13  ;;  %v9525_v52 = vpop.f32.mrf.mxu0  ;;  %v7038_v29 = vpop.f32.mrf.mxu1  ;;  %6785 = vmatprep.mubr.msk.f32.mxu0 %vm207_vm1, %v173_v53 }
 0x24e   :  { %v9514_v14 = vpop.permute.xlu0 %4721  ;;  %6786 = vmatmul.mubr.msk.f32.gmra.mxu0 %vm207_vm1, %v174_v19  ;;  %v4425_v55 = vadd.f32 0.033991124, %v4422_v50  ;;  %v4321_v50 = vadd.f32 %v8922_v57, %v9254_v13  ;;  %v1976_v57 = vld [vmem:[%s10975_s1 + $0x518] sm:$0xff]  ;;  %v4458_v13 = vadd.f32 %v9419_v1, %v9263_v62 }
 0x24f   :  { %v9519_v10 = vpop.permute.xlu1 %4617  ;;  %v9536_v59 = vpop.f32.mrf.mxu0 }
 0x250   :  { %4401 = vrot.lane.b32.xlu0 %v4393_v0, %s7212_s30  ;;  %v4324_v19 = vadd.f32 0.033991124, %v4321_v50 }
 0x251   :  { %4297 = vrot.lane.b32.xlu1 %v4290_v63, %s7209_s2  ;;  %v9557_v37 = vpop.f32.mrf.mxu0  ;;  %s7232_s2 = smov 86  }
 0x252   :  { %v9527_v9 = vpop.permute.xlu0 %4755 }
 0x253   :  { %v9529_v56 = vpop.permute.xlu1 %4651 }
 0x254   :  { %5061 = vrot.lane.b32.xlu0 %v3297_v42, %s7189_s16 }
 0x255   :  { %4957 = vrot.lane.b32.xlu1 %v9370_v3, %s7189_s16  ;;  %v4456_v3 = vadd.f32 %v9376_v18, %v9229_v21  ;;  %v4424_v21 = vadd.f32 %v9242_v34, %v9395_v54  ;;  %v9572_v18 = vpop.f32.mrf.mxu0 }
 0x256   :  { %v4092_v28 = vpop.permute.xlu0 %4091 }
 0x257   :  { %4101 = vst.msk [vmem:[%s10977_s3] sm:$0xff] %vm4100_vm0, %v4092_v28  ;;  %v9542_v22 = vpop.permute.xlu1 %4621  ;;  %v4459_v63 = vadd.f32 0.033991124, %v4456_v3  ;;  %v4427_v34 = vadd.f32 0.033991124, %v4424_v21  ;;  %v9599_v54 = vpop.f32.mrf.mxu0 }
 0x258   :  { %5095 = vrot.lane.b32.xlu0 %v7038_v29, %s7189_s16 }
 0x259   :  { %4991 = vrot.lane.b32.xlu1 %v9384_v48, %s7189_s16  ;;  %v9566_v48 = vpop.f32.mrf.mxu1  ;;  %v9612_v62 = vpop.f32.mrf.mxu0 }
 0x25a   :  { %v4126_v24 = vpop.permute.xlu0 %4125 }
 0x25b   :  { %4135 = vst.msk [vmem:[%s10977_s3] sm:$0xff] %vm4134_vm2, %v4126_v24  ;;  %v9563_v0 = vpop.permute.xlu1 %4655  ;;  %v9580_v29 = vpop.f32.mrf.mxu1  ;;  %v1977_v24 = vld [vmem:[%s10975_s1 + $0x520] sm:$0xff] }
 0x25c   :  { %4431 = vrot.lane.b32.xlu0 %v4425_v55, %s7213_s6  ;;  %v4355_v55 = vadd.f32 %v9265_v23, %v8937_v8  ;;  %v1978_v8 = vld [vmem:[%s10975_s1 + $0x528] sm:$0xff]  ;;  %v4461_v23 = vadd.f32 0.033991124, %v4458_v13  ;;  %v9625_v1 = vpop.f32.mrf.mxu0 }
 0x25d   :  { %4961 = vrot.lane.b32.xlu1 %v9406_v27, %s7189_s16  ;;  %v1975_v27 = vld [vmem:[%s10975_s1 + $0x510] sm:$0xff] }
 0x25e   :  { %v4096_v42 = vpop.permute.xlu0 %4095  ;;  %7081 = vmatprep.mubr.msk.f32.mxu1 %vm207_vm1, %v1975_v27  ;;  %v4358_v21 = vadd.f32 0.033991124, %v4355_v55  ;;  %v1980_v27 = vld [vmem:[%s10975_s1 + $0x538] sm:$0xff]  ;;  %v1982_v55 = vld [vmem:[%s10975_s1 + $0x548] sm:$0xff] }
 0x25f   :  { %4103 = vst.msk [vmem:[%s10977_s3 + $0x10] sm:$0xff] %vm4100_vm0, %v4096_v42  ;;  %v3992_v28 = vpop.permute.xlu1 %3991  ;;  %7082 = vmatmul.mubr.msk.f32.gmra.mxu1 %vm207_vm1, %v1976_v57  ;;  %v9643_v57 = vpop.f32.mrf.mxu0 }
 0x260   :  { %4000 = vst.msk [vmem:[%s10977_s3 + $0x8] sm:$0xff] %vm3998_vm13, %v3992_v28  ;;  %4465 = vrot.lane.b32.xlu0 %v4459_v63, %s7214_s19  ;;  %7084 = vmatprep.mubr.msk.f32.mxu1 %vm207_vm1, %v1977_v24  ;;  %v1979_v28 = vld [vmem:[%s10975_s1 + $0x530] sm:$0xff]  ;;  %vm4508_vm13 = vcmask 441760  }
 0x261   :  { %4995 = vrot.lane.b32.xlu1 %v9423_v43, %s7189_s16  ;;  %v9607_v43 = vpop.f32.mrf.mxu1  ;;  %v9662_v24 = vpop.f32.mrf.mxu0 }
 0x262   :  { %v4130_v53 = vpop.permute.xlu0 %4129 }
 0x263   :  { %4137 = vst.msk [vmem:[%s10977_s3 + $0x10] sm:$0xff] %vm4134_vm2, %v4130_v53  ;;  %v4026_v3 = vpop.permute.xlu1 %4025  ;;  %7085 = vmatmul.mubr.msk.f32.gmra.mxu1 %vm207_vm1, %v1978_v8  ;;  %v9629_v42 = vpop.f32.mrf.mxu1 }
 0x264   :  { %4034 = vst.msk [vmem:[%s10977_s3 + $0x8] sm:$0xff] %vm4032_vm14, %v4026_v3  ;;  %4435 = vrot.lane.b32.xlu0 %v4427_v34, %s7213_s6  ;;  %7087 = vmatprep.mubr.msk.f32.mxu1 %vm207_vm1, %v1979_v28  ;;  %v4490_v3 = vadd.f32 %v9323_v60, %v9442_v33  ;;  %v1984_v60 = vld [vmem:[%s10975_s1 + $0x558] sm:$0xff]  ;;  %v4524_v28 = vadd.f32 %v9455_v12, %v9331_v5  ;;  %v1986_v5 = vld [vmem:[%s10975_s1 + $0x568] sm:$0xff]  ;;  %vm4542_vm14 = vcmask 458160  }
 0x265   :  { %4331 = vrot.lane.b32.xlu1 %v4324_v19, %s7210_s28  ;;  %v3327_v13 = vpop.f32.mrf.mxu1  ;;  %v1981_v19 = vld [vmem:[%s10975_s1 + $0x540] sm:$0xff] }
 0x266   :  { %v9627_v63 = vpop.permute.xlu0 %4789  ;;  %v4493_v33 = vadd.f32 0.033991124, %v4490_v3  ;;  %v4492_v3 = vadd.f32 %v9344_v36, %v9470_v17  ;;  %v4526_v36 = vadd.f32 %v9489_v40, %v9367_v2 }
 0x267   :  { %v9631_v50 = vpop.permute.xlu1 %4685  ;;  %7088 = vmatmul.mubr.msk.f32.gmra.mxu1 %vm207_vm1, %v1980_v27  ;;  %v9683_v27 = vpop.f32.mrf.mxu0 }
 0x268   :  { %4469 = vrot.lane.b32.xlu0 %v4461_v23, %s7214_s19  ;;  %7090 = vmatprep.mubr.msk.f32.mxu1 %vm207_vm1, %v1981_v19  ;;  %v7047_v23 = vpop.f32.mrf.mxu1 }
 0x269   :  { %4365 = vrot.lane.b32.xlu1 %v4358_v21, %s7211_s18 }
 0x26a   :  { %v9645_v34 = vpop.permute.xlu0 %4823  ;;  %v9699_v12 = vpop.f32.mrf.mxu1 }
 0x26b   :  { %v9647_v53 = vpop.permute.xlu1 %4719  ;;  %7091 = vmatmul.mubr.msk.f32.gmra.mxu1 %vm207_vm1, %v1982_v55  ;;  %v4527_v55 = vadd.f32 0.033991124, %v4524_v28 }
 0x26c   :  { %5129 = vrot.lane.b32.xlu0 %v3327_v13, %s7189_s16 }
 0x26d   :  { %5025 = vrot.lane.b32.xlu1 %v9464_v41, %s7189_s16  ;;  %v1983_v41 = vld [vmem:[%s10975_s1 + $0x550] sm:$0xff] }
 0x26e   :  { %v4160_v8 = vpop.permute.xlu0 %4159  ;;  %7093 = vmatprep.mubr.msk.f32.mxu1 %vm207_vm1, %v1983_v41  ;;  %v4389_v41 = vadd.f32 %v9015_v26, %v9336_v38  ;;  %v1988_v26 = vld [vmem:[%s10975_s1 + $0x578] sm:$0xff]  ;;  %v4495_v38 = vadd.f32 0.033991124, %v4492_v3  ;;  %v1989_v3 = vld [vmem:[%s10975_s1 + $0x580] sm:$0xff] }
 0x26f   :  { %4169 = vst.msk [vmem:[%s10977_s3] sm:$0xff] %vm4168_vm3, %v4160_v8  ;;  %v9668_v21 = vpop.permute.xlu1 %4689  ;;  %7094 = vmatmul.mubr.msk.f32.gmra.mxu1 %vm207_vm1, %v1984_v60  ;;  %v9706_v8 = vpop.f32.mrf.mxu0 }
 0x270   :  { %5163 = vrot.lane.b32.xlu0 %v7047_v23, %s7189_s16 }
 0x271   :  { %5059 = vrot.lane.b32.xlu1 %v9478_v15, %s7189_s16  ;;  %v1985_v15 = vld [vmem:[%s10975_s1 + $0x560] sm:$0xff]  ;;  %v9719_v28 = vpop.f32.mrf.mxu0 }
 0x272   :  { %v4194_v13 = vpop.permute.xlu0 %4193  ;;  %7096 = vmatprep.mubr.msk.f32.mxu1 %vm207_vm1, %v1985_v15  ;;  %v4392_v15 = vadd.f32 0.033991124, %v4389_v41 }
 0x273   :  { %4203 = vst.msk [vmem:[%s10977_s3] sm:$0xff] %vm4202_vm4, %v4194_v13  ;;  %v9689_v19 = vpop.permute.xlu1 %4723  ;;  %7097 = vmatmul.mubr.msk.f32.gmra.mxu1 %vm207_vm1, %v1986_v5  ;;  %v9735_v17 = vpop.f32.mrf.mxu0  ;;  %v4423_v5 = vadd.f32 %v9346_v6, %v9032_v11  ;;  %v1990_v11 = vld [vmem:[%s10975_s1 + $0x588] sm:$0xff]  ;;  %v4529_v6 = vadd.f32 0.033991124, %v4526_v36 }
 0x274   :  { %4499 = vrot.lane.b32.xlu0 %v4493_v33, %s7215_s21  ;;  %v9714_v33 = vpop.f32.mrf.mxu1 }
 0x275   :  { %5029 = vrot.lane.b32.xlu1 %v9497_v25, %s7189_s16  ;;  %v1987_v25 = vld [vmem:[%s10975_s1 + $0x570] sm:$0xff]  ;;  %v9759_v2 = vpop.f32.mrf.mxu0 }
 0x276   :  { %v4164_v23 = vpop.permute.xlu0 %4163  ;;  %7099 = vmatprep.mubr.msk.f32.mxu1 %vm207_vm1, %v1987_v25  ;;  %v1991_v25 = vld [vmem:[%s10975_s1 + $0x590] sm:$0xff] }
 0x277   :  { %4171 = vst.msk [vmem:[%s10977_s3 + $0x10] sm:$0xff] %vm4168_vm3, %v4164_v23  ;;  %v4060_v60 = vpop.permute.xlu1 %4059  ;;  %7100 = vmatmul.mubr.msk.f32.gmra.mxu1 %vm207_vm1, %v1988_v26  ;;  %v4426_v23 = vadd.f32 0.033991124, %v4423_v5  ;;  %v1992_v26 = vld [vmem:[%s10975_s1 + $0x598] sm:$0xff]  ;;  %v9779_v36 = vpop.f32.mrf.mxu0 }
 0x278   :  { %4068 = vst.msk [vmem:[%s10977_s3 + $0x8] sm:$0xff] %vm4066_vm15, %v4060_v60  ;;  %4533 = vrot.lane.b32.xlu0 %v4527_v55, %s7216_s25  ;;  %7102 = vmatprep.mubr.msk.f32.mxu1 %vm207_vm1, %v1989_v3  ;;  %v4592_v3 = vadd.f32 %v9536_v59, %v9433_v4  ;;  %v1996_v4 = vld [vmem:[%s10975_s1 + $0x5b8] sm:$0xff]  ;;  %vm4576_vm15 = vcmask 474560  }
 0x279   :  { %5063 = vrot.lane.b32.xlu1 %v9517_v47, %s7189_s16  ;;  %v9743_v47 = vpop.f32.mrf.mxu1 }
 0x27a   :  { %v4198_v13 = vpop.permute.xlu0 %4197  ;;  %v4595_v59 = vadd.f32 0.033991124, %v4592_v3 }
 0x27b   :  { %4205 = vst.msk [vmem:[%s10977_s3 + $0x10] sm:$0xff] %vm4202_vm4, %v4198_v13  ;;  %v4094_v55 = vpop.permute.xlu1 %4093  ;;  %7103 = vmatmul.mubr.msk.f32.gmra.mxu1 %vm207_vm1, %v1990_v11  ;;  %v9763_v41 = vpop.f32.mrf.mxu1 }
 0x27c   :  { %4102 = vst.msk [vmem:[%s10977_s3 + $0x8] sm:$0xff] %vm4100_vm0, %v4094_v55  ;;  %4503 = vrot.lane.b32.xlu0 %v4495_v38, %s7215_s21  ;;  %7105 = vmatprep.mubr.msk.f32.mxu1 %vm207_vm1, %v1991_v25  ;;  %v4558_v38 = vadd.f32 %v9425_v44, %v9525_v52  ;;  %v1993_v55 = vld [vmem:[%s10975_s1 + $0x5a0] sm:$0xff]  ;;  %v1994_v44 = vld [vmem:[%s10975_s1 + $0x5a8] sm:$0xff]  ;;  %v9798_v11 = vpop.f32.mrf.mxu0  ;;  %v4560_v25 = vadd.f32 %v9448_v61, %v9557_v37  ;;  %vm4610_vm0 = vcmask 490960  }
 0x27d   :  { %4399 = vrot.lane.b32.xlu1 %v4392_v15, %s7212_s30  ;;  %v3357_v15 = vpop.f32.mrf.mxu1  ;;  %v1998_v61 = vld [vmem:[%s10975_s1 + $0x5c8] sm:$0xff]  ;;  %s7245_s30 = smov 112  }
 0x27e   :  { %v9761_v40 = vpop.permute.xlu0 %4857  ;;  %v4561_v52 = vadd.f32 0.033991124, %v4558_v38  ;;  %v4563_v37 = vadd.f32 0.033991124, %v4560_v25 }
 0x27f   :  { %v9765_v60 = vpop.permute.xlu1 %4753  ;;  %7106 = vmatmul.mubr.msk.f32.gmra.mxu1 %vm207_vm1, %v1992_v26  ;;  %v9819_v26 = vpop.f32.mrf.mxu0 }
 0x280   :  { %4537 = vrot.lane.b32.xlu0 %v4529_v6, %s7216_s25  ;;  %7108 = vmatprep.mubr.msk.f32.mxu1 %vm207_vm1, %v1993_v55 }
 0x281   :  { %4433 = vrot.lane.b32.xlu1 %v4426_v23, %s7213_s6  ;;  %v9830_v55 = vpop.f32.mrf.mxu0  ;;  %s7226_s6 = smov 74  }
 0x282   :  { %v9781_v13 = vpop.permute.xlu0 %4891 }
 0x283   :  { %v9783_v5 = vpop.permute.xlu1 %4787  ;;  %7109 = vmatmul.mubr.msk.f32.gmra.mxu1 %vm207_vm1, %v1994_v44  ;;  %v4594_v44 = vadd.f32 %v9572_v18, %v9461_v32 }
 0x284   :  { %5197 = vrot.lane.b32.xlu0 %v3357_v15, %s7189_s16 }
 0x285   :  { %5093 = vrot.lane.b32.xlu1 %v9566_v48, %s7189_s16  ;;  %v1995_v48 = vld [vmem:[%s10975_s1 + $0x5b0] sm:$0xff] }
 0x286   :  { %v4228_v6 = vpop.permute.xlu0 %4227  ;;  %7111 = vmatprep.mubr.msk.f32.mxu1 %vm207_vm1, %v1995_v48 }
 0x287   :  { %4237 = vst.msk [vmem:[%s10977_s3] sm:$0xff] %vm4236_vm5, %v4228_v6  ;;  %v9804_v23 = vpop.permute.xlu1 %4757  ;;  %7112 = vmatmul.mubr.msk.f32.gmra.mxu1 %vm207_vm1, %v1996_v4  ;;  %v4457_v6 = vadd.f32 %v9131_v39, %v9429_v30  ;;  %v2000_v39 = vld [vmem:[%s10975_s1 + $0x5d8] sm:$0xff]  ;;  %v4597_v30 = vadd.f32 0.033991124, %v4594_v44 }
 0x288   :  { %4567 = vrot.lane.b32.xlu0 %v4561_v52, %s7217_s27  ;;  %v9842_v52 = vpop.f32.mrf.mxu0 }
 0x289   :  { %5127 = vrot.lane.b32.xlu1 %v9580_v29, %s7189_s16  ;;  %v1997_v29 = vld [vmem:[%s10975_s1 + $0x5c0] sm:$0xff]  ;;  %v4460_v4 = vadd.f32 0.033991124, %v4457_v6  ;;  %v4660_v6 = vadd.f32 %v9643_v57, %v9529_v56 }
 0x28a   :  { %v4262_v38 = vpop.permute.xlu0 %4261  ;;  %7114 = vmatprep.mubr.msk.f32.mxu1 %vm207_vm1, %v1997_v29  ;;  %v9865_v32 = vpop.f32.mrf.mxu0 }
 0x28b   :  { %4271 = vst.msk [vmem:[%s10977_s3] sm:$0xff] %vm4270_vm6, %v4262_v38  ;;  %v9825_v15 = vpop.permute.xlu1 %4791  ;;  %7115 = vmatmul.mubr.msk.f32.gmra.mxu1 %vm207_vm1, %v1998_v61 }
 0x28c   :  { %4601 = vrot.lane.b32.xlu0 %v4595_v59, %s7218_s7  ;;  %v4491_v59 = vadd.f32 %v9435_v58, %v9141_v7  ;;  %v2002_v7 = vld [vmem:[%s10975_s1 + $0x5e8] sm:$0xff]  ;;  %v4626_v58 = vadd.f32 %v9519_v10, %v9625_v1  ;;  %v9889_v38 = vpop.f32.mrf.mxu0  ;;  %v2004_v10 = vld [vmem:[%s10975_s1 + $0x5f8] sm:$0xff] }
 0x28d   :  { %5097 = vrot.lane.b32.xlu1 %v9607_v43, %s7189_s16  ;;  %v1999_v43 = vld [vmem:[%s10975_s1 + $0x5d0] sm:$0xff] }
 0x28e   :  { %v4232_v3 = vpop.permute.xlu0 %4231  ;;  %7117 = vmatprep.mubr.msk.f32.mxu1 %vm207_vm1, %v1999_v43  ;;  %v4494_v61 = vadd.f32 0.033991124, %v4491_v59  ;;  %v4629_v1 = vadd.f32 0.033991124, %v4626_v58 }
 0x28f   :  { %4239 = vst.msk [vmem:[%s10977_s3 + $0x10] sm:$0xff] %vm4236_vm5, %v4232_v3  ;;  %v4128_v48 = vpop.permute.xlu1 %4127  ;;  %7118 = vmatmul.mubr.msk.f32.gmra.mxu1 %vm207_vm1, %v2000_v39  ;;  %v2003_v3 = vld [vmem:[%s10975_s1 + $0x5f0] sm:$0xff] }
 0x290   :  { %4136 = vst.msk [vmem:[%s10977_s3 + $0x8] sm:$0xff] %vm4134_vm2, %v4128_v48  ;;  %4571 = vrot.lane.b32.xlu0 %v4563_v37, %s7217_s27  ;;  %v7056_v37 = vpop.f32.mrf.mxu1  ;;  %v9907_v48 = vpop.f32.mrf.mxu0  ;;  %vm4644_vm2 = vcmask 507360  }
 0x291   :  { %5131 = vrot.lane.b32.xlu1 %v9629_v42, %s7189_s16  ;;  %v2001_v42 = vld [vmem:[%s10975_s1 + $0x5e0] sm:$0xff]  ;;  %s7239_s1 = smov 100  }
 0x292   :  { %v4266_v18 = vpop.permute.xlu0 %4265  ;;  %7120 = vmatprep.mubr.msk.f32.mxu1 %vm207_vm1, %v2001_v42  ;;  %v4525_v42 = vadd.f32 %v9217_v35, %v9512_v20  ;;  %v4559_v20 = vadd.f32 %v9521_v16, %v9227_v31 }
 0x293   :  { %4273 = vst.msk [vmem:[%s10977_s3 + $0x10] sm:$0xff] %vm4270_vm6, %v4266_v18  ;;  %v4162_v25 = vpop.permute.xlu1 %4161  ;;  %7121 = vmatmul.mubr.msk.f32.gmra.mxu1 %vm207_vm1, %v2002_v7  ;;  %v4628_v18 = vadd.f32 %v9542_v22, %v9662_v24  ;;  %v4662_v24 = vadd.f32 %v9683_v27, %v9563_v0  ;;  %v4694_v0 = vadd.f32 %v9631_v50, %v9735_v17 }
 0x294   :  { %4170 = vst.msk [vmem:[%s10977_s3 + $0x8] sm:$0xff] %vm4168_vm3, %v4162_v25  ;;  %4605 = vrot.lane.b32.xlu0 %v4597_v30, %s7218_s7  ;;  %7123 = vmatprep.mubr.msk.f32.mxu1 %vm207_vm1, %v2003_v3  ;;  %v4663_v30 = vadd.f32 0.033991124, %v4660_v6  ;;  %v4528_v35 = vadd.f32 0.033991124, %v4525_v42  ;;  %v4728_v17 = vadd.f32 %v9759_v2, %v9647_v53  ;;  %v3367_v3 = vpop.f32.mrf.mxu1  ;;  %v4696_v2 = vadd.f32 %v9668_v21, %v9779_v36 }
 0x295   :  { %4467 = vrot.lane.b32.xlu1 %v4460_v4, %s7214_s19  ;;  %v9918_v4 = vpop.f32.mrf.mxu0  ;;  %v4631_v22 = vadd.f32 0.033991124, %v4628_v18  ;;  %v4697_v50 = vadd.f32 0.033991124, %v4694_v0  ;;  %v4593_v6 = vadd.f32 %v9319_v49, %v9599_v54  ;;  %v4730_v21 = vadd.f32 %v9798_v11, %v9689_v19  ;;  %v175_v0 = vld [vmem:[%s10976_s0 + $0x500] sm:$0xff]  ;;  %s7233_s19 = smov 88  }
 0x296   :  { %v9891_v29 = vpop.permute.xlu0 %4925  ;;  %v4731_v53 = vadd.f32 0.033991124, %v4728_v17  ;;  %v9986_v18 = vpop.f32.mrf.mxu1  ;;  %v4627_v49 = vadd.f32 %v9612_v62, %v9329_v51  ;;  %6788 = vmatprep.mubr.msk.f32.mxu0 %vm207_vm1, %v175_v0  ;;  %vm4678_vm3 = vcmask 523760  }
 0x297   :  { %v9893_v44 = vpop.permute.xlu1 %4821  ;;  %7124 = vmatmul.mubr.msk.f32.gmra.mxu1 %vm207_vm1, %v2004_v10  ;;  %v9926_v59 = vpop.f32.mrf.mxu0 }
 0x298   :  { %5231 = vrot.lane.b32.xlu0 %v7056_v37, %s7189_s16 }
 0x299   :  { %4501 = vrot.lane.b32.xlu1 %v4494_v61, %s7215_s21  ;;  %s7234_s21 = smov 90  }
 0x29a   :  { %v9909_v43 = vpop.permute.xlu0 %4959 }
 0x29b   :  { %v9911_v39 = vpop.permute.xlu1 %4855 }
 0x29c   :  { %4635 = vrot.lane.b32.xlu0 %v4629_v1, %s7219_s4 }
 0x29d   :  { %5161 = vrot.lane.b32.xlu1 %v9699_v12, %s7189_s16  ;;  %v9933_v12 = vpop.f32.mrf.mxu0 }
 0x29e   :  { %v4296_v56 = vpop.permute.xlu0 %4295 }
 0x29f   :  { %4305 = vst.msk [vmem:[%s10977_s3] sm:$0xff] %vm4304_vm7, %v4296_v56  ;;  %v9924_v57 = vpop.permute.xlu1 %4825  ;;  %v9948_v27 = vpop.f32.mrf.mxu0  ;;  %v4699_v56 = vadd.f32 0.033991124, %v4696_v2 }
 0x2a0   :  { %4669 = vrot.lane.b32.xlu0 %v4663_v30, %s7220_s17  ;;  %v4864_v0 = vadd.f32 %v9948_v27, %v9911_v39 }
 0x2a1   :  { %5195 = vrot.lane.b32.xlu1 %v9714_v33, %s7189_s16  ;;  %v4665_v33 = vadd.f32 0.033991124, %v4662_v24  ;;  %v9964_v31 = vpop.f32.mrf.mxu0  ;;  %v4596_v24 = vadd.f32 0.033991124, %v4593_v6 }
 0x2a2   :  { %v4330_v25 = vpop.permute.xlu0 %4329  ;;  %v4832_v39 = vadd.f32 %v9924_v57, %v9964_v31 }
 0x2a3   :  { %4339 = vst.msk [vmem:[%s10977_s3] sm:$0xff] %vm4338_vm8, %v4330_v25  ;;  %v9941_v7 = vpop.permute.xlu1 %4859  ;;  %v9978_v10 = vpop.f32.mrf.mxu0 }
 0x2a4   :  { %4639 = vrot.lane.b32.xlu0 %v4631_v22, %s7219_s4  ;;  %v3377_v25 = vpop.f32.mrf.mxu1  ;;  %v4866_v57 = vadd.f32 %v9978_v10, %v9941_v7 }
 0x2a5   :  { %5165 = vrot.lane.b32.xlu1 %v9743_v47, %s7189_s16  ;;  %v4562_v47 = vadd.f32 0.033991124, %v4559_v20  ;;  %v9993_v36 = vpop.f32.mrf.mxu0 }
 0x2a6   :  { %v4300_v58 = vpop.permute.xlu0 %4299  ;;  %v10011_v51 = vpop.f32.mrf.mxu1 }
 0x2a7   :  { %4307 = vst.msk [vmem:[%s10977_s3 + $0x10] sm:$0xff] %vm4304_vm7, %v4300_v58  ;;  %v4196_v61 = vpop.permute.xlu1 %4195  ;;  %v10001_v42 = vpop.f32.mrf.mxu0  ;;  %v176_v58 = vld [vmem:[%s10976_s0 + $0x508] sm:$0xff] }
 0x2a8   :  { %4204 = vst.msk [vmem:[%s10977_s3 + $0x8] sm:$0xff] %vm4202_vm4, %v4196_v61  ;;  %4673 = vrot.lane.b32.xlu0 %v4665_v33, %s7220_s17  ;;  %v4630_v33 = vadd.f32 0.033991124, %v4627_v49  ;;  %6789 = vmatmul.mubr.msk.f32.gmra.mxu0 %vm207_vm1, %v176_v58  ;;  %v3387_v17 = vpop.f32.mrf.mxu1  ;;  %vm4746_vm4 = vcmask 556560  }
 0x2a9   :  { %4535 = vrot.lane.b32.xlu1 %v4528_v35, %s7216_s25  ;;  %s7221_s25 = smov 64   ;;  %v10005_v19 = vpop.f32.mrf.mxu0  ;;  %v4762_v35 = vadd.f32 %v9765_v60, %v9842_v52  ;;  %v4796_v60 = vadd.f32 %v9865_v32, %v9783_v5 }
 0x2aa   :  { %v4334_v16 = vpop.permute.xlu0 %4333 }
 0x2ab   :  { %4341 = vst.msk [vmem:[%s10977_s3 + $0x10] sm:$0xff] %vm4338_vm8, %v4334_v16  ;;  %v4230_v37 = vpop.permute.xlu1 %4229  ;;  %v10027_v20 = vpop.f32.mrf.mxu0  ;;  %v4799_v5 = vadd.f32 0.033991124, %v4796_v60 }
 0x2ac   :  { %4238 = vst.msk [vmem:[%s10977_s3 + $0x8] sm:$0xff] %vm4236_vm5, %v4230_v37  ;;  %4703 = vrot.lane.b32.xlu0 %v4697_v50, %s7221_s25  ;;  %v4661_v50 = vadd.f32 %v9421_v45, %v9706_v8  ;;  %v4695_v8 = vadd.f32 %v9719_v28, %v9431_v46  ;;  %v4764_v46 = vadd.f32 %v9804_v23, %v9889_v38  ;;  %vm4780_vm5 = vcmask 572960  }
 0x2ad   :  { %4569 = vrot.lane.b32.xlu1 %v4562_v47, %s7217_s27  ;;  %v4765_v47 = vadd.f32 0.033991124, %v4762_v35  ;;  %v10041_v52 = vpop.f32.mrf.mxu0  ;;  %v4798_v38 = vadd.f32 %v9907_v48, %v9825_v15 }
 0x2ae   :  { %v9980_v1 = vpop.permute.xlu0 %4993  ;;  %v4664_v45 = vadd.f32 0.033991124, %v4661_v50  ;;  %v4767_v23 = vadd.f32 0.033991124, %v4764_v46 }
 0x2af   :  { %v9984_v30 = vpop.permute.xlu1 %4889  ;;  %v10057_v28 = vpop.f32.mrf.mxu0 }
 0x2b0   :  { %4737 = vrot.lane.b32.xlu0 %v4731_v53, %s7222_s23 }
 0x2b1   :  { %5199 = vrot.lane.b32.xlu1 %v9763_v41, %s7189_s16  ;;  %v4733_v41 = vadd.f32 0.033991124, %v4730_v21  ;;  %v10071_v6 = vpop.f32.mrf.mxu0  ;;  %v4729_v21 = vadd.f32 %v9514_v14, %v9819_v26  ;;  %v4763_v14 = vadd.f32 %v9830_v55, %v9527_v9  ;;  %v4867_v55 = vadd.f32 0.033991124, %v4864_v0 }
 0x2b2   :  { %v9995_v22 = vpop.permute.xlu0 %5027 }
 0x2b3   :  { %v9999_v54 = vpop.permute.xlu1 %4923  ;;  %v10079_v49 = vpop.f32.mrf.mxu0  ;;  %v4766_v58 = vadd.f32 0.033991124, %v4763_v14  ;;  %v4899_v14 = vadd.f32 %v10001_v42, %v9781_v13 }
 0x2b4   :  { %4707 = vrot.lane.b32.xlu0 %v4699_v56, %s7221_s25 }
 0x2b5   :  { %4603 = vrot.lane.b32.xlu1 %v4596_v24, %s7218_s7  ;;  %v10085_v15 = vpop.f32.mrf.mxu0 }
 0x2b6   :  { %v4364_v11 = vpop.permute.xlu0 %4363 }
 0x2b7   :  { %4373 = vst.msk [vmem:[%s10977_s3] sm:$0xff] %vm4372_vm9, %v4364_v11  ;;  %v10013_v62 = vpop.permute.xlu1 %4893  ;;  %v4830_v11 = vadd.f32 %v9893_v44, %v9933_v12  ;;  %v10097_v44 = vpop.f32.mrf.mxu0 }
 0x2b8   :  { %4741 = vrot.lane.b32.xlu0 %v4733_v41, %s7222_s23  ;;  %v4801_v41 = vadd.f32 0.033991124, %v4798_v38  ;;  %v4865_v38 = vadd.f32 %v9761_v40, %v9993_v36  ;;  %v4932_v36 = vadd.f32 %v10027_v20, %v9999_v54  ;;  %v186_v54 = vld [vmem:[%s10976_s0 + $0x558] sm:$0xff]  ;;  %v4900_v42 = vadd.f32 %v10013_v62, %v10041_v52  ;;  %v188_v62 = vld [vmem:[%s10976_s0 + $0x568] sm:$0xff] }
 0x2b9   :  { %4637 = vrot.lane.b32.xlu1 %v4630_v33, %s7219_s4  ;;  %s7223_s4 = smov 68   ;;  %v4732_v33 = vadd.f32 0.033991124, %v4729_v21  ;;  %v10109_v27 = vpop.f32.mrf.mxu0  ;;  %v7065_v21 = vpop.f32.mrf.mxu1 }
 0x2ba   :  { %v4398_v61 = vpop.permute.xlu0 %4397  ;;  %v4935_v13 = vadd.f32 0.033991124, %v4932_v36  ;;  %v4903_v52 = vadd.f32 0.033991124, %v4900_v42 }
 0x2bb   :  { %4407 = vst.msk [vmem:[%s10977_s3] sm:$0xff] %vm4406_vm10, %v4398_v61  ;;  %v10035_v16 = vpop.permute.xlu1 %4927  ;;  %v4797_v61 = vadd.f32 %v9627_v63, %v9918_v4  ;;  %v178_v63 = vld [vmem:[%s10976_s0 + $0x518] sm:$0xff]  ;;  %v4835_v4 = vadd.f32 0.033991124, %v4832_v39  ;;  %v10132_v31 = vpop.f32.mrf.mxu0  ;;  %v187_v39 = vld [vmem:[%s10976_s0 + $0x560] sm:$0xff] }
 0x2bc   :  { %5265 = vrot.lane.b32.xlu0 %v3387_v17, %s7189_s16  ;;  %v177_v17 = vld [vmem:[%s10976_s0 + $0x510] sm:$0xff] }
 0x2bd   :  { %5229 = vrot.lane.b32.xlu1 %v3367_v3, %s7189_s16  ;;  %v4698_v3 = vadd.f32 0.033991124, %v4695_v8  ;;  %6791 = vmatprep.mubr.msk.f32.mxu0 %vm207_vm1, %v177_v17  ;;  %v4800_v60 = vadd.f32 0.033991124, %v4797_v61  ;;  %v10154_v7 = vpop.f32.mrf.mxu0  ;;  %v4933_v17 = vadd.f32 %v9891_v29, %v10071_v6  ;;  %v190_v29 = vld [vmem:[%s10976_s0 + $0x578] sm:$0xff] }
 0x2be   :  { %v4368_v37 = vpop.permute.xlu0 %4367  ;;  %6792 = vmatmul.mubr.msk.f32.gmra.mxu0 %vm207_vm1, %v178_v63 }
 0x2bf   :  { %4375 = vst.msk [vmem:[%s10977_s3 + $0x10] sm:$0xff] %vm4372_vm9, %v4368_v37  ;;  %v4264_v53 = vpop.permute.xlu1 %4263  ;;  %v4831_v37 = vadd.f32 %v9926_v59, %v9645_v34  ;;  %v180_v34 = vld [vmem:[%s10976_s0 + $0x528] sm:$0xff]  ;;  %v4869_v59 = vadd.f32 0.033991124, %v4866_v57  ;;  %v10163_v46 = vpop.f32.mrf.mxu0  ;;  %v189_v57 = vld [vmem:[%s10976_s0 + $0x570] sm:$0xff] }
 0x2c0   :  { %4272 = vst.msk [vmem:[%s10977_s3 + $0x8] sm:$0xff] %vm4270_vm6, %v4264_v53  ;;  %4771 = vrot.lane.b32.xlu0 %v4765_v47, %s7223_s4  ;;  %vm4814_vm6 = vcmask 589360  }
 0x2c1   :  { %4671 = vrot.lane.b32.xlu1 %v4664_v45, %s7220_s17  ;;  %s7224_s17 = smov 70   ;;  %v4834_v8 = vadd.f32 0.033991124, %v4831_v37  ;;  %v4967_v37 = vadd.f32 %v10079_v49, %v9909_v43  ;;  %v192_v43 = vld [vmem:[%s10976_s0 + $0x588] sm:$0xff] }
 0x2c2   :  { %v4402_v32 = vpop.permute.xlu0 %4401 }
 0x2c3   :  { %4409 = vst.msk [vmem:[%s10977_s3 + $0x10] sm:$0xff] %vm4406_vm10, %v4402_v32  ;;  %v4298_v2 = vpop.permute.xlu1 %4297  ;;  %v182_v32 = vld [vmem:[%s10976_s0 + $0x538] sm:$0xff] }
 0x2c4   :  { %4306 = vst.msk [vmem:[%s10977_s3 + $0x8] sm:$0xff] %vm4304_vm7, %v4298_v2  ;;  %4805 = vrot.lane.b32.xlu0 %v4799_v5, %s7224_s17  ;;  %v181_v5 = vld [vmem:[%s10976_s0 + $0x530] sm:$0xff]  ;;  %v10178_v2 = vpop.f32.mrf.mxu0  ;;  %vm4848_vm7 = vcmask 605760  }
 0x2c5   :  { %4705 = vrot.lane.b32.xlu1 %v4698_v3, %s7221_s25  ;;  %v4898_v3 = vadd.f32 %v9984_v30, %v10005_v19  ;;  %v184_v30 = vld [vmem:[%s10976_s0 + $0x548] sm:$0xff]  ;;  %s7250_s25 = smov 122  }
 0x2c6   :  { %v10073_v56 = vpop.permute.xlu0 %5061 }
 0x2c7   :  { %v10077_v24 = vpop.permute.xlu1 %4957  ;;  %v4901_v40 = vadd.f32 0.033991124, %v4898_v3 }
 0x2c8   :  { %4775 = vrot.lane.b32.xlu0 %v4767_v23, %s7223_s4 }
 0x2c9   :  { %5233 = vrot.lane.b32.xlu1 %v3377_v25, %s7189_s16  ;;  %v4833_v25 = vadd.f32 0.033991124, %v4830_v11  ;;  %v183_v11 = vld [vmem:[%s10976_s0 + $0x540] sm:$0xff] }
 0x2ca   :  { %v10087_v48 = vpop.permute.xlu0 %5095 }
 0x2cb   :  { %v10091_v26 = vpop.permute.xlu1 %4991 }
 0x2cc   :  { %4809 = vrot.lane.b32.xlu0 %v4801_v41, %s7224_s17 }
 0x2cd   :  { %4739 = vrot.lane.b32.xlu1 %v4732_v33, %s7222_s23  ;;  %v4868_v33 = vadd.f32 0.033991124, %v4865_v38  ;;  %s7236_s23 = smov 94  }
 0x2ce   :  { %v4432_v12 = vpop.permute.xlu0 %4431 }
 0x2cf   :  { %4441 = vst.msk [vmem:[%s10977_s3] sm:$0xff] %vm4440_vm11, %v4432_v12  ;;  %v10103_v9 = vpop.permute.xlu1 %4961  ;;  %v4902_v12 = vadd.f32 0.033991124, %v4899_v14  ;;  %v5035_v14 = vadd.f32 %v10163_v46, %v9995_v22  ;;  %v198_v22 = vld [vmem:[%s10976_s0 + $0x5b8] sm:$0xff] }
 0x2d0   :  { %4839 = vrot.lane.b32.xlu0 %v4833_v25, %s7225_s14  ;;  %v10203_v25 = vpop.f32.mrf.mxu0  ;;  %v4968_v3 = vadd.f32 %v10103_v9, %v10109_v27  ;;  %v196_v9 = vld [vmem:[%s10976_s0 + $0x5a8] sm:$0xff] }
 0x2d1   :  { %4773 = vrot.lane.b32.xlu1 %v4766_v58, %s7223_s4  ;;  %v5038_v46 = vadd.f32 0.033991124, %v5035_v14  ;;  %s7238_s4 = smov 98  }
 0x2d2   :  { %v4466_v35 = vpop.permute.xlu0 %4465  ;;  %v10219_v58 = vpop.f32.mrf.mxu0 }
 0x2d3   :  { %4475 = vst.msk [vmem:[%s10977_s3] sm:$0xff] %vm4474_vm12, %v4466_v35  ;;  %v10117_v50 = vpop.permute.xlu1 %4995  ;;  %v4934_v35 = vadd.f32 %v10057_v28, %v10035_v16  ;;  %v4966_v28 = vadd.f32 %v10077_v24, %v10085_v15  ;;  %v5000_v15 = vadd.f32 %v10097_v44, %v10091_v26  ;;  %v194_v26 = vld [vmem:[%s10976_s0 + $0x598] sm:$0xff] }
 0x2d4   :  { %4873 = vrot.lane.b32.xlu0 %v4867_v55, %s7226_s6  ;;  %v10241_v63 = vpop.f32.mrf.mxu0  ;;  %v5002_v27 = vadd.f32 %v10132_v31, %v10117_v50 }
 0x2d5   :  { %5263 = vrot.lane.b32.xlu1 %v9986_v18, %s7189_s16  ;;  %v179_v18 = vld [vmem:[%s10976_s0 + $0x520] sm:$0xff]  ;;  %v4937_v16 = vadd.f32 0.033991124, %v4934_v35  ;;  %v4969_v49 = vadd.f32 0.033991124, %v4966_v28 }
 0x2d6   :  { %v4436_v47 = vpop.permute.xlu0 %4435  ;;  %6794 = vmatprep.mubr.msk.f32.mxu0 %vm207_vm1, %v179_v18  ;;  %v5003_v44 = vadd.f32 0.033991124, %v5000_v15  ;;  %v5005_v50 = vadd.f32 0.033991124, %v5002_v27 }
 0x2d7   :  { %4443 = vst.msk [vmem:[%s10977_s3 + $0x10] sm:$0xff] %vm4440_vm11, %v4436_v47  ;;  %v4332_v45 = vpop.permute.xlu1 %4331  ;;  %6795 = vmatmul.mubr.msk.f32.gmra.mxu0 %vm207_vm1, %v180_v34  ;;  %v3397_v47 = vpop.f32.mrf.mxu1  ;;  %v191_v34 = vld [vmem:[%s10976_s0 + $0x580] sm:$0xff] }
 0x2d8   :  { %4340 = vst.msk [vmem:[%s10977_s3 + $0x8] sm:$0xff] %vm4338_vm8, %v4332_v45  ;;  %4843 = vrot.lane.b32.xlu0 %v4835_v4, %s7225_s14  ;;  %6797 = vmatprep.mubr.msk.f32.mxu0 %vm207_vm1, %v181_v5  ;;  %v10263_v45 = vpop.f32.mrf.mxu0  ;;  %v193_v5 = vld [vmem:[%s10976_s0 + $0x590] sm:$0xff]  ;;  %vm4882_vm8 = vcmask 622160  }
 0x2d9   :  { %4807 = vrot.lane.b32.xlu1 %v4800_v60, %s7224_s17  ;;  %v4936_v60 = vadd.f32 0.033991124, %v4933_v17  ;;  %s7235_s17 = smov 92  }
 0x2da   :  { %v4470_v10 = vpop.permute.xlu0 %4469  ;;  %v10281_v24 = vpop.f32.mrf.mxu0 }
 0x2db   :  { %4477 = vst.msk [vmem:[%s10977_s3 + $0x10] sm:$0xff] %vm4474_vm12, %v4470_v10  ;;  %v4366_v53 = vpop.permute.xlu1 %4365  ;;  %6798 = vmatmul.mubr.msk.f32.gmra.mxu0 %vm207_vm1, %v182_v32  ;;  %v10287_v10 = vpop.f32.mrf.mxu1 }
 0x2dc   :  { %4374 = vst.msk [vmem:[%s10977_s3 + $0x8] sm:$0xff] %vm4372_vm9, %v4366_v53  ;;  %4877 = vrot.lane.b32.xlu0 %v4869_v59, %s7226_s6  ;;  %6800 = vmatprep.mubr.msk.f32.mxu0 %vm207_vm1, %v183_v11  ;;  %v10296_v32 = vpop.f32.mrf.mxu0  ;;  %v5001_v11 = vadd.f32 %v9980_v1, %v10154_v7  ;;  %v4971_v1 = vadd.f32 0.033991124, %v4968_v3  ;;  %vm4916_vm9 = vcmask 638560  }
 0x2dd   :  { %4841 = vrot.lane.b32.xlu1 %v4834_v8, %s7225_s14  ;;  %v4970_v8 = vadd.f32 0.033991124, %v4967_v37  ;;  %s7244_s14 = smov 110  }
 0x2de   :  { %v10180_v23 = vpop.permute.xlu0 %5129  ;;  %v10318_v36 = vpop.f32.mrf.mxu0 }
 0x2df   :  { %v10184_v41 = vpop.permute.xlu1 %5025  ;;  %6801 = vmatmul.mubr.msk.f32.gmra.mxu0 %vm207_vm1, %v184_v30 }
 0x2e0   :  { %5299 = vrot.lane.b32.xlu0 %v7065_v21, %s7189_s16  ;;  %v3407_v21 = vpop.f32.mrf.mxu1 }
 0x2e1   :  { %5267 = vrot.lane.b32.xlu1 %v10011_v51, %s7189_s16  ;;  %v185_v51 = vld [vmem:[%s10976_s0 + $0x550] sm:$0xff] }
 0x2e2   :  { %v10199_v19 = vpop.permute.xlu0 %5163  ;;  %6803 = vmatprep.mubr.msk.f32.mxu0 %vm207_vm1, %v185_v51  ;;  %v10350_v42 = vpop.f32.mrf.mxu1 }
 0x2e3   :  { %v10205_v0 = vpop.permute.xlu1 %5059  ;;  %6804 = vmatmul.mubr.msk.f32.gmra.mxu0 %vm207_vm1, %v186_v54  ;;  %v197_v54 = vld [vmem:[%s10976_s0 + $0x5b0] sm:$0xff] }
 0x2e4   :  { %4907 = vrot.lane.b32.xlu0 %v4901_v40, %s7227_s15  ;;  %6806 = vmatprep.mubr.msk.f32.mxu0 %vm207_vm1, %v187_v39  ;;  %v195_v40 = vld [vmem:[%s10976_s0 + $0x5a0] sm:$0xff]  ;;  %v3417_v17 = vpop.f32.mrf.mxu1 }
 0x2e5   :  { %4875 = vrot.lane.b32.xlu1 %v4868_v33, %s7226_s6  ;;  %s7228_s6 = smov 78   ;;  %v5004_v33 = vadd.f32 0.033991124, %v5001_v11 }
 0x2e6   :  { %v4500_v20 = vpop.permute.xlu0 %4499 }
 0x2e7   :  { %4509 = vst.msk [vmem:[%s10977_s3] sm:$0xff] %vm4508_vm13, %v4500_v20  ;;  %v10225_v55 = vpop.permute.xlu1 %5029  ;;  %6807 = vmatmul.mubr.msk.f32.gmra.mxu0 %vm207_vm1, %v188_v62  ;;  %v200_v62 = vld [vmem:[%s10976_s0 + $0x5c8] sm:$0xff] }
 0x2e8   :  { %4941 = vrot.lane.b32.xlu0 %v4935_v13, %s7228_s6  ;;  %6809 = vmatprep.mubr.msk.f32.mxu0 %vm207_vm1, %v189_v57  ;;  %v10339_v13 = vpop.f32.mrf.mxu0 }
 0x2e9   :  { %4909 = vrot.lane.b32.xlu1 %v4902_v12, %s7227_s15  ;;  %v199_v12 = vld [vmem:[%s10976_s0 + $0x5c0] sm:$0xff] }
 0x2ea   :  { %v4534_v61 = vpop.permute.xlu0 %4533  ;;  %v10357_v39 = vpop.f32.mrf.mxu0 }
 0x2eb   :  { %4543 = vst.msk [vmem:[%s10977_s3] sm:$0xff] %vm4542_vm14, %v4534_v61  ;;  %v10247_v4 = vpop.permute.xlu1 %5063  ;;  %6810 = vmatmul.mubr.msk.f32.gmra.mxu0 %vm207_vm1, %v190_v29  ;;  %v5069_v61 = vadd.f32 %v10073_v56, %v10263_v45  ;;  %v202_v56 = vld [vmem:[%s10976_s0 + $0x5d8] sm:$0xff]  ;;  %v203_v45 = vld [vmem:[%s10976_s0 + $0x5e0] sm:$0xff] }
 0x2ec   :  { %4911 = vrot.lane.b32.xlu0 %v4903_v52, %s7227_s15  ;;  %6812 = vmatprep.mubr.msk.f32.mxu0 %vm207_vm1, %v191_v34  ;;  %v5034_v52 = vadd.f32 %v10184_v41, %v10178_v2  ;;  %v1534_v29 = vpop.f32.mrf.mxu0  ;;  %s7246_s15 = smov 114  }
 0x2ed   :  { %5297 = vrot.lane.b32.xlu1 %v3397_v47, %s7189_s16  ;;  %v201_v47 = vld [vmem:[%s10976_s0 + $0x5d0] sm:$0xff] }
 0x2ee   :  { %v4504_v6 = vpop.permute.xlu0 %4503  ;;  %v5037_v2 = vadd.f32 0.033991124, %v5034_v52  ;;  %v6757_v41 = vpop.f32.mrf.mxu0 }
 0x2ef   :  { %4511 = vst.msk [vmem:[%s10977_s3 + $0x10] sm:$0xff] %vm4508_vm13, %v4504_v6  ;;  %v4400_v18 = vpop.permute.xlu1 %4399  ;;  %6813 = vmatmul.mubr.msk.f32.gmra.mxu0 %vm207_vm1, %v192_v43  ;;  %v5072_v6 = vadd.f32 0.033991124, %v5069_v61 }
 0x2f0   :  { %4408 = vst.msk [vmem:[%s10977_s3 + $0x8] sm:$0xff] %vm4406_vm10, %v4400_v18  ;;  %4945 = vrot.lane.b32.xlu0 %v4937_v16, %s7228_s6  ;;  %6815 = vmatprep.mubr.msk.f32.mxu0 %vm207_vm1, %v193_v5  ;;  %v5068_v16 = vadd.f32 %v10203_v25, %v10205_v0  ;;  %v10397_v18 = vpop.f32.mrf.mxu0  ;;  %v5036_v0 = vadd.f32 %v10225_v55, %v10219_v58  ;;  %v206_v58 = vld [vmem:[%s10976_s0 + $0x5f8] sm:$0xff]  ;;  %vm4950_vm10 = vcmask 654960  }
 0x2f1   :  { %4943 = vrot.lane.b32.xlu1 %v4936_v60, %s7228_s6  ;;  %s7230_s6 = smov 82   ;;  %v5103_v60 = vadd.f32 %v10281_v24, %v10087_v48  ;;  %v204_v48 = vld [vmem:[%s10976_s0 + $0x5e8] sm:$0xff] }
 0x2f2   :  { %v4538_v59 = vpop.permute.xlu0 %4537  ;;  %v5071_v25 = vadd.f32 0.033991124, %v5068_v16  ;;  %v10415_v15 = vpop.f32.mrf.mxu0  ;;  %v5039_v55 = vadd.f32 0.033991124, %v5036_v0 }
 0x2f3   :  { %4545 = vst.msk [vmem:[%s10977_s3 + $0x10] sm:$0xff] %vm4542_vm14, %v4538_v59  ;;  %v4434_v53 = vpop.permute.xlu1 %4433  ;;  %6816 = vmatmul.mubr.msk.f32.gmra.mxu0 %vm207_vm1, %v194_v26  ;;  %v5106_v43 = vadd.f32 0.033991124, %v5103_v60  ;;  %v5070_v59 = vadd.f32 %v10241_v63, %v10247_v4 }
 0x2f4   :  { %4442 = vst.msk [vmem:[%s10977_s3 + $0x8] sm:$0xff] %vm4440_vm11, %v4434_v53  ;;  %4975 = vrot.lane.b32.xlu0 %v4969_v49, %s7229_s22  ;;  %6818 = vmatprep.mubr.msk.f32.mxu0 %vm207_vm1, %v195_v40  ;;  %v205_v49 = vld [vmem:[%s10976_s0 + $0x5f0] sm:$0xff]  ;;  %v10437_v5 = vpop.f32.mrf.mxu0  ;;  %v7074_v40 = vpop.f32.mrf.mxu1  ;;  %vm4984_vm11 = vcmask 671360  }
 0x2f5   :  { %4977 = vrot.lane.b32.xlu1 %v4970_v8, %s7229_s22  ;;  %v5137_v8 = vadd.f32 %v10180_v23, %v1534_v29  ;;  %v5073_v26 = vadd.f32 0.033991124, %v5070_v59 }
 0x2f6   :  { %v10309_v38 = vpop.permute.xlu0 %5197 }
 0x2f7   :  { %v10313_v30 = vpop.permute.xlu1 %5093  ;;  %6819 = vmatmul.mubr.msk.f32.gmra.mxu0 %vm207_vm1, %v196_v9  ;;  %v5140_v4 = vadd.f32 0.033991124, %v5137_v8 }
 0x2f8   :  { %5009 = vrot.lane.b32.xlu0 %v5003_v44, %s7230_s6  ;;  %6821 = vmatprep.mubr.msk.f32.mxu0 %vm207_vm1, %v197_v54  ;;  %v5102_v63 = vadd.f32 %v10313_v30, %v10296_v32  ;;  %v5171_v44 = vadd.f32 %v6757_v41, %v10199_v19 }
 0x2f9   :  { %5301 = vrot.lane.b32.xlu1 %v3407_v21, %s7189_s16  ;;  %v10449_v21 = vpop.f32.mrf.mxu0 }
 0x2fa   :  { %v4568_v7 = vpop.permute.xlu0 %4567  ;;  %v5105_v11 = vadd.f32 0.033991124, %v5102_v63  ;;  %v5174_v19 = vadd.f32 0.033991124, %v5171_v44 }
 0x2fb   :  { %4577 = vst.msk [vmem:[%s10977_s3] sm:$0xff] %vm4576_vm15, %v4568_v7  ;;  %v10334_v51 = vpop.permute.xlu1 %5127  ;;  %6822 = vmatmul.mubr.msk.f32.gmra.mxu0 %vm207_vm1, %v198_v22 }
 0x2fc   :  { %4979 = vrot.lane.b32.xlu0 %v4971_v1, %s7229_s22  ;;  %6824 = vmatprep.mubr.msk.f32.mxu0 %vm207_vm1, %v199_v12  ;;  %v5136_v32 = vadd.f32 %v10318_v36, %v10334_v51  ;;  %v1564_v1 = vpop.f32.mrf.mxu0  ;;  %s7249_s22 = smov 120  }
 0x2fd   :  { %5011 = vrot.lane.b32.xlu1 %v5004_v33, %s7230_s6  ;;  %v3427_v33 = vpop.f32.mrf.mxu1  ;;  %v5205_v14 = vadd.f32 %v10309_v38, %v1564_v1 }
 0x2fe   :  { %v4602_v31 = vpop.permute.xlu0 %4601  ;;  %v5139_v27 = vadd.f32 0.033991124, %v5136_v32  ;;  %v6766_v54 = vpop.f32.mrf.mxu0 }
 0x2ff   :  { %4611 = vst.msk [vmem:[%s10977_s3] sm:$0xff] %vm4610_vm0, %v4602_v31  ;;  %v10352_v20 = vpop.permute.xlu1 %5097  ;;  %6825 = vmatmul.mubr.msk.f32.gmra.mxu0 %vm207_vm1, %v200_v62  ;;  %v5208_v31 = vadd.f32 0.033991124, %v5205_v14  ;;  %v10488_v62 = vpop.f32.mrf.mxu1 }
 0x300   :  { %5013 = vrot.lane.b32.xlu0 %v5005_v50, %s7230_s6  ;;  %6827 = vmatprep.mubr.msk.f32.mxu0 %vm207_vm1, %v201_v47  ;;  %v5104_v7 = vadd.f32 %v10352_v20, %v10339_v13  ;;  %v1574_v50 = vpop.f32.mrf.mxu0  ;;  %s7237_s6 = smov 96  }
 0x301   :  { %5045 = vrot.lane.b32.xlu1 %v5038_v46, %s7231_s8  ;;  %v3437_v47 = vpop.f32.mrf.mxu1 }
 0x302   :  { %v4572_v35 = vpop.permute.xlu0 %4571  ;;  %v5107_v13 = vadd.f32 0.033991124, %v5104_v7  ;;  %v10485_v20 = vpop.f32.mrf.mxu0 }
 0x303   :  { %4579 = vst.msk [vmem:[%s10977_s3 + $0x10] sm:$0xff] %vm4576_vm15, %v4572_v35  ;;  %v10373_v57 = vpop.permute.xlu1 %5131  ;;  %6828 = vmatmul.mubr.msk.f32.gmra.mxu0 %vm207_vm1, %v202_v56  ;;  %v10590_v14 = vpop.f32.mrf.mxu1 }
 0x304   :  { %5333 = vrot.lane.b32.xlu0 %v3417_v17, %s7189_s16  ;;  %6830 = vmatprep.mubr.msk.f32.mxu0 %vm207_vm1, %v203_v45  ;;  %v5138_v38 = vadd.f32 %v10357_v39, %v10373_v57  ;;  %v10495_v61 = vpop.f32.mrf.mxu0 }
 0x305   :  { %5331 = vrot.lane.b32.xlu1 %v10287_v10, %s7189_s16 }
 0x306   :  { %v4606_v28 = vpop.permute.xlu0 %4605  ;;  %v5141_v12 = vadd.f32 0.033991124, %v5138_v38  ;;  %v10509_v56 = vpop.f32.mrf.mxu0 }
 0x307   :  { %4613 = vst.msk [vmem:[%s10977_s3 + $0x10] sm:$0xff] %vm4610_vm0, %v4606_v28  ;;  %v4468_v37 = vpop.permute.xlu1 %4467  ;;  %6831 = vmatmul.mubr.msk.f32.gmra.mxu0 %vm207_vm1, %v204_v48  ;;  %v3447_v38 = vpop.f32.mrf.mxu1 }
 0x308   :  { %4476 = vst.msk [vmem:[%s10977_s3 + $0x8] sm:$0xff] %vm4474_vm12, %v4468_v37  ;;  %5043 = vrot.lane.b32.xlu0 %v5037_v2, %s7231_s8  ;;  %6833 = vmatprep.mubr.msk.f32.mxu0 %vm207_vm1, %v205_v49  ;;  %vm5018_vm12 = vcmask 687760  }
 0x309   :  { %5079 = vrot.lane.b32.xlu1 %v5072_v6, %s7232_s2  ;;  %v1594_v6 = vpop.f32.mrf.mxu0 }
 0x30a   :  { %v5232_v34 = vpop.permute.xlu0 %5231 }
 0x30b   :  { %v4502_v24 = vpop.permute.xlu1 %4501  ;;  %6834 = vmatmul.mubr.msk.f32.gmra.mxu0 %vm207_vm1, %v206_v58  ;;  %vm4712_vm1 = vcmask 540160   ;;  %v5239_v46 = vadd.f32 %v6766_v54, %v5232_v34 }
 0x30c   :  { %4510 = vst.msk [vmem:[%s10977_s3 + $0x8] sm:$0xff] %vm4508_vm13, %v4502_v24  ;;  %5077 = vrot.lane.b32.xlu0 %v5071_v25, %s7232_s2  ;;  %vm5052_vm13 = vcmask 704160  }
 0x30d   :  { %5113 = vrot.lane.b32.xlu1 %v5106_v43, %s7233_s19  ;;  %v5242_v52 = vadd.f32 0.033991124, %v5239_v46 }
 0x30e   :  { %v4636_v10 = vpop.permute.xlu0 %4635 }
 0x30f   :  { %4645 = vst.msk [vmem:[%s10977_s3] sm:$0xff] %vm4644_vm2, %v4636_v10  ;;  %v10435_v53 = vpop.permute.xlu1 %5161 }
 0x310   :  { %5047 = vrot.lane.b32.xlu0 %v5039_v55, %s7231_s8  ;;  %v5170_v17 = vadd.f32 %v10435_v53, %v10397_v18 }
 0x311   :  { %5335 = vrot.lane.b32.xlu1 %v10350_v42, %s7189_s16 }
 0x312   :  { %v4670_v23 = vpop.permute.xlu0 %4669  ;;  %v5173_v2 = vadd.f32 0.033991124, %v5170_v17 }
 0x313   :  { %4679 = vst.msk [vmem:[%s10977_s3] sm:$0xff] %vm4678_vm3, %v4670_v23  ;;  %v5196_v3 = vpop.permute.xlu1 %5195 }
 0x314   :  { %5081 = vrot.lane.b32.xlu0 %v5073_v26, %s7232_s2  ;;  %v5204_v41 = vadd.f32 %v10415_v15, %v5196_v3 }
 0x315   :  { %5147 = vrot.lane.b32.xlu1 %v5140_v4, %s7234_s21 }
 0x316   :  { %v4640_v30 = vpop.permute.xlu0 %4639  ;;  %v5207_v60 = vadd.f32 0.033991124, %v5204_v41 }
 0x317   :  { %4647 = vst.msk [vmem:[%s10977_s3 + $0x10] sm:$0xff] %vm4644_vm2, %v4640_v30  ;;  %v5166_v9 = vpop.permute.xlu1 %5165 }
 0x318   :  { %5111 = vrot.lane.b32.xlu0 %v5105_v11, %s7233_s19  ;;  %v5172_v37 = vadd.f32 %v5166_v9, %v10437_v5  ;;  %v6775_v9 = vpop.f32.mrf.mxu0 }
 0x319   :  { %5181 = vrot.lane.b32.xlu1 %v5174_v19, %s7235_s17 }
 0x31a   :  { %v4674_v36 = vpop.permute.xlu0 %4673  ;;  %v5175_v0 = vadd.f32 0.033991124, %v5172_v37 }
 0x31b   :  { %4681 = vst.msk [vmem:[%s10977_s3 + $0x10] sm:$0xff] %vm4678_vm3, %v4674_v36  ;;  %v4536_v51 = vpop.permute.xlu1 %4535 }
 0x31c   :  { %4544 = vst.msk [vmem:[%s10977_s3 + $0x8] sm:$0xff] %vm4542_vm14, %v4536_v51  ;;  %5145 = vrot.lane.b32.xlu0 %v5139_v27, %s7234_s21  ;;  %vm5086_vm14 = vcmask 720560  }
 0x31d   :  { %5365 = vrot.lane.b32.xlu1 %v3427_v33, %s7189_s16 }
 0x31e   :  { %v4704_v22 = vpop.permute.xlu0 %4703 }
 0x31f   :  { %4713 = vst.msk [vmem:[%s10977_s3] sm:$0xff] %vm4712_vm1, %v4704_v22  ;;  %v4570_v42 = vpop.permute.xlu1 %4569 }
 0x320   :  { %4578 = vst.msk [vmem:[%s10977_s3 + $0x8] sm:$0xff] %vm4576_vm15, %v4570_v42  ;;  %5115 = vrot.lane.b32.xlu0 %v5107_v13, %s7233_s19  ;;  %vm5120_vm15 = vcmask 736960  }
 0x321   :  { %5215 = vrot.lane.b32.xlu1 %v5208_v31, %s7236_s23  ;;  %v1604_v31 = vpop.f32.mrf.mxu0 }
 0x322   :  { %v4738_v39 = vpop.permute.xlu0 %4737 }
 0x323   :  { %4747 = vst.msk [vmem:[%s10977_s3] sm:$0xff] %vm4746_vm4, %v4738_v39  ;;  %v5200_v35 = vpop.permute.xlu1 %5199 }
 0x324   :  { %5149 = vrot.lane.b32.xlu0 %v5141_v12, %s7234_s21  ;;  %v5206_v34 = vadd.f32 %v10449_v21, %v5200_v35 }
 0x325   :  { %5249 = vrot.lane.b32.xlu1 %v5242_v52, %s7237_s6  ;;  %v10626_v52 = vpop.f32.mrf.mxu1 }
 0x326   :  { %v4708_v57 = vpop.permute.xlu0 %4707  ;;  %v5209_v49 = vadd.f32 0.033991124, %v5206_v34 }
 0x327   :  { %4715 = vst.msk [vmem:[%s10977_s3 + $0x10] sm:$0xff] %vm4712_vm1, %v4708_v57  ;;  %v4604_v29 = vpop.permute.xlu1 %4603  ;;  %v10634_v17 = vpop.f32.mrf.mxu1 }
 0x328   :  { %4612 = vst.msk [vmem:[%s10977_s3 + $0x8] sm:$0xff] %vm4610_vm0, %v4604_v29  ;;  %5367 = vrot.lane.b32.xlu0 %v7074_v40, %s7189_s16  ;;  %vm5154_vm0 = vcmask 753360  }
 0x329   :  { %5369 = vrot.lane.b32.xlu1 %v3437_v47, %s7189_s16  ;;  %v6778_v47 = vpop.f32.mrf.mxu0 }
 0x32a   :  { %v4742_v16 = vpop.permute.xlu0 %4741 }
 0x32b   :  { %4749 = vst.msk [vmem:[%s10977_s3 + $0x10] sm:$0xff] %vm4746_vm4, %v4742_v16  ;;  %v4638_v28 = vpop.permute.xlu1 %4637 }
 0x32c   :  { %4646 = vst.msk [vmem:[%s10977_s3 + $0x8] sm:$0xff] %vm4644_vm2, %v4638_v28  ;;  %5179 = vrot.lane.b32.xlu0 %v5173_v2, %s7235_s17  ;;  %v1614_v2 = vpop.f32.mrf.mxu0  ;;  %vm5188_vm2 = vcmask 769760  }
 0x32e   :  { %v5266_v45 = vpop.permute.xlu0 %5265  ;;  %v6781_v28 = vpop.f32.mrf.mxu0 }
 0x32f   :  { %v5273_v18 = vadd.f32 %v5266_v45, %v1594_v6  ;;  %v5230_v48 = vpop.permute.xlu1 %5229 }
 0x330   :  { %5213 = vrot.lane.b32.xlu0 %v5207_v60, %s7236_s23  ;;  %v5238_v15 = vadd.f32 %v5230_v48, %v1574_v50  ;;  %v1624_v45 = vpop.f32.mrf.mxu0 }
 0x331   :  { %v5276_v25 = vadd.f32 0.033991124, %v5273_v18 }
 0x332   :  { %v4772_v43 = vpop.permute.xlu0 %4771  ;;  %v5241_v59 = vadd.f32 0.033991124, %v5238_v15 }
 0x333   :  { %4781 = vst.msk [vmem:[%s10977_s3] sm:$0xff] %vm4780_vm5, %v4772_v43  ;;  %v4672_v24 = vpop.permute.xlu1 %4671  ;;  %5283 = vrot.lane.b32.xlu1 %v5276_v25, %s7238_s4 }
 0x334   :  { %4680 = vst.msk [vmem:[%s10977_s3 + $0x8] sm:$0xff] %vm4678_vm3, %v4672_v24  ;;  %5183 = vrot.lane.b32.xlu0 %v5175_v0, %s7235_s17  ;;  %vm5222_vm3 = vcmask 786160  }
 0x336   :  { %v4806_v58 = vpop.permute.xlu0 %4805 }
 0x337   :  { %4815 = vst.msk [vmem:[%s10977_s3] sm:$0xff] %vm4814_vm6, %v4806_v58  ;;  %v4706_v55 = vpop.permute.xlu1 %4705 }
 0x338   :  { %4714 = vst.msk [vmem:[%s10977_s3 + $0x8] sm:$0xff] %vm4712_vm1, %v4706_v55  ;;  %5217 = vrot.lane.b32.xlu0 %v5209_v49, %s7236_s23  ;;  %vm5256_vm1 = vcmask 802560   ;;  %s7251_s23 = smov 124  }
 0x33a   :  { %v4776_v10 = vpop.permute.xlu0 %4775 }
 0x33b   :  { %4783 = vst.msk [vmem:[%s10977_s3 + $0x10] sm:$0xff] %vm4780_vm5, %v4776_v10  ;;  %v5234_v8 = vpop.permute.xlu1 %5233 }
 0x33c   :  { %5247 = vrot.lane.b32.xlu0 %v5241_v59, %s7237_s6  ;;  %v5240_v3 = vadd.f32 %v5234_v8, %v10495_v61 }
 0x33e   :  { %v4810_v53 = vpop.permute.xlu0 %4809  ;;  %v5243_v30 = vadd.f32 0.033991124, %v5240_v3 }
 0x33f   :  { %4817 = vst.msk [vmem:[%s10977_s3 + $0x10] sm:$0xff] %vm4814_vm6, %v4810_v53  ;;  %v4740_v5 = vpop.permute.xlu1 %4739 }
 0x340   :  { %4748 = vst.msk [vmem:[%s10977_s3 + $0x8] sm:$0xff] %vm4746_vm4, %v4740_v5  ;;  %vm5290_vm4 = vcmask 818960  }
 0x342   :  { %v4840_v26 = vpop.permute.xlu0 %4839 }
 0x343   :  { %4849 = vst.msk [vmem:[%s10977_s3] sm:$0xff] %vm4848_vm7, %v4840_v26  ;;  %v4774_v63 = vpop.permute.xlu1 %4773 }
 0x344   :  { %4782 = vst.msk [vmem:[%s10977_s3 + $0x8] sm:$0xff] %vm4780_vm5, %v4774_v63  ;;  %vm5324_vm5 = vcmask 835360  }
 0x346   :  { %v4874_v23 = vpop.permute.xlu0 %4873 }
 0x347   :  { %4883 = vst.msk [vmem:[%s10977_s3] sm:$0xff] %vm4882_vm8, %v4874_v23  ;;  %v5264_v4 = vpop.permute.xlu1 %5263 }
 0x348   :  { %v5272_v44 = vadd.f32 %v10485_v20, %v5264_v4 }
 0x34a   :  { %v5275_v21 = vadd.f32 0.033991124, %v5272_v44  ;;  %v4844_v11 = vpop.permute.xlu0 %4843 }
 0x34b   :  { %4851 = vst.msk [vmem:[%s10977_s3 + $0x10] sm:$0xff] %vm4848_vm7, %v4844_v11  ;;  %v4808_v32 = vpop.permute.xlu1 %4807  ;;  %v6784_v11 = vpop.f32.mrf.mxu0 }
 0x34c   :  { %4816 = vst.msk [vmem:[%s10977_s3 + $0x8] sm:$0xff] %vm4814_vm6, %v4808_v32  ;;  %5281 = vrot.lane.b32.xlu0 %v5275_v21, %s7238_s4  ;;  %vm5358_vm6 = vcmask 851760  }
 0x34e   :  { %v4878_v40 = vpop.permute.xlu0 %4877 }
 0x34f   :  { %4885 = vst.msk [vmem:[%s10977_s3 + $0x10] sm:$0xff] %vm4882_vm8, %v4878_v40  ;;  %v4842_v19 = vpop.permute.xlu1 %4841 }
 0x350   :  { %4850 = vst.msk [vmem:[%s10977_s3 + $0x8] sm:$0xff] %vm4848_vm7, %v4842_v19  ;;  %5251 = vrot.lane.b32.xlu0 %v5243_v30, %s7237_s6  ;;  %s7240_s6 = smov 102   ;;  %v1634_v19 = vpop.f32.mrf.mxu0  ;;  %vm5392_vm7 = vcmask 868160  }
 0x352   :  { %v5300_v1 = vpop.permute.xlu0 %5299 }
 0x353   :  { %v5307_v27 = vadd.f32 %v6775_v9, %v5300_v1  ;;  %v5268_v7 = vpop.permute.xlu1 %5267 }
 0x354   :  { %v5274_v36 = vadd.f32 %v10509_v56, %v5268_v7  ;;  %v10640_v56 = vpop.f32.mrf.mxu1 }
 0x355   :  { %v5310_v33 = vadd.f32 0.033991124, %v5307_v27 }
 0x356   :  { %v5277_v51 = vadd.f32 0.033991124, %v5274_v36  ;;  %v4908_v54 = vpop.permute.xlu0 %4907  ;;  %v10649_v6 = vpop.f32.mrf.mxu1 }
 0x357   :  { %4917 = vst.msk [vmem:[%s10977_s3] sm:$0xff] %vm4916_vm9, %v4908_v54  ;;  %v4876_v13 = vpop.permute.xlu1 %4875  ;;  %5317 = vrot.lane.b32.xlu1 %v5310_v33, %s7239_s1 }
 0x358   :  { %4884 = vst.msk [vmem:[%s10977_s3 + $0x8] sm:$0xff] %vm4882_vm8, %v4876_v13  ;;  %5285 = vrot.lane.b32.xlu0 %v5277_v51, %s7238_s4  ;;  %v10659_v18 = vpop.f32.mrf.mxu1  ;;  %v10722_v13 = vpop.f32.mrf.mxu0  ;;  %vm5426_vm8 = vcmask 884560  }
 0x35a   :  { %v4942_v22 = vpop.permute.xlu0 %4941  ;;  %v10661_v24 = vpop.f32.mrf.mxu1 }
 0x35b   :  { %4951 = vst.msk [vmem:[%s10977_s3] sm:$0xff] %vm4950_vm10, %v4942_v22  ;;  %v4910_v50 = vpop.permute.xlu1 %4909  ;;  %5399 = vrot.lane.b32.xlu1 %v10488_v62, %s7189_s16 }
 0x35c   :  { %4918 = vst.msk [vmem:[%s10977_s3 + $0x8] sm:$0xff] %vm4916_vm9, %v4910_v50  ;;  %5401 = vrot.lane.b32.xlu0 %v3447_v38, %s7189_s16  ;;  %v10671_v59 = vpop.f32.mrf.mxu1 }
 0x35e   :  { %v4912_v46 = vpop.permute.xlu0 %4911  ;;  %v10682_v5 = vpop.f32.mrf.mxu1 }
 0x35f   :  { %4919 = vst.msk [vmem:[%s10977_s3 + $0x10] sm:$0xff] %vm4916_vm9, %v4912_v46  ;;  %v5298_v42 = vpop.permute.xlu1 %5297  ;;  %vm5460_vm9 = vcmask 900960  }
 0x360   :  { %v5306_v20 = vadd.f32 %v5298_v42, %v1604_v31  ;;  %v10688_v4 = vpop.f32.mrf.mxu1  ;;  %v1644_v31 = vpop.f32.mrf.mxu0 }
 0x362   :  { %v5309_v12 = vadd.f32 0.033991124, %v5306_v20  ;;  %v4946_v39 = vpop.permute.xlu0 %4945  ;;  %v10698_v32 = vpop.f32.mrf.mxu1 }
 0x363   :  { %4953 = vst.msk [vmem:[%s10977_s3 + $0x10] sm:$0xff] %vm4950_vm10, %v4946_v39  ;;  %v4944_v62 = vpop.permute.xlu1 %4943 }
 0x364   :  { %4952 = vst.msk [vmem:[%s10977_s3 + $0x8] sm:$0xff] %vm4950_vm10, %v4944_v62  ;;  %5315 = vrot.lane.b32.xlu0 %v5309_v12, %s7239_s1  ;;  %v10708_v9 = vpop.f32.mrf.mxu1  ;;  %vm5494_vm10 = vcmask 917360  }
 0x366   :  { %v4976_v35 = vpop.permute.xlu0 %4975  ;;  %v3507_v36 = vpop.f32.mrf.mxu1 }
 0x367   :  { %4985 = vst.msk [vmem:[%s10977_s3] sm:$0xff] %vm4984_vm11, %v4976_v35  ;;  %v4978_v61 = vpop.permute.xlu1 %4977 }
 0x368   :  { %4986 = vst.msk [vmem:[%s10977_s3 + $0x8] sm:$0xff] %vm4984_vm11, %v4978_v61  ;;  %v7101_v38 = vpop.f32.mrf.mxu1 }
 0x36a   :  { %v5010_v57 = vpop.permute.xlu0 %5009  ;;  %v3517_v46 = vpop.f32.mrf.mxu1 }
 0x36b   :  { %5019 = vst.msk [vmem:[%s10977_s3] sm:$0xff] %vm5018_vm12, %v5010_v57  ;;  %v5302_v29 = vpop.permute.xlu1 %5301 }
 0x36c   :  { %v5308_v49 = vadd.f32 %v5302_v29, %v1614_v2  ;;  %v7104_v35 = vpop.f32.mrf.mxu1 }
 0x36e   :  { %v4980_v41 = vpop.permute.xlu0 %4979  ;;  %v5311_v10 = vadd.f32 0.033991124, %v5308_v49 }
 0x36f   :  { %4987 = vst.msk [vmem:[%s10977_s3 + $0x10] sm:$0xff] %vm4984_vm11, %v4980_v41  ;;  %v5012_v16 = vpop.permute.xlu1 %5011  ;;  %vm5528_vm11 = vcmask 933760  }
 0x370   :  { %5020 = vst.msk [vmem:[%s10977_s3 + $0x8] sm:$0xff] %vm5018_vm12, %v5012_v16 }
 0x372   :  { %v5014_v60 = vpop.permute.xlu0 %5013 }
 0x373   :  { %5021 = vst.msk [vmem:[%s10977_s3 + $0x10] sm:$0xff] %vm5018_vm12, %v5014_v60  ;;  %v5046_v37 = vpop.permute.xlu1 %5045  ;;  %vm5562_vm12 = vcmask 950160  }
 0x374   :  { %5054 = vst.msk [vmem:[%s10977_s3 + $0x8] sm:$0xff] %vm5052_vm13, %v5046_v37 }
 0x376   :  { %v5334_v48 = vpop.permute.xlu0 %5333 }
 0x377   :  { %v5341_v25 = vadd.f32 %v5334_v48, %v1624_v45  ;;  %v5332_v0 = vpop.permute.xlu1 %5331 }
 0x378   :  { %v5340_v34 = vadd.f32 %v6778_v47, %v5332_v0  ;;  %v3527_v47 = vpop.f32.mrf.mxu1 }
 0x379   :  { %v5344_v43 = vadd.f32 0.033991124, %v5341_v25 }
 0x37a   :  { %v5343_v15 = vadd.f32 0.033991124, %v5340_v34  ;;  %v5044_v58 = vpop.permute.xlu0 %5043  ;;  %v7107_v41 = vpop.f32.mrf.mxu1 }
 0x37b   :  { %5053 = vst.msk [vmem:[%s10977_s3] sm:$0xff] %vm5052_vm13, %v5044_v58  ;;  %v5080_v55 = vpop.permute.xlu1 %5079  ;;  %5351 = vrot.lane.b32.xlu1 %v5344_v43, %s7240_s6  ;;  %v6790_v58 = vpop.f32.mrf.mxu0 }
 0x37c   :  { %5088 = vst.msk [vmem:[%s10977_s3 + $0x8] sm:$0xff] %vm5086_vm14, %v5080_v55  ;;  %5349 = vrot.lane.b32.xlu0 %v5343_v15, %s7240_s6 }
 0x37e   :  { %v5078_v8 = vpop.permute.xlu0 %5077 }
 0x37f   :  { %5087 = vst.msk [vmem:[%s10977_s3] sm:$0xff] %vm5086_vm14, %v5078_v8  ;;  %v5114_v53 = vpop.permute.xlu1 %5113 }
 0x380   :  { %5122 = vst.msk [vmem:[%s10977_s3 + $0x8] sm:$0xff] %vm5120_vm15, %v5114_v53  ;;  %5319 = vrot.lane.b32.xlu0 %v5311_v10, %s7239_s1  ;;  %v1654_v10 = vpop.f32.mrf.mxu0  ;;  %s7247_s1 = smov 116  }
 0x382   :  { %v5048_v26 = vpop.permute.xlu0 %5047  ;;  %v6793_v53 = vpop.f32.mrf.mxu0 }
 0x383   :  { %5055 = vst.msk [vmem:[%s10977_s3 + $0x10] sm:$0xff] %vm5052_vm13, %v5048_v26  ;;  %v5336_v63 = vpop.permute.xlu1 %5335  ;;  %vm5596_vm13 = vcmask 966560  }
 0x384   :  { %v5342_v23 = vadd.f32 %v6781_v28, %v5336_v63 }
 0x386   :  { %v5345_v44 = vadd.f32 0.033991124, %v5342_v23  ;;  %v5082_v3 = vpop.permute.xlu0 %5081  ;;  %v1664_v23 = vpop.f32.mrf.mxu0 }
 0x387   :  { %5089 = vst.msk [vmem:[%s10977_s3 + $0x10] sm:$0xff] %vm5086_vm14, %v5082_v3  ;;  %v5148_v21 = vpop.permute.xlu1 %5147  ;;  %vm5630_vm14 = vcmask 982960  }
 0x388   :  { %5156 = vst.msk [vmem:[%s10977_s3 + $0x8] sm:$0xff] %vm5154_vm0, %v5148_v21  ;;  %5353 = vrot.lane.b32.xlu0 %v5345_v44, %s7240_s6 }
 0x38a   :  { %v5112_v30 = vpop.permute.xlu0 %5111 }
 0x38b   :  { %5121 = vst.msk [vmem:[%s10977_s3] sm:$0xff] %vm5120_vm15, %v5112_v30  ;;  %v5182_v40 = vpop.permute.xlu1 %5181 }
 0x38c   :  { %5190 = vst.msk [vmem:[%s10977_s3 + $0x8] sm:$0xff] %vm5188_vm2, %v5182_v40 }
 0x38e   :  { %v5146_v1 = vpop.permute.xlu0 %5145 }
 0x38f   :  { %5155 = vst.msk [vmem:[%s10977_s3] sm:$0xff] %vm5154_vm0, %v5146_v1  ;;  %v5366_v27 = vpop.permute.xlu1 %5365 }
 0x390   :  { %v5374_v7 = vadd.f32 %v5366_v27, %v1634_v19 }
 0x392   :  { %v5377_v33 = vadd.f32 0.033991124, %v5374_v7  ;;  %v5116_v51 = vpop.permute.xlu0 %5115 }
 0x393   :  { %5123 = vst.msk [vmem:[%s10977_s3 + $0x10] sm:$0xff] %vm5120_vm15, %v5116_v51  ;;  %v5216_v54 = vpop.permute.xlu1 %5215  ;;  %vm5664_vm15 = vcmask 999360  }
 0x394   :  { %5224 = vst.msk [vmem:[%s10977_s3 + $0x8] sm:$0xff] %vm5222_vm3, %v5216_v54  ;;  %5383 = vrot.lane.b32.xlu0 %v5377_v33, %s7241_s5 }
 0x396   :  { %v5150_v22 = vpop.permute.xlu0 %5149 }
 0x397   :  { %5157 = vst.msk [vmem:[%s10977_s3 + $0x10] sm:$0xff] %vm5154_vm0, %v5150_v22  ;;  %v5250_v50 = vpop.permute.xlu1 %5249  ;;  %v6796_v3 = vpop.f32.mrf.mxu0  ;;  %vm5698_vm0 = vcmask 1015760  }
 0x398   :  { %5258 = vst.msk [vmem:[%s10977_s3 + $0x8] sm:$0xff] %vm5256_vm1, %v5250_v50 }
 0x399   :  { %v1674_v21 = vpop.f32.mrf.mxu0 }
 0x39a   :  { %v5368_v42 = vpop.permute.xlu0 %5367 }
 0x39b   :  { %v5375_v20 = vadd.f32 %v6784_v11, %v5368_v42  ;;  %v5370_v12 = vpop.permute.xlu1 %5369  ;;  %v6799_v11 = vpop.f32.mrf.mxu0 }
 0x39c   :  { %v5376_v39 = vadd.f32 %v5370_v12, %v1644_v31 }
 0x39d   :  { %v5378_v62 = vadd.f32 0.033991124, %v5375_v20 }
 0x39e   :  { %v5379_v61 = vadd.f32 0.033991124, %v5376_v39  ;;  %v5180_v57 = vpop.permute.xlu0 %5179 }
 0x39f   :  { %5189 = vst.msk [vmem:[%s10977_s3] sm:$0xff] %vm5188_vm2, %v5180_v57  ;;  %5385 = vrot.lane.b32.xlu1 %v5378_v62, %s7241_s5 }
 0x3a0   :  { %5387 = vrot.lane.b32.xlu0 %v5379_v61, %s7241_s5 }
 0x3a2   :  { %v5214_v29 = vpop.permute.xlu0 %5213 }
 0x3a3   :  { %5223 = vst.msk [vmem:[%s10977_s3] sm:$0xff] %vm5222_vm3, %v5214_v29  ;;  %5403 = vrot.lane.b32.xlu1 %v10590_v14, %s7189_s16  ;;  %v3537_v14 = vpop.f32.mrf.mxu1 }
 0x3a4   :  { %5433 = vrot.lane.b32.xlu0 %v10634_v17, %s7189_s16 }
 0x3a5   :  { %v5284_v2 = vpop.permute.xlu1 %5283  ;;  %v7110_v28 = vpop.f32.mrf.mxu1 }
 0x3a6   :  { %5292 = vst.msk [vmem:[%s10977_s3 + $0x8] sm:$0xff] %vm5290_vm4, %v5284_v2  ;;  %v5184_v16 = vpop.permute.xlu0 %5183 }
 0x3a7   :  { %5191 = vst.msk [vmem:[%s10977_s3 + $0x10] sm:$0xff] %vm5188_vm2, %v5184_v16  ;;  %5435 = vrot.lane.b32.xlu1 %v10626_v52, %s7189_s16  ;;  %v3547_v52 = vpop.f32.mrf.mxu1  ;;  %vm5732_vm2 = vcmask 1032160  }
 0x3a8   :  { %5437 = vrot.lane.b32.xlu0 %v10649_v6, %s7189_s16 }
 0x3aa   :  { %v5218_v17 = vpop.permute.xlu0 %5217 }
 0x3ab   :  { %5225 = vst.msk [vmem:[%s10977_s3 + $0x10] sm:$0xff] %vm5222_vm3, %v5218_v17  ;;  %5467 = vrot.lane.b32.xlu1 %v10640_v56, %s7189_s16  ;;  %v7113_v56 = vpop.f32.mrf.mxu1  ;;  %vm5766_vm3 = vcmask 1048560  }
 0x3ac   :  { %5469 = vrot.lane.b32.xlu0 %v10661_v24, %s7189_s16 }
 0x3ad   :  { %v3557_v6 = vpop.f32.mrf.mxu1 }
 0x3ae   :  { %v5248_v60 = vpop.permute.xlu0 %5247 }
 0x3af   :  { %5257 = vst.msk [vmem:[%s10977_s3] sm:$0xff] %vm5256_vm1, %v5248_v60  ;;  %5471 = vrot.lane.b32.xlu1 %v10659_v18, %s7189_s16  ;;  %v7116_v37 = vpop.f32.mrf.mxu1 }
 0x3b0   :  { %5501 = vrot.lane.b32.xlu0 %v10682_v5, %s7189_s16 }
 0x3b1   :  { %v3567_v18 = vpop.f32.mrf.mxu1 }
 0x3b3   :  { %5503 = vrot.lane.b32.xlu1 %v10671_v59, %s7189_s16  ;;  %v7119_v25 = vpop.f32.mrf.mxu1 }
 0x3b4   :  { %5505 = vrot.lane.b32.xlu0 %v10698_v32, %s7189_s16  ;;  %v1684_v32 = vpop.f32.mrf.mxu0 }
 0x3b5   :  { %v3577_v34 = vpop.f32.mrf.mxu1 }
 0x3b6   :  { %v6802_v19 = vpop.f32.mrf.mxu0 }
 0x3b7   :  { %5535 = vrot.lane.b32.xlu1 %v10688_v4, %s7189_s16  ;;  %v7122_v24 = vpop.f32.mrf.mxu1 }
 0x3b8   :  { %5537 = vrot.lane.b32.xlu0 %v3507_v36, %s7189_s16  ;;  %v1694_v1 = vpop.f32.mrf.mxu0 }
 0x3b9   :  { %v3587_v15 = vpop.f32.mrf.mxu1 }
 0x3ba   :  { %v10832_v27 = vpop.f32.mrf.mxu0 }
 0x3bb   :  { %5539 = vrot.lane.b32.xlu1 %v10708_v9, %s7189_s16  ;;  %v7125_v55 = vpop.f32.mrf.mxu1 }
 0x3bc   :  { %5569 = vrot.lane.b32.xlu0 %v3517_v46, %s7189_s16  ;;  %v1704_v36 = vpop.f32.mrf.mxu0 }
 0x3bd   :  { %v3597_v5 = vpop.f32.mrf.mxu1 }
 0x3be   :  { %v5282_v45 = vpop.permute.xlu0 %5281  ;;  %v10837_v33 = vpop.f32.mrf.mxu0 }
 0x3bf   :  { %5291 = vst.msk [vmem:[%s10977_s3] sm:$0xff] %vm5290_vm4, %v5282_v45  ;;  %5571 = vrot.lane.b32.xlu1 %v7101_v38, %s7189_s16 }
 0x3c0   :  { %5573 = vrot.lane.b32.xlu0 %v3527_v47, %s7189_s16  ;;  %v1714_v51 = vpop.f32.mrf.mxu0 }
 0x3c2   :  { %v5252_v48 = vpop.permute.xlu0 %5251 }
 0x3c3   :  { %5259 = vst.msk [vmem:[%s10977_s3 + $0x10] sm:$0xff] %vm5256_vm1, %v5252_v48  ;;  %5603 = vrot.lane.b32.xlu1 %v7104_v35, %s7189_s16 }
 0x3c4   :  { %5605 = vrot.lane.b32.xlu0 %v3537_v14, %s7189_s16 }
 0x3c7   :  { %5607 = vrot.lane.b32.xlu1 %v7107_v41, %s7189_s16 }
 0x3c8   :  { %5637 = vrot.lane.b32.xlu0 %v3547_v52, %s7189_s16 }
 0x3c9   :  { %v5318_v0 = vpop.permute.xlu1 %5317 }
 0x3ca   :  { %5326 = vst.msk [vmem:[%s10977_s3 + $0x8] sm:$0xff] %vm5324_vm5, %v5318_v0  ;;  %v5286_v43 = vpop.permute.xlu0 %5285 }
 0x3cb   :  { %5293 = vst.msk [vmem:[%s10977_s3 + $0x10] sm:$0xff] %vm5290_vm4, %v5286_v43  ;;  %5639 = vrot.lane.b32.xlu1 %v7110_v28, %s7189_s16 }
 0x3cc   :  { %5641 = vrot.lane.b32.xlu0 %v3557_v6, %s7189_s16 }
 0x3cd   :  { %v5400_v8 = vpop.permute.xlu1 %5399 }
 0x3ce   :  { %v5402_v49 = vpop.permute.xlu0 %5401  ;;  %v5408_v26 = vadd.f32 %v10722_v13, %v5400_v8  ;;  %v10842_v13 = vpop.f32.mrf.mxu0 }
 0x3cf   :  { %5671 = vrot.lane.b32.xlu1 %v7113_v56, %s7189_s16  ;;  %v5409_v63 = vadd.f32 %v5402_v49, %v1654_v10 }
 0x3d0   :  { %5673 = vrot.lane.b32.xlu0 %v3567_v18, %s7189_s16  ;;  %v5411_v4 = vadd.f32 0.033991124, %v5408_v26  ;;  %v10844_v38 = vpop.f32.mrf.mxu0 }
 0x3d1   :  { %v5412_v44 = vadd.f32 0.033991124, %v5409_v63 }
 0x3d2   :  { %v10846_v22 = vpop.f32.mrf.mxu0 }
 0x3d3   :  { %5675 = vrot.lane.b32.xlu1 %v7116_v37, %s7189_s16 }
 0x3d4   :  { %5705 = vrot.lane.b32.xlu0 %v3577_v34, %s7189_s16  ;;  %v10854_v46 = vpop.f32.mrf.mxu0 }
 0x3d6   :  { %v5316_v59 = vpop.permute.xlu0 %5315  ;;  %v10856_v35 = vpop.f32.mrf.mxu0 }
 0x3d7   :  { %5325 = vst.msk [vmem:[%s10977_s3] sm:$0xff] %vm5324_vm5, %v5316_v59  ;;  %5707 = vrot.lane.b32.xlu1 %v7119_v25, %s7189_s16 }
 0x3d8   :  { %5709 = vrot.lane.b32.xlu0 %v3587_v15, %s7189_s16  ;;  %v10859_v16 = vpop.f32.mrf.mxu0 }
 0x3da   :  { %v10861_v6 = vpop.f32.mrf.mxu0 }
 0x3db   :  { %5739 = vrot.lane.b32.xlu1 %v7122_v24, %s7189_s16 }
 0x3dc   :  { %5741 = vrot.lane.b32.xlu0 %v3597_v5, %s7189_s16  ;;  %v1754_v34 = vpop.f32.mrf.mxu0 }
 0x3de   :  { %v6823_v59 = vpop.f32.mrf.mxu0 }
 0x3df   :  { %5743 = vrot.lane.b32.xlu1 %v7125_v55, %s7189_s16 }
 0x3e0   :  { %5417 = vrot.lane.b32.xlu0 %v5411_v4, %s7242_s26 }
 0x3e3   :  { %5419 = vrot.lane.b32.xlu1 %v5412_v44, %s7242_s26 }
 0x3ed   :  { %v5352_v30 = vpop.permute.xlu1 %5351 }
 0x3ee   :  { %5360 = vst.msk [vmem:[%s10977_s3 + $0x8] sm:$0xff] %vm5358_vm6, %v5352_v30  ;;  %v5350_v40 = vpop.permute.xlu0 %5349 }
 0x3ef   :  { %5359 = vst.msk [vmem:[%s10977_s3] sm:$0xff] %vm5358_vm6, %v5350_v40 }
 0x3f2   :  { %v5320_v9 = vpop.permute.xlu0 %5319 }
 0x3f3   :  { %5327 = vst.msk [vmem:[%s10977_s3 + $0x10] sm:$0xff] %vm5324_vm5, %v5320_v9 }
 0x3fa   :  { %v5354_v7 = vpop.permute.xlu0 %5353 }
 0x3fb   :  { %5361 = vst.msk [vmem:[%s10977_s3 + $0x10] sm:$0xff] %vm5358_vm6, %v5354_v7 }
 0x406   :  { %v5384_v54 = vpop.permute.xlu0 %5383 }
 0x407   :  { %5393 = vst.msk [vmem:[%s10977_s3] sm:$0xff] %vm5392_vm7, %v5384_v54 }
 0x411   :  { %v5386_v50 = vpop.permute.xlu1 %5385 }
 0x412   :  { %5394 = vst.msk [vmem:[%s10977_s3 + $0x8] sm:$0xff] %vm5392_vm7, %v5386_v50  ;;  %v5388_v31 = vpop.permute.xlu0 %5387 }
 0x413   :  { %5395 = vst.msk [vmem:[%s10977_s3 + $0x10] sm:$0xff] %vm5392_vm7, %v5388_v31 }
 0x415   :  { %v5404_v42 = vpop.permute.xlu1 %5403 }
 0x416   :  { %v5410_v20 = vadd.f32 %v6790_v58, %v5404_v42  ;;  %v5434_v12 = vpop.permute.xlu0 %5433 }
 0x417   :  { %v5442_v39 = vadd.f32 %v5434_v12, %v1664_v23  ;;  %v1764_v23 = vpop.f32.mrf.mxu0 }
 0x418   :  { %v5413_v62 = vadd.f32 0.033991124, %v5410_v20 }
 0x419   :  { %v5445_v61 = vadd.f32 0.033991124, %v5442_v39  ;;  %v5436_v57 = vpop.permute.xlu1 %5435  ;;  %v6826_v30 = vpop.f32.mrf.mxu0 }
 0x41a   :  { %v5443_v47 = vadd.f32 %v6793_v53, %v5436_v57  ;;  %v5438_v29 = vpop.permute.xlu0 %5437  ;;  %5421 = vrot.lane.b32.xlu0 %v5413_v62, %s7242_s26 }
 0x41b   :  { %v5444_v2 = vadd.f32 %v5438_v29, %v1674_v21  ;;  %5451 = vrot.lane.b32.xlu1 %v5445_v61, %s7243_s10 }
 0x41c   :  { %v5446_v41 = vadd.f32 0.033991124, %v5443_v47 }
 0x41d   :  { %v5447_v14 = vadd.f32 0.033991124, %v5444_v2  ;;  %v5468_v17 = vpop.permute.xlu1 %5467 }
 0x41e   :  { %v5476_v28 = vadd.f32 %v6796_v3, %v5468_v17  ;;  %v5470_v60 = vpop.permute.xlu0 %5469  ;;  %5453 = vrot.lane.b32.xlu0 %v5446_v41, %s7243_s10 }
 0x41f   :  { %v5477_v52 = vadd.f32 %v5470_v60, %v1684_v32  ;;  %5455 = vrot.lane.b32.xlu1 %v5447_v14, %s7243_s10 }
 0x420   :  { %v5479_v56 = vadd.f32 0.033991124, %v5476_v28 }
 0x421   :  { %v5480_v37 = vadd.f32 0.033991124, %v5477_v52  ;;  %v5472_v45 = vpop.permute.xlu1 %5471 }
 0x422   :  { %v5478_v18 = vadd.f32 %v6799_v11, %v5472_v45  ;;  %v5502_v48 = vpop.permute.xlu0 %5501  ;;  %5485 = vrot.lane.b32.xlu0 %v5479_v56, %s7244_s14 }
 0x423   :  { %v5510_v25 = vadd.f32 %v5502_v48, %v1694_v1  ;;  %5487 = vrot.lane.b32.xlu1 %v5480_v37, %s7244_s14 }
 0x424   :  { %v5481_v0 = vadd.f32 0.033991124, %v5478_v18 }
 0x425   :  { %v5513_v43 = vadd.f32 0.033991124, %v5510_v25  ;;  %v5504_v24 = vpop.permute.xlu1 %5503 }
 0x426   :  { %v5511_v49 = vadd.f32 %v6802_v19, %v5504_v24  ;;  %v5506_v15 = vpop.permute.xlu0 %5505  ;;  %5489 = vrot.lane.b32.xlu0 %v5481_v0, %s7244_s14 }
 0x427   :  { %v5512_v58 = vadd.f32 %v5506_v15, %v1704_v36  ;;  %5519 = vrot.lane.b32.xlu1 %v5513_v43, %s7245_s30  ;;  %v1774_v36 = vpop.f32.mrf.mxu0 }
 0x428   :  { %v5514_v55 = vadd.f32 0.033991124, %v5511_v49 }
 0x429   :  { %v5515_v10 = vadd.f32 0.033991124, %v5512_v58  ;;  %v5536_v8 = vpop.permute.xlu1 %5535  ;;  %v6829_v42 = vpop.f32.mrf.mxu0 }
 0x42a   :  { %v5544_v53 = vadd.f32 %v10832_v27, %v5536_v8  ;;  %v5538_v5 = vpop.permute.xlu0 %5537  ;;  %5521 = vrot.lane.b32.xlu0 %v5514_v55, %s7245_s30 }
 0x42b   :  { %v5545_v26 = vadd.f32 %v5538_v5, %v1714_v51  ;;  %5523 = vrot.lane.b32.xlu1 %v5515_v10, %s7245_s30  ;;  %v1784_v61 = vpop.f32.mrf.mxu0 }
 0x42c   :  { %v5547_v63 = vadd.f32 0.033991124, %v5544_v53 }
 0x42d   :  { %v5548_v4 = vadd.f32 0.033991124, %v5545_v26  ;;  %v5540_v44 = vpop.permute.xlu1 %5539 }
 0x42e   :  { %v5546_v3 = vadd.f32 %v10837_v33, %v5540_v44  ;;  %v5570_v21 = vpop.permute.xlu0 %5569  ;;  %5553 = vrot.lane.b32.xlu0 %v5547_v63, %s7246_s15 }
 0x42f   :  { %v5578_v11 = vadd.f32 %v5570_v21, %v10844_v38  ;;  %5555 = vrot.lane.b32.xlu1 %v5548_v4, %s7246_s15 }
 0x430   :  { %v5549_v32 = vadd.f32 0.033991124, %v5546_v3 }
 0x431   :  { %v5581_v40 = vadd.f32 0.033991124, %v5578_v11  ;;  %v5572_v19 = vpop.permute.xlu1 %5571 }
 0x432   :  { %v5579_v9 = vadd.f32 %v10842_v13, %v5572_v19  ;;  %v5574_v1 = vpop.permute.xlu0 %5573  ;;  %5557 = vrot.lane.b32.xlu0 %v5549_v32, %s7246_s15 }
 0x433   :  { %v5580_v27 = vadd.f32 %v5574_v1, %v10854_v46  ;;  %5587 = vrot.lane.b32.xlu1 %v5581_v40, %s7247_s1 }
 0x434   :  { %v5582_v7 = vadd.f32 0.033991124, %v5579_v9 }
 0x435   :  { %v5583_v33 = vadd.f32 0.033991124, %v5580_v27  ;;  %v5604_v51 = vpop.permute.xlu1 %5603 }
 0x436   :  { %v5612_v54 = vadd.f32 %v10846_v22, %v5604_v51  ;;  %v5606_v38 = vpop.permute.xlu0 %5605  ;;  %5589 = vrot.lane.b32.xlu0 %v5582_v7, %s7247_s1 }
 0x437   :  { %v5613_v50 = vadd.f32 %v5606_v38, %v10859_v16  ;;  %5591 = vrot.lane.b32.xlu1 %v5583_v33, %s7247_s1  ;;  %v6832_v16 = vpop.f32.mrf.mxu0 }
 0x438   :  { %v5615_v31 = vadd.f32 0.033991124, %v5612_v54 }
 0x439   :  { %v5616_v13 = vadd.f32 0.033991124, %v5613_v50  ;;  %v5608_v20 = vpop.permute.xlu1 %5607  ;;  %v1794_v56 = vpop.f32.mrf.mxu0 }
 0x43a   :  { %v5614_v12 = vadd.f32 %v10856_v35, %v5608_v20  ;;  %v5638_v46 = vpop.permute.xlu0 %5637  ;;  %5621 = vrot.lane.b32.xlu0 %v5615_v31, %s7248_s20 }
 0x43b   :  { %v5646_v39 = vadd.f32 %v5638_v46, %v1754_v34  ;;  %5623 = vrot.lane.b32.xlu1 %v5616_v13, %s7248_s20  ;;  %v6835_v0 = vpop.f32.mrf.mxu0 }
 0x43c   :  { %v5617_v62 = vadd.f32 0.033991124, %v5614_v12 }
 0x43d   :  { %v5649_v57 = vadd.f32 0.033991124, %v5646_v39  ;;  %v5640_v22 = vpop.permute.xlu1 %5639  ;;  %v1804_v55 = vpop.f32.mrf.mxu0 }
 0x43e   :  { %v5647_v47 = vadd.f32 %v10861_v6, %v5640_v22  ;;  %v5642_v29 = vpop.permute.xlu0 %5641  ;;  %5625 = vrot.lane.b32.xlu0 %v5617_v62, %s7248_s20 }
 0x43f   :  { %v5648_v2 = vadd.f32 %v5642_v29, %v1764_v23  ;;  %5655 = vrot.lane.b32.xlu1 %v5649_v57, %s7249_s22 }
 0x440   :  { %v5650_v41 = vadd.f32 0.033991124, %v5647_v47 }
 0x441   :  { %v5651_v14 = vadd.f32 0.033991124, %v5648_v2  ;;  %v5672_v35 = vpop.permute.xlu1 %5671 }
 0x442   :  { %v5680_v17 = vadd.f32 %v6823_v59, %v5672_v35  ;;  %v5674_v28 = vpop.permute.xlu0 %5673  ;;  %5657 = vrot.lane.b32.xlu0 %v5650_v41, %s7249_s22 }
 0x443   :  { %v5681_v60 = vadd.f32 %v5674_v28, %v1774_v36  ;;  %5659 = vrot.lane.b32.xlu1 %v5651_v14, %s7249_s22 }
 0x444   :  { %v5683_v52 = vadd.f32 0.033991124, %v5680_v17 }
 0x445   :  { %v5684_v37 = vadd.f32 0.033991124, %v5681_v60  ;;  %v5676_v45 = vpop.permute.xlu1 %5675 }
 0x446   :  { %v5682_v18 = vadd.f32 %v6826_v30, %v5676_v45  ;;  %v5706_v6 = vpop.permute.xlu0 %5705  ;;  %5689 = vrot.lane.b32.xlu0 %v5683_v52, %s7250_s25 }
 0x447   :  { %v5714_v48 = vadd.f32 %v5706_v6, %v1784_v61  ;;  %5691 = vrot.lane.b32.xlu1 %v5684_v37, %s7250_s25 }
 0x448   :  { %v5685_v25 = vadd.f32 0.033991124, %v5682_v18 }
 0x449   :  { %v5717_v34 = vadd.f32 0.033991124, %v5714_v48  ;;  %v5708_v43 = vpop.permute.xlu1 %5707 }
 0x44a   :  { %v5715_v24 = vadd.f32 %v6829_v42, %v5708_v43  ;;  %v5710_v49 = vpop.permute.xlu0 %5709  ;;  %5693 = vrot.lane.b32.xlu0 %v5685_v25, %s7250_s25 }
 0x44b   :  { %v5716_v15 = vadd.f32 %v5710_v49, %v1794_v56  ;;  %5723 = vrot.lane.b32.xlu1 %v5717_v34, %s7251_s23 }
 0x44c   :  { %v5718_v58 = vadd.f32 0.033991124, %v5715_v24 }
 0x44d   :  { %v5719_v59 = vadd.f32 0.033991124, %v5716_v15  ;;  %v5740_v10 = vpop.permute.xlu1 %5739 }
 0x44e   :  { %v5748_v8 = vadd.f32 %v6832_v16, %v5740_v10  ;;  %v5742_v53 = vpop.permute.xlu0 %5741  ;;  %5725 = vrot.lane.b32.xlu0 %v5718_v58, %s7251_s23 }
 0x44f   :  { %v5749_v5 = vadd.f32 %v5742_v53, %v1804_v55  ;;  %5727 = vrot.lane.b32.xlu1 %v5719_v59, %s7251_s23 }
 0x450   :  { %v5751_v26 = vadd.f32 0.033991124, %v5748_v8 }
 0x451   :  { %v5752_v63 = vadd.f32 0.033991124, %v5749_v5  ;;  %v5744_v23 = vpop.permute.xlu1 %5743 }
 0x452   :  { %v5750_v4 = vadd.f32 %v6835_v0, %v5744_v23  ;;  %v5418_v44 = vpop.permute.xlu0 %5417  ;;  %5757 = vrot.lane.b32.xlu0 %v5751_v26, %s7189_s16 }
 0x453   :  { %5427 = vst.msk [vmem:[%s10977_s3] sm:$0xff] %vm5426_vm8, %v5418_v44  ;;  %5759 = vrot.lane.b32.xlu1 %v5752_v63, %s7189_s16 }
 0x454   :  { %v5753_v3 = vadd.f32 0.033991124, %v5750_v4 }
 0x455   :  { %v5420_v21 = vpop.permute.xlu1 %5419 }
 0x456   :  { %5761 = vrot.lane.b32.xlu0 %v5753_v3, %s7189_s16  ;;  %5428 = vst.msk [vmem:[%s10977_s3 + $0x8] sm:$0xff] %vm5426_vm8, %v5420_v21 }
 0x48c   :  { %v5422_v11 = vpop.permute.xlu0 %5421 }
 0x48d   :  { %5429 = vst.msk [vmem:[%s10977_s3 + $0x10] sm:$0xff] %vm5426_vm8, %v5422_v11  ;;  %v5452_v32 = vpop.permute.xlu1 %5451 }
 0x48e   :  { %5461 = vst.msk [vmem:[%s10977_s3] sm:$0xff] %vm5460_vm9, %v5452_v32 }
 0x490   :  { %v5454_v30 = vpop.permute.xlu0 %5453 }
 0x491   :  { %5462 = vst.msk [vmem:[%s10977_s3 + $0x8] sm:$0xff] %vm5460_vm9, %v5454_v30  ;;  %v5456_v40 = vpop.permute.xlu1 %5455 }
 0x492   :  { %5463 = vst.msk [vmem:[%s10977_s3 + $0x10] sm:$0xff] %vm5460_vm9, %v5456_v40 }
 0x494   :  { %v5486_v19 = vpop.permute.xlu0 %5485 }
 0x495   :  { %5495 = vst.msk [vmem:[%s10977_s3] sm:$0xff] %vm5494_vm10, %v5486_v19  ;;  %v5488_v9 = vpop.permute.xlu1 %5487 }
 0x496   :  { %5496 = vst.msk [vmem:[%s10977_s3 + $0x8] sm:$0xff] %vm5494_vm10, %v5488_v9 }
 0x498   :  { %v5490_v1 = vpop.permute.xlu0 %5489 }
 0x499   :  { %5497 = vst.msk [vmem:[%s10977_s3 + $0x10] sm:$0xff] %vm5494_vm10, %v5490_v1  ;;  %v5520_v27 = vpop.permute.xlu1 %5519 }
 0x49a   :  { %5529 = vst.msk [vmem:[%s10977_s3] sm:$0xff] %vm5528_vm11, %v5520_v27 }
 0x49c   :  { %v5522_v7 = vpop.permute.xlu0 %5521 }
 0x49d   :  { %5530 = vst.msk [vmem:[%s10977_s3 + $0x8] sm:$0xff] %vm5528_vm11, %v5522_v7  ;;  %v5524_v36 = vpop.permute.xlu1 %5523 }
 0x49e   :  { %5531 = vst.msk [vmem:[%s10977_s3 + $0x10] sm:$0xff] %vm5528_vm11, %v5524_v36 }
 0x4a0   :  { %v5554_v33 = vpop.permute.xlu0 %5553 }
 0x4a1   :  { %5563 = vst.msk [vmem:[%s10977_s3] sm:$0xff] %vm5562_vm12, %v5554_v33  ;;  %v5556_v51 = vpop.permute.xlu1 %5555 }
 0x4a2   :  { %5564 = vst.msk [vmem:[%s10977_s3 + $0x8] sm:$0xff] %vm5562_vm12, %v5556_v51 }
 0x4a4   :  { %v5558_v54 = vpop.permute.xlu0 %5557 }
 0x4a5   :  { %5565 = vst.msk [vmem:[%s10977_s3 + $0x10] sm:$0xff] %vm5562_vm12, %v5558_v54  ;;  %v5588_v38 = vpop.permute.xlu1 %5587 }
 0x4a6   :  { %5597 = vst.msk [vmem:[%s10977_s3] sm:$0xff] %vm5596_vm13, %v5588_v38 }
 0x4a8   :  { %v5590_v50 = vpop.permute.xlu0 %5589 }
 0x4a9   :  { %5598 = vst.msk [vmem:[%s10977_s3 + $0x8] sm:$0xff] %vm5596_vm13, %v5590_v50  ;;  %v5592_v31 = vpop.permute.xlu1 %5591 }
 0x4aa   :  { %5599 = vst.msk [vmem:[%s10977_s3 + $0x10] sm:$0xff] %vm5596_vm13, %v5592_v31 }
 0x4ac   :  { %v5622_v42 = vpop.permute.xlu0 %5621 }
 0x4ad   :  { %5631 = vst.msk [vmem:[%s10977_s3] sm:$0xff] %vm5630_vm14, %v5622_v42  ;;  %v5624_v13 = vpop.permute.xlu1 %5623 }
 0x4ae   :  { %5632 = vst.msk [vmem:[%s10977_s3 + $0x8] sm:$0xff] %vm5630_vm14, %v5624_v13 }
 0x4b0   :  { %v5626_v20 = vpop.permute.xlu0 %5625 }
 0x4b1   :  { %5633 = vst.msk [vmem:[%s10977_s3 + $0x10] sm:$0xff] %vm5630_vm14, %v5626_v20  ;;  %v5656_v12 = vpop.permute.xlu1 %5655 }
 0x4b2   :  { %5665 = vst.msk [vmem:[%s10977_s3] sm:$0xff] %vm5664_vm15, %v5656_v12 }
 0x4b4   :  { %v5658_v46 = vpop.permute.xlu0 %5657 }
 0x4b5   :  { %5666 = vst.msk [vmem:[%s10977_s3 + $0x8] sm:$0xff] %vm5664_vm15, %v5658_v46  ;;  %v5660_v39 = vpop.permute.xlu1 %5659 }
 0x4b6   :  { %5667 = vst.msk [vmem:[%s10977_s3 + $0x10] sm:$0xff] %vm5664_vm15, %v5660_v39 }
 0x4b8   :  { %v5690_v62 = vpop.permute.xlu0 %5689 }
 0x4b9   :  { %5699 = vst.msk [vmem:[%s10977_s3] sm:$0xff] %vm5698_vm0, %v5690_v62  ;;  %v5692_v61 = vpop.permute.xlu1 %5691 }
 0x4ba   :  { %5700 = vst.msk [vmem:[%s10977_s3 + $0x8] sm:$0xff] %vm5698_vm0, %v5692_v61 }
 0x4bc   :  { %v5694_v57 = vpop.permute.xlu0 %5693 }
 0x4bd   :  { %5701 = vst.msk [vmem:[%s10977_s3 + $0x10] sm:$0xff] %vm5698_vm0, %v5694_v57  ;;  %v5724_v22 = vpop.permute.xlu1 %5723 }
 0x4be   :  { %5733 = vst.msk [vmem:[%s10977_s3] sm:$0xff] %vm5732_vm2, %v5724_v22 }
 0x4c0   :  { %v5726_v47 = vpop.permute.xlu0 %5725 }
 0x4c1   :  { %5734 = vst.msk [vmem:[%s10977_s3 + $0x8] sm:$0xff] %vm5732_vm2, %v5726_v47  ;;  %v5728_v29 = vpop.permute.xlu1 %5727 }
 0x4c2   :  { %5735 = vst.msk [vmem:[%s10977_s3 + $0x10] sm:$0xff] %vm5732_vm2, %v5728_v29 }
 0x4c4   :  { %v5758_v2 = vpop.permute.xlu0 %5757 }
 0x4c5   :  { %5767 = vst.msk [vmem:[%s10977_s3] sm:$0xff] %vm5766_vm3, %v5758_v2  ;;  %v5760_v41 = vpop.permute.xlu1 %5759 }
 0x4c6   :  { %5768 = vst.msk [vmem:[%s10977_s3 + $0x8] sm:$0xff] %vm5766_vm3, %v5760_v41 }
 0x4c8   :  { %v5762_v16 = vpop.permute.xlu0 %5761 }
 0x4c9   :  { %5769 = vst.msk [vmem:[%s10977_s3 + $0x10] sm:$0xff] %vm5766_vm3, %v5762_v16 }

</bundles_post_ra>
